<compile_context>
chip_gen: v7x
topology: tpu7x:2x2x1
jax: 0.10.0
libtpu: 0.0.40
codegen_flags: <defaults>
</compile_context>

<pallas_src>
import functools

import numpy as np
import jax
import jax.numpy as jnp
from jax import lax
from jax.experimental import pallas as pl
from jax.experimental.pallas import tpu as pltpu

EPS = 1e-5        # BatchNorm3d and LayerNorm default eps
CIN_PAD = 8       # pad the 3 input channels up to 8
VEC_ROWS = 24     # packed per-channel-vector input: rows 0..8 params, 16.. batch-pool
LANES = 128


def active_taps(D, H, W):
    """3x3x3 taps that can touch at least one in-bounds voxel (exact static pruning)."""
    taps = []
    for kd in range(3):
        for kh in range(3):
            for kw in range(3):
                if (kd != 1 and D < 2) or (kh != 1 and H < 2) or (kw != 1 and W < 2):
                    continue
                taps.append((kd, kh, kw))
    return tuple(taps)


# ------------------------------ fused kernel -------------------------------- #

def fused_convnet3d_kernel(B, D, H, W, out_dim, deltas, cins, couts, w_offs, pad_off,
                           x_ref, w_ref, mm_ref, pv_ref, o_ref, pad_ref, patch_ref):
    f32, bf16 = jnp.float32, jnp.bfloat16
    HW = H * W
    M = B * D * HW
    T = len(deltas)
    C3 = couts[-1]

    # zero the shift-padding scratch once; its border rows stay zero for every layer
    pad_ref[...] = jnp.zeros_like(pad_ref)

    act = x_ref[...]                                            # (M, CIN_PAD) f32
    for layer in range(3):
        cin, cout = cins[layer], couts[layer]
        # stage activation into the zero-padded scratch (aligned store)
        pad_ref[pad_off:pad_off + M, 0:cin] = act
        # im2col: one statically shifted, validity-masked read per active tap
        for t in range(T):
            src = pad_off + deltas[t]
            piece = pad_ref[src:src + M, 0:cin] * mm_ref[:, t:t + 1]
            patch_ref[:, t * cin:(t + 1) * cin] = piece.astype(bf16)
        # single MXU matmul per conv layer: (M, T*cin) @ (T*cin, cout), f32 accumulate
        w = w_ref[w_offs[layer]:w_offs[layer] + T * cin, 0:cout]
        y = jnp.dot(patch_ref[:, 0:T * cin], w, preferred_element_type=f32)   # (M, cout)
        # BatchNorm3d (training-mode batch stats; conv bias cancels exactly) + ReLU
        mu = jnp.mean(y, axis=0, keepdims=True)
        var = jnp.mean((y - mu) * (y - mu), axis=0, keepdims=True)
        yn = (y - mu) * lax.rsqrt(var + EPS)
        g = pv_ref[2 * layer:2 * layer + 1, 0:cout]
        be = pv_ref[2 * layer + 1:2 * layer + 2, 0:cout]
        act = jnp.maximum(yn * g + be, 0.0)                     # (M, cout) f32

    # ---- frame mean (dim=2) + Linear, fused ----
    # expand act (M, C3) into an s-major (M, HW*C3) patch with lane-aligned masked stores
    for s in range(HW):
        patch_ref[:, s * C3:(s + 1) * C3] = (act * mm_ref[:, T + s:T + s + 1]).astype(bf16)
    # one big matmul against the (s, c)-ordered fc weights (1/D folded in at prepare time)
    fcw = w_ref[w_offs[3]:w_offs[3] + HW * C3, 0:out_dim]
    f_pre = jnp.dot(patch_ref[:, 0:HW * C3], fcw, preferred_element_type=f32)  # (M, out)
    # pool the D*HW rows of each sample with a tiny 0/1 bf16 matmul, add fc bias
    pb = pv_ref[16:16 + B, 0:M].astype(bf16)                    # (B, M)
    y = jnp.dot(pb, f_pre.astype(bf16), preferred_element_type=f32) \
        + pv_ref[6:7, 0:out_dim]                                # (B, out_dim)

    # ---- LayerNorm over features + ReLU, written directly as (B, out_dim) ----
    mu = jnp.mean(y, axis=1, keepdims=True)
    var = jnp.mean((y - mu) * (y - mu), axis=1, keepdims=True)
    yn = (y - mu) * lax.rsqrt(var + EPS)
    o_ref[...] = jnp.maximum(yn * pv_ref[7:8, 0:out_dim] + pv_ref[8:9, 0:out_dim], 0.0)


# ------------------------------ wrapper / glue ------------------------------ #

def _vmem_spec():
    return pl.BlockSpec(memory_space=pltpu.MemorySpace.VMEM)


def prepare_params(p, B, D, H, W):
    """One-time host-side packing of every weight / constant the kernel needs."""
    taps = active_taps(D, H, W)
    T = len(taps)
    HW = H * W
    M = B * D * HW
    couts = tuple(int(p[f"conv{i}_w"].shape[0]) for i in range(3))   # (32, 64, 128)
    cins = (CIN_PAD, couts[0], couts[1])
    out_dim = int(p["fc_w"].shape[0])
    C3 = couts[-1]
    assert M % 8 == 0 and M <= LANES, "single-block kernel assumes 8 | M <= 128"
    assert 16 + B <= VEC_ROWS and out_dim <= LANES and C3 <= LANES
    assert p["fc_w"].shape[1] == C3 * HW

    deltas = tuple((kd - 1) * HW + (kh - 1) * W + (kw - 1) for kd, kh, kw in taps)
    pad_off = ((max(abs(d) for d in deltas) + 7) // 8) * 8           # aligned store offset

    # ---- packed weights: [conv0 | conv1 | conv2 | fc], block starts 32-row aligned ----
    sizes = [T * cins[0], T * cins[1], T * cins[2], HW * C3]
    w_offs, off = [], 0
    for sz in sizes:
        w_offs.append(off)
        off = ((off + sz + 31) // 32) * 32
    w_all = np.zeros((off, LANES), np.float32)
    for i in range(3):
        w = np.asarray(p[f"conv{i}_w"], np.float32)                  # (cout, cin_real, 3,3,3)
        cin_real = w.shape[1]
        for t, (kd, kh, kw) in enumerate(taps):
            r0 = w_offs[i] + t * cins[i]
            w_all[r0:r0 + cin_real, :couts[i]] = w[:, :, kd, kh, kw].T
    fcw = np.asarray(p["fc_w"], np.float32)                          # (out, C3*HW), col = c*HW+s
    fc_blk = np.transpose(fcw.reshape(out_dim, C3, HW), (2, 1, 0)).reshape(HW * C3, out_dim)
    w_all[w_offs[3]:w_offs[3] + HW * C3, :out_dim] = fc_blk / float(D)   # fold frame mean
    w_all = jnp.asarray(w_all, jnp.bfloat16)

    # ---- per-position masks: T tap-validity columns, then HW frame-slot one-hots ----
    m = np.arange(M)
    d, h, wp = (m // HW) % D, (m // W) % H, m % W
    cols = []
    for kd, kh, kw in taps:
        valid = ((d + kd - 1 >= 0) & (d + kd - 1 < D) &
                 (h + kh - 1 >= 0) & (h + kh - 1 < H) &
                 (wp + kw - 1 >= 0) & (wp + kw - 1 < W))
        cols.append(valid.astype(np.float32))
    for s in range(HW):
        cols.append((m % HW == s).astype(np.float32))
    mmask = jnp.asarray(np.stack(cols, axis=1))                      # (M, T + HW) f32

    # ---- packed per-channel vectors (+ 0/1 batch-pool matrix at row 16) ----
    pvec = np.zeros((VEC_ROWS, LANES), np.float32)
    for i in range(3):
        pvec[2 * i, :couts[i]] = np.asarray(p[f"bn{i}_g"])
        pvec[2 * i + 1, :couts[i]] = np.asarray(p[f"bn{i}_b"])
    pvec[6, :out_dim] = np.asarray(p["fc_b"])
    pvec[7, :out_dim] = np.asarray(p["ln_g"])
    pvec[8, :out_dim] = np.asarray(p["ln_b"])
    for b in range(B):
        pvec[16 + b, b * D * HW:(b + 1) * D * HW] = 1.0
    pvec = jnp.asarray(pvec)

    cfg = dict(B=B, D=D, H=H, W=W, out_dim=out_dim, deltas=deltas, cins=cins,
               couts=couts, w_offs=tuple(w_offs), pad_off=pad_off, T=T, HW=HW, M=M)
    return dict(w_all=w_all, mmask=mmask, pvec=pvec), cfg


def make_forward(cfg):
    B, D, H, W = cfg["B"], cfg["D"], cfg["H"], cfg["W"]
    HW, M, T = cfg["HW"], cfg["M"], cfg["T"]
    out_dim, cins, couts = cfg["out_dim"], cfg["cins"], cfg["couts"]
    pad_off = cfg["pad_off"]
    C3 = couts[-1]
    patch_cols = max(HW * C3, T * max(cins))
    patch_cols = ((patch_cols + LANES - 1) // LANES) * LANES

    kernel = functools.partial(
        fused_convnet3d_kernel, B, D, H, W, out_dim,
        cfg["deltas"], cins, couts, cfg["w_offs"], pad_off)

    def forward(x, prep):
        # Input relayout -> (M, CIN_PAD): flat (b,d,h,w) on sublanes, channels on lanes.
        # Kept as one tiny fused XLA op; an in-kernel 5-D transpose buys nothing at this size.
        C = x.shape[1]
        xT = jnp.transpose(x, (0, 2, 3, 4, 1)).reshape(M, C).astype(jnp.float32)
        xT = jnp.pad(xT, ((0, 0), (0, CIN_PAD - C)))
        return pl.pallas_call(
            kernel,
            out_shape=jax.ShapeDtypeStruct((B, out_dim), jnp.float32),
            in_specs=[_vmem_spec()] * 4,
            out_specs=_vmem_spec(),
            scratch_shapes=[
                pltpu.VMEM((M + 2 * pad_off, LANES), jnp.float32),   # zero-padded activation
                pltpu.VMEM((M, patch_cols), jnp.bfloat16),           # im2col / fc patch
            ],
        )(xT, prep["w_all"], prep["mmask"], prep["pvec"])

    return forward


# ------------------------- pure-JAX reference check ------------------------- #

def reference_forward(x, p):
    h = x.astype(jnp.float32)
    for i in range(3):
        h = lax.conv_general_dilated(
            h, p[f"conv{i}_w"], window_strides=(1, 1, 1), padding=[(1, 1)] * 3,
            dimension_numbers=("NCDHW", "OIDHW", "NCDHW"),
            precision=lax.Precision.HIGHEST)
        h = h + p[f"conv{i}_b"][None, :, None, None, None]
        mu = jnp.mean(h, axis=(0, 2, 3, 4), keepdims=True)
        var = jnp.mean((h - mu) ** 2, axis=(0, 2, 3, 4), keepdims=True)
        h = (h - mu) * lax.rsqrt(var + EPS)
        h = h * p[f"bn{i}_g"][None, :, None, None, None] + p[f"bn{i}_b"][None, :, None, None, None]
        h = jnp.maximum(h, 0.0)
    h = jnp.mean(h, axis=2)
    h = h.reshape(h.shape[0], -1)
    y = h @ p["fc_w"].T + p["fc_b"]
    mu = jnp.mean(y, axis=-1, keepdims=True)
    var = jnp.mean((y - mu) ** 2, axis=-1, keepdims=True)
    y = (y - mu) * lax.rsqrt(var + EPS)
    return jnp.maximum(y * p["ln_g"] + p["ln_b"], 0.0)


# ---------------------------------- params ----------------------------------- #

def init_params(key, num_keypoints=8, out_dim=32):
    channels = [3, 32, 64, 128]
    keys = jax.random.split(key, 16)
    ki = 0
    p = {}
    for i in range(3):
        cin, cout = channels[i], channels[i + 1]
        bound = 1.0 / float(jnp.sqrt(cin * 27.0))
        p[f"conv{i}_w"] = jax.random.uniform(keys[ki], (cout, cin, 3, 3, 3),
                                             jnp.float32, -bound, bound); ki += 1
        p[f"conv{i}_b"] = jax.random.uniform(keys[ki], (cout,),
                                             jnp.float32, -bound, bound); ki += 1
        p[f"bn{i}_g"] = 1.0 + 0.1 * jax.random.normal(keys[ki], (cout,), jnp.float32); ki += 1
        p[f"bn{i}_b"] = 0.1 * jax.random.normal(keys[ki], (cout,), jnp.float32); ki += 1
    in_f = 128 * num_keypoints
    bound = 1.0 / float(jnp.sqrt(float(in_f)))
    p["fc_w"] = jax.random.uniform(keys[ki], (out_dim, in_f), jnp.float32, -bound, bound); ki += 1
    p["fc_b"] = jax.random.uniform(keys[ki], (out_dim,), jnp.float32, -bound, bound); ki += 1
    p["ln_g"] = 1.0 + 0.1 * jax.random.normal(keys[ki], (out_dim,), jnp.float32); ki += 1
    p["ln_b"] = 0.1 * jax.random.normal(keys[ki], (out_dim,), jnp.float32); ki += 1
    return p


if __name__ == "__main__":
    key = jax.random.PRNGKey(0)
    kx, kp = jax.random.split(key)

    # small shapes consistent with the module: x = (B, 3, F, K, 1), num_keypoints = K
    B, Cin, Fdim, K, W = 2, 3, 4, 8, 1
    num_keypoints, out_dim = K * W, 32

    x = jax.random.normal(kx, (B, Cin, Fdim, K, W), jnp.float32)
    params = init_params(kp, num_keypoints=num_keypoints, out_dim=out_dim)

    prep, cfg = prepare_params(params, B, Fdim, K, W)   # one-time weight/constant packing
    fwd = jax.jit(make_forward(cfg))

    y = jax.block_until_ready(fwd(x, prep))
    assert y.shape == (B, out_dim), y.shape

    y_ref = reference_forward(x, params)
    max_err = float(jnp.max(jnp.abs(y - y_ref)))
    # bf16 MXU operands (f32 accumulation / f32 BN+LN math) vs an f32 HIGHEST reference
    if not bool(jnp.allclose(y, y_ref, atol=3e-2, rtol=3e-2)):
        raise AssertionError(f"Pallas output mismatch vs reference (max abs err {max_err})")

    print("KERNEL_OK")
</pallas_src>

<mosaic_0001>
module attributes {stable_mosaic.version = 11 : i64} {
  func.func @fused_convnet3d_kernel(%arg0: memref<64x8xf32, #tpu.memory_space<vmem>>, %arg1: memref<1984x128xbf16, #tpu.memory_space<vmem>>, %arg2: memref<64x17xf32, #tpu.memory_space<vmem>>, %arg3: memref<24x128xf32, #tpu.memory_space<vmem>>, %arg4: memref<2x32xf32, #tpu.memory_space<vmem>>, %arg5: memref<96x128xf32, #tpu.memory_space<vmem>>, %arg6: memref<64x1024xbf16, #tpu.memory_space<vmem>>) attributes {dimension_semantics = [], scalar_prefetch = 0 : i64, scratch_operands = 2 : i64, tpu.core_type = #tpu.core_type<tc>} {
    %cst = arith.constant 0.000000e+00 : f32
    %0 = vector.broadcast %cst : f32 to vector<96x128xf32>
    %c0 = arith.constant 0 : index
    %c0_0 = arith.constant 0 : index
    %1 = vector.load %arg5[%c0, %c0_0] : memref<96x128xf32, #tpu.memory_space<vmem>>, vector<96x128xf32>
    tpu.vector_store %arg5[%c0, %c0_0], %0 {strides = array<i32>} : memref<96x128xf32, #tpu.memory_space<vmem>>, vector<96x128xf32>,
    %c0_1 = arith.constant 0 : index
    %c0_2 = arith.constant 0 : index
    %2 = vector.load %arg0[%c0_1, %c0_2] : memref<64x8xf32, #tpu.memory_space<vmem>>, vector<64x8xf32>
    %c16 = arith.constant 16 : index
    %c0_3 = arith.constant 0 : index
    %3 = vector.load %arg5[%c16, %c0_3] : memref<96x128xf32, #tpu.memory_space<vmem>>, vector<64x8xf32>
    tpu.vector_store %arg5[%c16, %c0_3], %2 {strides = array<i32>} : memref<96x128xf32, #tpu.memory_space<vmem>>, vector<64x8xf32>,
    %c7 = arith.constant 7 : index
    %c0_4 = arith.constant 0 : index
    %4 = vector.load %arg5[%c7, %c0_4] : memref<96x128xf32, #tpu.memory_space<vmem>>, vector<64x8xf32>
    %c0_5 = arith.constant 0 : index
    %c0_6 = arith.constant 0 : index
    %5 = vector.load %arg2[%c0_5, %c0_6] : memref<64x17xf32, #tpu.memory_space<vmem>>, vector<64x1xf32>
    %6 = vector.broadcast %5 : vector<64x1xf32> to vector<64x8xf32>
    %7 = arith.mulf %4, %6 : vector<64x8xf32>
    %8 = arith.truncf %7 : vector<64x8xf32> to vector<64x8xbf16>
    %c0_7 = arith.constant 0 : index
    %c0_8 = arith.constant 0 : index
    %9 = vector.load %arg6[%c0_7, %c0_8] : memref<64x1024xbf16, #tpu.memory_space<vmem>>, vector<64x8xbf16>
    tpu.vector_store %arg6[%c0_7, %c0_8], %8 {strides = array<i32>} : memref<64x1024xbf16, #tpu.memory_space<vmem>>, vector<64x8xbf16>,
    %c8 = arith.constant 8 : index
    %c0_9 = arith.constant 0 : index
    %10 = vector.load %arg5[%c8, %c0_9] : memref<96x128xf32, #tpu.memory_space<vmem>>, vector<64x8xf32>
    %c0_10 = arith.constant 0 : index
    %c1 = arith.constant 1 : index
    %11 = vector.load %arg2[%c0_10, %c1] : memref<64x17xf32, #tpu.memory_space<vmem>>, vector<64x1xf32>
    %12 = vector.broadcast %11 : vector<64x1xf32> to vector<64x8xf32>
    %13 = arith.mulf %10, %12 : vector<64x8xf32>
    %14 = arith.truncf %13 : vector<64x8xf32> to vector<64x8xbf16>
    %c0_11 = arith.constant 0 : index
    %c8_12 = arith.constant 8 : index
    %15 = vector.load %arg6[%c0_11, %c8_12] : memref<64x1024xbf16, #tpu.memory_space<vmem>>, vector<64x8xbf16>
    tpu.vector_store %arg6[%c0_11, %c8_12], %14 {strides = array<i32>} : memref<64x1024xbf16, #tpu.memory_space<vmem>>, vector<64x8xbf16>,
    %c9 = arith.constant 9 : index
    %c0_13 = arith.constant 0 : index
    %16 = vector.load %arg5[%c9, %c0_13] : memref<96x128xf32, #tpu.memory_space<vmem>>, vector<64x8xf32>
    %c0_14 = arith.constant 0 : index
    %c2 = arith.constant 2 : index
    %17 = vector.load %arg2[%c0_14, %c2] : memref<64x17xf32, #tpu.memory_space<vmem>>, vector<64x1xf32>
    %18 = vector.broadcast %17 : vector<64x1xf32> to vector<64x8xf32>
    %19 = arith.mulf %16, %18 : vector<64x8xf32>
    %20 = arith.truncf %19 : vector<64x8xf32> to vector<64x8xbf16>
    %c0_15 = arith.constant 0 : index
    %c16_16 = arith.constant 16 : index
    %21 = vector.load %arg6[%c0_15, %c16_16] : memref<64x1024xbf16, #tpu.memory_space<vmem>>, vector<64x8xbf16>
    tpu.vector_store %arg6[%c0_15, %c16_16], %20 {strides = array<i32>} : memref<64x1024xbf16, #tpu.memory_space<vmem>>, vector<64x8xbf16>,
    %c15 = arith.constant 15 : index
    %c0_17 = arith.constant 0 : index
    %22 = vector.load %arg5[%c15, %c0_17] : memref<96x128xf32, #tpu.memory_space<vmem>>, vector<64x8xf32>
    %c0_18 = arith.constant 0 : index
    %c3 = arith.constant 3 : index
    %23 = vector.load %arg2[%c0_18, %c3] : memref<64x17xf32, #tpu.memory_space<vmem>>, vector<64x1xf32>
    %24 = vector.broadcast %23 : vector<64x1xf32> to vector<64x8xf32>
    %25 = arith.mulf %22, %24 : vector<64x8xf32>
    %26 = arith.truncf %25 : vector<64x8xf32> to vector<64x8xbf16>
    %c0_19 = arith.constant 0 : index
    %c24 = arith.constant 24 : index
    %27 = vector.load %arg6[%c0_19, %c24] : memref<64x1024xbf16, #tpu.memory_space<vmem>>, vector<64x8xbf16>
    tpu.vector_store %arg6[%c0_19, %c24], %26 {strides = array<i32>} : memref<64x1024xbf16, #tpu.memory_space<vmem>>, vector<64x8xbf16>,
    %c16_20 = arith.constant 16 : index
    %c0_21 = arith.constant 0 : index
    %28 = vector.load %arg5[%c16_20, %c0_21] : memref<96x128xf32, #tpu.memory_space<vmem>>, vector<64x8xf32>
    %c0_22 = arith.constant 0 : index
    %c4 = arith.constant 4 : index
    %29 = vector.load %arg2[%c0_22, %c4] : memref<64x17xf32, #tpu.memory_space<vmem>>, vector<64x1xf32>
    %30 = vector.broadcast %29 : vector<64x1xf32> to vector<64x8xf32>
    %31 = arith.mulf %28, %30 : vector<64x8xf32>
    %32 = arith.truncf %31 : vector<64x8xf32> to vector<64x8xbf16>
    %c0_23 = arith.constant 0 : index
    %c32 = arith.constant 32 : index
    %33 = vector.load %arg6[%c0_23, %c32] : memref<64x1024xbf16, #tpu.memory_space<vmem>>, vector<64x8xbf16>
    tpu.vector_store %arg6[%c0_23, %c32], %32 {strides = array<i32>} : memref<64x1024xbf16, #tpu.memory_space<vmem>>, vector<64x8xbf16>,
    %c17 = arith.constant 17 : index
    %c0_24 = arith.constant 0 : index
    %34 = vector.load %arg5[%c17, %c0_24] : memref<96x128xf32, #tpu.memory_space<vmem>>, vector<64x8xf32>
    %c0_25 = arith.constant 0 : index
    %c5 = arith.constant 5 : index
    %35 = vector.load %arg2[%c0_25, %c5] : memref<64x17xf32, #tpu.memory_space<vmem>>, vector<64x1xf32>
    %36 = vector.broadcast %35 : vector<64x1xf32> to vector<64x8xf32>
    %37 = arith.mulf %34, %36 : vector<64x8xf32>
    %38 = arith.truncf %37 : vector<64x8xf32> to vector<64x8xbf16>
    %c0_26 = arith.constant 0 : index
    %c40 = arith.constant 40 : index
    %39 = vector.load %arg6[%c0_26, %c40] : memref<64x1024xbf16, #tpu.memory_space<vmem>>, vector<64x8xbf16>
    tpu.vector_store %arg6[%c0_26, %c40], %38 {strides = array<i32>} : memref<64x1024xbf16, #tpu.memory_space<vmem>>, vector<64x8xbf16>,
    %c23 = arith.constant 23 : index
    %c0_27 = arith.constant 0 : index
    %40 = vector.load %arg5[%c23, %c0_27] : memref<96x128xf32, #tpu.memory_space<vmem>>, vector<64x8xf32>
    %c0_28 = arith.constant 0 : index
    %c6 = arith.constant 6 : index
    %41 = vector.load %arg2[%c0_28, %c6] : memref<64x17xf32, #tpu.memory_space<vmem>>, vector<64x1xf32>
    %42 = vector.broadcast %41 : vector<64x1xf32> to vector<64x8xf32>
    %43 = arith.mulf %40, %42 : vector<64x8xf32>
    %44 = arith.truncf %43 : vector<64x8xf32> to vector<64x8xbf16>
    %c0_29 = arith.constant 0 : index
    %c48 = arith.constant 48 : index
    %45 = vector.load %arg6[%c0_29, %c48] : memref<64x1024xbf16, #tpu.memory_space<vmem>>, vector<64x8xbf16>
    tpu.vector_store %arg6[%c0_29, %c48], %44 {strides = array<i32>} : memref<64x1024xbf16, #tpu.memory_space<vmem>>, vector<64x8xbf16>,
    %c24_30 = arith.constant 24 : index
    %c0_31 = arith.constant 0 : index
    %46 = vector.load %arg5[%c24_30, %c0_31] : memref<96x128xf32, #tpu.memory_space<vmem>>, vector<64x8xf32>
    %c0_32 = arith.constant 0 : index
    %c7_33 = arith.constant 7 : index
    %47 = vector.load %arg2[%c0_32, %c7_33] : memref<64x17xf32, #tpu.memory_space<vmem>>, vector<64x1xf32>
    %48 = vector.broadcast %47 : vector<64x1xf32> to vector<64x8xf32>
    %49 = arith.mulf %46, %48 : vector<64x8xf32>
    %50 = arith.truncf %49 : vector<64x8xf32> to vector<64x8xbf16>
    %c0_34 = arith.constant 0 : index
    %c56 = arith.constant 56 : index
    %51 = vector.load %arg6[%c0_34, %c56] : memref<64x1024xbf16, #tpu.memory_space<vmem>>, vector<64x8xbf16>
    tpu.vector_store %arg6[%c0_34, %c56], %50 {strides = array<i32>} : memref<64x1024xbf16, #tpu.memory_space<vmem>>, vector<64x8xbf16>,
    %c25 = arith.constant 25 : index
    %c0_35 = arith.constant 0 : index
    %52 = vector.load %arg5[%c25, %c0_35] : memref<96x128xf32, #tpu.memory_space<vmem>>, vector<64x8xf32>
    %c0_36 = arith.constant 0 : index
    %c8_37 = arith.constant 8 : index
    %53 = vector.load %arg2[%c0_36, %c8_37] : memref<64x17xf32, #tpu.memory_space<vmem>>, vector<64x1xf32>
    %54 = vector.broadcast %53 : vector<64x1xf32> to vector<64x8xf32>
    %55 = arith.mulf %52, %54 : vector<64x8xf32>
    %56 = arith.truncf %55 : vector<64x8xf32> to vector<64x8xbf16>
    %c0_38 = arith.constant 0 : index
    %c64 = arith.constant 64 : index
    %57 = vector.load %arg6[%c0_38, %c64] : memref<64x1024xbf16, #tpu.memory_space<vmem>>, vector<64x8xbf16>
    tpu.vector_store %arg6[%c0_38, %c64], %56 {strides = array<i32>} : memref<64x1024xbf16, #tpu.memory_space<vmem>>, vector<64x8xbf16>,
    %c0_39 = arith.constant 0 : index
    %c0_40 = arith.constant 0 : index
    %58 = vector.load %arg1[%c0_39, %c0_40] : memref<1984x128xbf16, #tpu.memory_space<vmem>>, vector<72x32xbf16>
    %c0_41 = arith.constant 0 : index
    %c0_42 = arith.constant 0 : index
    %59 = vector.load %arg6[%c0_41, %c0_42] : memref<64x1024xbf16, #tpu.memory_space<vmem>>, vector<64x72xbf16>
    %cst_43 = arith.constant dense<0.000000e+00> : vector<64x32xf32>
    %60 = tpu.matmul %59, %58, %cst_43 {dimension_numbers = #tpu.dot_dimension_numbers<[1], [0], [0], [1], [0, 0, 1, 1], [], []>} : vector<64x72xbf16>, vector<72x32xbf16>, vector<64x32xf32> -> vector<64x32xf32>
    %cst_44 = arith.constant dense<0.000000e+00> : vector<32xf32>
    %61 = vector.multi_reduction <add>, %60, %cst_44 [0] : vector<64x32xf32> to vector<32xf32>
    %62 = vector.shape_cast %61 : vector<32xf32> to vector<1x32xf32>
    %cst_45 = arith.constant 6.400000e+01 : f32
    %63 = vector.broadcast %cst_45 : f32 to vector<1x32xf32>
    %64 = arith.divf %62, %63 : vector<1x32xf32>
    %65 = vector.broadcast %64 : vector<1x32xf32> to vector<64x32xf32>
    %66 = arith.subf %60, %65 : vector<64x32xf32>
    %67 = vector.broadcast %64 : vector<1x32xf32> to vector<64x32xf32>
    %68 = arith.subf %60, %67 : vector<64x32xf32>
    %69 = arith.mulf %66, %68 : vector<64x32xf32>
    %cst_46 = arith.constant dense<0.000000e+00> : vector<32xf32>
    %70 = vector.multi_reduction <add>, %69, %cst_46 [0] : vector<64x32xf32> to vector<32xf32>
    %71 = vector.shape_cast %70 : vector<32xf32> to vector<1x32xf32>
    %cst_47 = arith.constant 6.400000e+01 : f32
    %72 = vector.broadcast %cst_47 : f32 to vector<1x32xf32>
    %73 = arith.divf %71, %72 : vector<1x32xf32>
    %74 = vector.broadcast %64 : vector<1x32xf32> to vector<64x32xf32>
    %75 = arith.subf %60, %74 : vector<64x32xf32>
    %cst_48 = arith.constant 9.99999974E-6 : f32
    %76 = vector.broadcast %cst_48 : f32 to vector<1x32xf32>
    %77 = arith.addf %73, %76 : vector<1x32xf32>
    %78 = math.rsqrt %77 : vector<1x32xf32>
    %79 = vector.broadcast %78 : vector<1x32xf32> to vector<64x32xf32>
    %80 = arith.mulf %75, %79 : vector<64x32xf32>
    %c0_49 = arith.constant 0 : index
    %c0_50 = arith.constant 0 : index
    %81 = vector.load %arg3[%c0_49, %c0_50] : memref<24x128xf32, #tpu.memory_space<vmem>>, vector<1x32xf32>
    %c1_51 = arith.constant 1 : index
    %c0_52 = arith.constant 0 : index
    %82 = vector.load %arg3[%c1_51, %c0_52] : memref<24x128xf32, #tpu.memory_space<vmem>>, vector<1x32xf32>
    %83 = vector.broadcast %81 : vector<1x32xf32> to vector<64x32xf32>
    %84 = arith.mulf %80, %83 : vector<64x32xf32>
    %85 = vector.broadcast %82 : vector<1x32xf32> to vector<64x32xf32>
    %86 = arith.addf %84, %85 : vector<64x32xf32>
    %cst_53 = arith.constant 0.000000e+00 : f32
    %87 = vector.broadcast %cst_53 : f32 to vector<64x32xf32>
    %88 = arith.maximumf %86, %87 : vector<64x32xf32>
    %c16_54 = arith.constant 16 : index
    %c0_55 = arith.constant 0 : index
    %89 = vector.load %arg5[%c16_54, %c0_55] : memref<96x128xf32, #tpu.memory_space<vmem>>, vector<64x32xf32>
    tpu.vector_store %arg5[%c16_54, %c0_55], %88 {strides = array<i32>} : memref<96x128xf32, #tpu.memory_space<vmem>>, vector<64x32xf32>,
    %c7_56 = arith.constant 7 : index
    %c0_57 = arith.constant 0 : index
    %90 = vector.load %arg5[%c7_56, %c0_57] : memref<96x128xf32, #tpu.memory_space<vmem>>, vector<64x32xf32>
    %c0_58 = arith.constant 0 : index
    %c0_59 = arith.constant 0 : index
    %91 = vector.load %arg2[%c0_58, %c0_59] : memref<64x17xf32, #tpu.memory_space<vmem>>, vector<64x1xf32>
    %92 = vector.broadcast %91 : vector<64x1xf32> to vector<64x32xf32>
    %93 = arith.mulf %90, %92 : vector<64x32xf32>
    %94 = arith.truncf %93 : vector<64x32xf32> to vector<64x32xbf16>
    %c0_60 = arith.constant 0 : index
    %c0_61 = arith.constant 0 : index
    %95 = vector.load %arg6[%c0_60, %c0_61] : memref<64x1024xbf16, #tpu.memory_space<vmem>>, vector<64x32xbf16>
    tpu.vector_store %arg6[%c0_60, %c0_61], %94 {strides = array<i32>} : memref<64x1024xbf16, #tpu.memory_space<vmem>>, vector<64x32xbf16>,
    %c8_62 = arith.constant 8 : index
    %c0_63 = arith.constant 0 : index
    %96 = vector.load %arg5[%c8_62, %c0_63] : memref<96x128xf32, #tpu.memory_space<vmem>>, vector<64x32xf32>
    %c0_64 = arith.constant 0 : index
    %c1_65 = arith.constant 1 : index
    %97 = vector.load %arg2[%c0_64, %c1_65] : memref<64x17xf32, #tpu.memory_space<vmem>>, vector<64x1xf32>
    %98 = vector.broadcast %97 : vector<64x1xf32> to vector<64x32xf32>
    %99 = arith.mulf %96, %98 : vector<64x32xf32>
    %100 = arith.truncf %99 : vector<64x32xf32> to vector<64x32xbf16>
    %c0_66 = arith.constant 0 : index
    %c32_67 = arith.constant 32 : index
    %101 = vector.load %arg6[%c0_66, %c32_67] : memref<64x1024xbf16, #tpu.memory_space<vmem>>, vector<64x32xbf16>
    tpu.vector_store %arg6[%c0_66, %c32_67], %100 {strides = array<i32>} : memref<64x1024xbf16, #tpu.memory_space<vmem>>, vector<64x32xbf16>,
    %c9_68 = arith.constant 9 : index
    %c0_69 = arith.constant 0 : index
    %102 = vector.load %arg5[%c9_68, %c0_69] : memref<96x128xf32, #tpu.memory_space<vmem>>, vector<64x32xf32>
    %c0_70 = arith.constant 0 : index
    %c2_71 = arith.constant 2 : index
    %103 = vector.load %arg2[%c0_70, %c2_71] : memref<64x17xf32, #tpu.memory_space<vmem>>, vector<64x1xf32>
    %104 = vector.broadcast %103 : vector<64x1xf32> to vector<64x32xf32>
    %105 = arith.mulf %102, %104 : vector<64x32xf32>
    %106 = arith.truncf %105 : vector<64x32xf32> to vector<64x32xbf16>
    %c0_72 = arith.constant 0 : index
    %c64_73 = arith.constant 64 : index
    %107 = vector.load %arg6[%c0_72, %c64_73] : memref<64x1024xbf16, #tpu.memory_space<vmem>>, vector<64x32xbf16>
    tpu.vector_store %arg6[%c0_72, %c64_73], %106 {strides = array<i32>} : memref<64x1024xbf16, #tpu.memory_space<vmem>>, vector<64x32xbf16>,
    %c15_74 = arith.constant 15 : index
    %c0_75 = arith.constant 0 : index
    %108 = vector.load %arg5[%c15_74, %c0_75] : memref<96x128xf32, #tpu.memory_space<vmem>>, vector<64x32xf32>
    %c0_76 = arith.constant 0 : index
    %c3_77 = arith.constant 3 : index
    %109 = vector.load %arg2[%c0_76, %c3_77] : memref<64x17xf32, #tpu.memory_space<vmem>>, vector<64x1xf32>
    %110 = vector.broadcast %109 : vector<64x1xf32> to vector<64x32xf32>
    %111 = arith.mulf %108, %110 : vector<64x32xf32>
    %112 = arith.truncf %111 : vector<64x32xf32> to vector<64x32xbf16>
    %c0_78 = arith.constant 0 : index
    %c96 = arith.constant 96 : index
    %113 = vector.load %arg6[%c0_78, %c96] : memref<64x1024xbf16, #tpu.memory_space<vmem>>, vector<64x32xbf16>
    tpu.vector_store %arg6[%c0_78, %c96], %112 {strides = array<i32>} : memref<64x1024xbf16, #tpu.memory_space<vmem>>, vector<64x32xbf16>,
    %c16_79 = arith.constant 16 : index
    %c0_80 = arith.constant 0 : index
    %114 = vector.load %arg5[%c16_79, %c0_80] : memref<96x128xf32, #tpu.memory_space<vmem>>, vector<64x32xf32>
    %c0_81 = arith.constant 0 : index
    %c4_82 = arith.constant 4 : index
    %115 = vector.load %arg2[%c0_81, %c4_82] : memref<64x17xf32, #tpu.memory_space<vmem>>, vector<64x1xf32>
    %116 = vector.broadcast %115 : vector<64x1xf32> to vector<64x32xf32>
    %117 = arith.mulf %114, %116 : vector<64x32xf32>
    %118 = arith.truncf %117 : vector<64x32xf32> to vector<64x32xbf16>
    %c0_83 = arith.constant 0 : index
    %c128 = arith.constant 128 : index
    %119 = vector.load %arg6[%c0_83, %c128] : memref<64x1024xbf16, #tpu.memory_space<vmem>>, vector<64x32xbf16>
    tpu.vector_store %arg6[%c0_83, %c128], %118 {strides = array<i32>} : memref<64x1024xbf16, #tpu.memory_space<vmem>>, vector<64x32xbf16>,
    %c17_84 = arith.constant 17 : index
    %c0_85 = arith.constant 0 : index
    %120 = vector.load %arg5[%c17_84, %c0_85] : memref<96x128xf32, #tpu.memory_space<vmem>>, vector<64x32xf32>
    %c0_86 = arith.constant 0 : index
    %c5_87 = arith.constant 5 : index
    %121 = vector.load %arg2[%c0_86, %c5_87] : memref<64x17xf32, #tpu.memory_space<vmem>>, vector<64x1xf32>
    %122 = vector.broadcast %121 : vector<64x1xf32> to vector<64x32xf32>
    %123 = arith.mulf %120, %122 : vector<64x32xf32>
    %124 = arith.truncf %123 : vector<64x32xf32> to vector<64x32xbf16>
    %c0_88 = arith.constant 0 : index
    %c160 = arith.constant 160 : index
    %125 = vector.load %arg6[%c0_88, %c160] : memref<64x1024xbf16, #tpu.memory_space<vmem>>, vector<64x32xbf16>
    tpu.vector_store %arg6[%c0_88, %c160], %124 {strides = array<i32>} : memref<64x1024xbf16, #tpu.memory_space<vmem>>, vector<64x32xbf16>,
    %c23_89 = arith.constant 23 : index
    %c0_90 = arith.constant 0 : index
    %126 = vector.load %arg5[%c23_89, %c0_90] : memref<96x128xf32, #tpu.memory_space<vmem>>, vector<64x32xf32>
    %c0_91 = arith.constant 0 : index
    %c6_92 = arith.constant 6 : index
    %127 = vector.load %arg2[%c0_91, %c6_92] : memref<64x17xf32, #tpu.memory_space<vmem>>, vector<64x1xf32>
    %128 = vector.broadcast %127 : vector<64x1xf32> to vector<64x32xf32>
    %129 = arith.mulf %126, %128 : vector<64x32xf32>
    %130 = arith.truncf %129 : vector<64x32xf32> to vector<64x32xbf16>
    %c0_93 = arith.constant 0 : index
    %c192 = arith.constant 192 : index
    %131 = vector.load %arg6[%c0_93, %c192] : memref<64x1024xbf16, #tpu.memory_space<vmem>>, vector<64x32xbf16>
    tpu.vector_store %arg6[%c0_93, %c192], %130 {strides = array<i32>} : memref<64x1024xbf16, #tpu.memory_space<vmem>>, vector<64x32xbf16>,
    %c24_94 = arith.constant 24 : index
    %c0_95 = arith.constant 0 : index
    %132 = vector.load %arg5[%c24_94, %c0_95] : memref<96x128xf32, #tpu.memory_space<vmem>>, vector<64x32xf32>
    %c0_96 = arith.constant 0 : index
    %c7_97 = arith.constant 7 : index
    %133 = vector.load %arg2[%c0_96, %c7_97] : memref<64x17xf32, #tpu.memory_space<vmem>>, vector<64x1xf32>
    %134 = vector.broadcast %133 : vector<64x1xf32> to vector<64x32xf32>
    %135 = arith.mulf %132, %134 : vector<64x32xf32>
    %136 = arith.truncf %135 : vector<64x32xf32> to vector<64x32xbf16>
    %c0_98 = arith.constant 0 : index
    %c224 = arith.constant 224 : index
    %137 = vector.load %arg6[%c0_98, %c224] : memref<64x1024xbf16, #tpu.memory_space<vmem>>, vector<64x32xbf16>
    tpu.vector_store %arg6[%c0_98, %c224], %136 {strides = array<i32>} : memref<64x1024xbf16, #tpu.memory_space<vmem>>, vector<64x32xbf16>,
    %c25_99 = arith.constant 25 : index
    %c0_100 = arith.constant 0 : index
    %138 = vector.load %arg5[%c25_99, %c0_100] : memref<96x128xf32, #tpu.memory_space<vmem>>, vector<64x32xf32>
    %c0_101 = arith.constant 0 : index
    %c8_102 = arith.constant 8 : index
    %139 = vector.load %arg2[%c0_101, %c8_102] : memref<64x17xf32, #tpu.memory_space<vmem>>, vector<64x1xf32>
    %140 = vector.broadcast %139 : vector<64x1xf32> to vector<64x32xf32>
    %141 = arith.mulf %138, %140 : vector<64x32xf32>
    %142 = arith.truncf %141 : vector<64x32xf32> to vector<64x32xbf16>
    %c0_103 = arith.constant 0 : index
    %c256 = arith.constant 256 : index
    %143 = vector.load %arg6[%c0_103, %c256] : memref<64x1024xbf16, #tpu.memory_space<vmem>>, vector<64x32xbf16>
    tpu.vector_store %arg6[%c0_103, %c256], %142 {strides = array<i32>} : memref<64x1024xbf16, #tpu.memory_space<vmem>>, vector<64x32xbf16>,
    %c96_104 = arith.constant 96 : index
    %c0_105 = arith.constant 0 : index
    %144 = vector.load %arg1[%c96_104, %c0_105] : memref<1984x128xbf16, #tpu.memory_space<vmem>>, vector<288x64xbf16>
    %c0_106 = arith.constant 0 : index
    %c0_107 = arith.constant 0 : index
    %145 = vector.load %arg6[%c0_106, %c0_107] : memref<64x1024xbf16, #tpu.memory_space<vmem>>, vector<64x288xbf16>
    %cst_108 = arith.constant dense<0.000000e+00> : vector<64x64xf32>
    %146 = tpu.matmul %145, %144, %cst_108 {dimension_numbers = #tpu.dot_dimension_numbers<[1], [0], [0], [1], [0, 0, 1, 1], [], []>} : vector<64x288xbf16>, vector<288x64xbf16>, vector<64x64xf32> -> vector<64x64xf32>
    %cst_109 = arith.constant dense<0.000000e+00> : vector<64xf32>
    %147 = vector.multi_reduction <add>, %146, %cst_109 [0] : vector<64x64xf32> to vector<64xf32>
    %148 = vector.shape_cast %147 : vector<64xf32> to vector<1x64xf32>
    %cst_110 = arith.constant 6.400000e+01 : f32
    %149 = vector.broadcast %cst_110 : f32 to vector<1x64xf32>
    %150 = arith.divf %148, %149 : vector<1x64xf32>
    %151 = vector.broadcast %150 : vector<1x64xf32> to vector<64x64xf32>
    %152 = arith.subf %146, %151 : vector<64x64xf32>
    %153 = vector.broadcast %150 : vector<1x64xf32> to vector<64x64xf32>
    %154 = arith.subf %146, %153 : vector<64x64xf32>
    %155 = arith.mulf %152, %154 : vector<64x64xf32>
    %cst_111 = arith.constant dense<0.000000e+00> : vector<64xf32>
    %156 = vector.multi_reduction <add>, %155, %cst_111 [0] : vector<64x64xf32> to vector<64xf32>
    %157 = vector.shape_cast %156 : vector<64xf32> to vector<1x64xf32>
    %cst_112 = arith.constant 6.400000e+01 : f32
    %158 = vector.broadcast %cst_112 : f32 to vector<1x64xf32>
    %159 = arith.divf %157, %158 : vector<1x64xf32>
    %160 = vector.broadcast %150 : vector<1x64xf32> to vector<64x64xf32>
    %161 = arith.subf %146, %160 : vector<64x64xf32>
    %cst_113 = arith.constant 9.99999974E-6 : f32
    %162 = vector.broadcast %cst_113 : f32 to vector<1x64xf32>
    %163 = arith.addf %159, %162 : vector<1x64xf32>
    %164 = math.rsqrt %163 : vector<1x64xf32>
    %165 = vector.broadcast %164 : vector<1x64xf32> to vector<64x64xf32>
    %166 = arith.mulf %161, %165 : vector<64x64xf32>
    %c2_114 = arith.constant 2 : index
    %c0_115 = arith.constant 0 : index
    %167 = vector.load %arg3[%c2_114, %c0_115] : memref<24x128xf32, #tpu.memory_space<vmem>>, vector<1x64xf32>
    %c3_116 = arith.constant 3 : index
    %c0_117 = arith.constant 0 : index
    %168 = vector.load %arg3[%c3_116, %c0_117] : memref<24x128xf32, #tpu.memory_space<vmem>>, vector<1x64xf32>
    %169 = vector.broadcast %167 : vector<1x64xf32> to vector<64x64xf32>
    %170 = arith.mulf %166, %169 : vector<64x64xf32>
    %171 = vector.broadcast %168 : vector<1x64xf32> to vector<64x64xf32>
    %172 = arith.addf %170, %171 : vector<64x64xf32>
    %cst_118 = arith.constant 0.000000e+00 : f32
    %173 = vector.broadcast %cst_118 : f32 to vector<64x64xf32>
    %174 = arith.maximumf %172, %173 : vector<64x64xf32>
    %c16_119 = arith.constant 16 : index
    %c0_120 = arith.constant 0 : index
    %175 = vector.load %arg5[%c16_119, %c0_120] : memref<96x128xf32, #tpu.memory_space<vmem>>, vector<64x64xf32>
    tpu.vector_store %arg5[%c16_119, %c0_120], %174 {strides = array<i32>} : memref<96x128xf32, #tpu.memory_space<vmem>>, vector<64x64xf32>,
    %c7_121 = arith.constant 7 : index
    %c0_122 = arith.constant 0 : index
    %176 = vector.load %arg5[%c7_121, %c0_122] : memref<96x128xf32, #tpu.memory_space<vmem>>, vector<64x64xf32>
    %c0_123 = arith.constant 0 : index
    %c0_124 = arith.constant 0 : index
    %177 = vector.load %arg2[%c0_123, %c0_124] : memref<64x17xf32, #tpu.memory_space<vmem>>, vector<64x1xf32>
    %178 = vector.broadcast %177 : vector<64x1xf32> to vector<64x64xf32>
    %179 = arith.mulf %176, %178 : vector<64x64xf32>
    %180 = arith.truncf %179 : vector<64x64xf32> to vector<64x64xbf16>
    %c0_125 = arith.constant 0 : index
    %c0_126 = arith.constant 0 : index
    %181 = vector.load %arg6[%c0_125, %c0_126] : memref<64x1024xbf16, #tpu.memory_space<vmem>>, vector<64x64xbf16>
    tpu.vector_store %arg6[%c0_125, %c0_126], %180 {strides = array<i32>} : memref<64x1024xbf16, #tpu.memory_space<vmem>>, vector<64x64xbf16>,
    %c8_127 = arith.constant 8 : index
    %c0_128 = arith.constant 0 : index
    %182 = vector.load %arg5[%c8_127, %c0_128] : memref<96x128xf32, #tpu.memory_space<vmem>>, vector<64x64xf32>
    %c0_129 = arith.constant 0 : index
    %c1_130 = arith.constant 1 : index
    %183 = vector.load %arg2[%c0_129, %c1_130] : memref<64x17xf32, #tpu.memory_space<vmem>>, vector<64x1xf32>
    %184 = vector.broadcast %183 : vector<64x1xf32> to vector<64x64xf32>
    %185 = arith.mulf %182, %184 : vector<64x64xf32>
    %186 = arith.truncf %185 : vector<64x64xf32> to vector<64x64xbf16>
    %c0_131 = arith.constant 0 : index
    %c64_132 = arith.constant 64 : index
    %187 = vector.load %arg6[%c0_131, %c64_132] : memref<64x1024xbf16, #tpu.memory_space<vmem>>, vector<64x64xbf16>
    tpu.vector_store %arg6[%c0_131, %c64_132], %186 {strides = array<i32>} : memref<64x1024xbf16, #tpu.memory_space<vmem>>, vector<64x64xbf16>,
    %c9_133 = arith.constant 9 : index
    %c0_134 = arith.constant 0 : index
    %188 = vector.load %arg5[%c9_133, %c0_134] : memref<96x128xf32, #tpu.memory_space<vmem>>, vector<64x64xf32>
    %c0_135 = arith.constant 0 : index
    %c2_136 = arith.constant 2 : index
    %189 = vector.load %arg2[%c0_135, %c2_136] : memref<64x17xf32, #tpu.memory_space<vmem>>, vector<64x1xf32>
    %190 = vector.broadcast %189 : vector<64x1xf32> to vector<64x64xf32>
    %191 = arith.mulf %188, %190 : vector<64x64xf32>
    %192 = arith.truncf %191 : vector<64x64xf32> to vector<64x64xbf16>
    %c0_137 = arith.constant 0 : index
    %c128_138 = arith.constant 128 : index
    %193 = vector.load %arg6[%c0_137, %c128_138] : memref<64x1024xbf16, #tpu.memory_space<vmem>>, vector<64x64xbf16>
    tpu.vector_store %arg6[%c0_137, %c128_138], %192 {strides = array<i32>} : memref<64x1024xbf16, #tpu.memory_space<vmem>>, vector<64x64xbf16>,
    %c15_139 = arith.constant 15 : index
    %c0_140 = arith.constant 0 : index
    %194 = vector.load %arg5[%c15_139, %c0_140] : memref<96x128xf32, #tpu.memory_space<vmem>>, vector<64x64xf32>
    %c0_141 = arith.constant 0 : index
    %c3_142 = arith.constant 3 : index
    %195 = vector.load %arg2[%c0_141, %c3_142] : memref<64x17xf32, #tpu.memory_space<vmem>>, vector<64x1xf32>
    %196 = vector.broadcast %195 : vector<64x1xf32> to vector<64x64xf32>
    %197 = arith.mulf %194, %196 : vector<64x64xf32>
    %198 = arith.truncf %197 : vector<64x64xf32> to vector<64x64xbf16>
    %c0_143 = arith.constant 0 : index
    %c192_144 = arith.constant 192 : index
    %199 = vector.load %arg6[%c0_143, %c192_144] : memref<64x1024xbf16, #tpu.memory_space<vmem>>, vector<64x64xbf16>
    tpu.vector_store %arg6[%c0_143, %c192_144], %198 {strides = array<i32>} : memref<64x1024xbf16, #tpu.memory_space<vmem>>, vector<64x64xbf16>,
    %c16_145 = arith.constant 16 : index
    %c0_146 = arith.constant 0 : index
    %200 = vector.load %arg5[%c16_145, %c0_146] : memref<96x128xf32, #tpu.memory_space<vmem>>, vector<64x64xf32>
    %c0_147 = arith.constant 0 : index
    %c4_148 = arith.constant 4 : index
    %201 = vector.load %arg2[%c0_147, %c4_148] : memref<64x17xf32, #tpu.memory_space<vmem>>, vector<64x1xf32>
    %202 = vector.broadcast %201 : vector<64x1xf32> to vector<64x64xf32>
    %203 = arith.mulf %200, %202 : vector<64x64xf32>
    %204 = arith.truncf %203 : vector<64x64xf32> to vector<64x64xbf16>
    %c0_149 = arith.constant 0 : index
    %c256_150 = arith.constant 256 : index
    %205 = vector.load %arg6[%c0_149, %c256_150] : memref<64x1024xbf16, #tpu.memory_space<vmem>>, vector<64x64xbf16>
    tpu.vector_store %arg6[%c0_149, %c256_150], %204 {strides = array<i32>} : memref<64x1024xbf16, #tpu.memory_space<vmem>>, vector<64x64xbf16>,
    %c17_151 = arith.constant 17 : index
    %c0_152 = arith.constant 0 : index
    %206 = vector.load %arg5[%c17_151, %c0_152] : memref<96x128xf32, #tpu.memory_space<vmem>>, vector<64x64xf32>
    %c0_153 = arith.constant 0 : index
    %c5_154 = arith.constant 5 : index
    %207 = vector.load %arg2[%c0_153, %c5_154] : memref<64x17xf32, #tpu.memory_space<vmem>>, vector<64x1xf32>
    %208 = vector.broadcast %207 : vector<64x1xf32> to vector<64x64xf32>
    %209 = arith.mulf %206, %208 : vector<64x64xf32>
    %210 = arith.truncf %209 : vector<64x64xf32> to vector<64x64xbf16>
    %c0_155 = arith.constant 0 : index
    %c320 = arith.constant 320 : index
    %211 = vector.load %arg6[%c0_155, %c320] : memref<64x1024xbf16, #tpu.memory_space<vmem>>, vector<64x64xbf16>
    tpu.vector_store %arg6[%c0_155, %c320], %210 {strides = array<i32>} : memref<64x1024xbf16, #tpu.memory_space<vmem>>, vector<64x64xbf16>,
    %c23_156 = arith.constant 23 : index
    %c0_157 = arith.constant 0 : index
    %212 = vector.load %arg5[%c23_156, %c0_157] : memref<96x128xf32, #tpu.memory_space<vmem>>, vector<64x64xf32>
    %c0_158 = arith.constant 0 : index
    %c6_159 = arith.constant 6 : index
    %213 = vector.load %arg2[%c0_158, %c6_159] : memref<64x17xf32, #tpu.memory_space<vmem>>, vector<64x1xf32>
    %214 = vector.broadcast %213 : vector<64x1xf32> to vector<64x64xf32>
    %215 = arith.mulf %212, %214 : vector<64x64xf32>
    %216 = arith.truncf %215 : vector<64x64xf32> to vector<64x64xbf16>
    %c0_160 = arith.constant 0 : index
    %c384 = arith.constant 384 : index
    %217 = vector.load %arg6[%c0_160, %c384] : memref<64x1024xbf16, #tpu.memory_space<vmem>>, vector<64x64xbf16>
    tpu.vector_store %arg6[%c0_160, %c384], %216 {strides = array<i32>} : memref<64x1024xbf16, #tpu.memory_space<vmem>>, vector<64x64xbf16>,
    %c24_161 = arith.constant 24 : index
    %c0_162 = arith.constant 0 : index
    %218 = vector.load %arg5[%c24_161, %c0_162] : memref<96x128xf32, #tpu.memory_space<vmem>>, vector<64x64xf32>
    %c0_163 = arith.constant 0 : index
    %c7_164 = arith.constant 7 : index
    %219 = vector.load %arg2[%c0_163, %c7_164] : memref<64x17xf32, #tpu.memory_space<vmem>>, vector<64x1xf32>
    %220 = vector.broadcast %219 : vector<64x1xf32> to vector<64x64xf32>
    %221 = arith.mulf %218, %220 : vector<64x64xf32>
    %222 = arith.truncf %221 : vector<64x64xf32> to vector<64x64xbf16>
    %c0_165 = arith.constant 0 : index
    %c448 = arith.constant 448 : index
    %223 = vector.load %arg6[%c0_165, %c448] : memref<64x1024xbf16, #tpu.memory_space<vmem>>, vector<64x64xbf16>
    tpu.vector_store %arg6[%c0_165, %c448], %222 {strides = array<i32>} : memref<64x1024xbf16, #tpu.memory_space<vmem>>, vector<64x64xbf16>,
    %c25_166 = arith.constant 25 : index
    %c0_167 = arith.constant 0 : index
    %224 = vector.load %arg5[%c25_166, %c0_167] : memref<96x128xf32, #tpu.memory_space<vmem>>, vector<64x64xf32>
    %c0_168 = arith.constant 0 : index
    %c8_169 = arith.constant 8 : index
    %225 = vector.load %arg2[%c0_168, %c8_169] : memref<64x17xf32, #tpu.memory_space<vmem>>, vector<64x1xf32>
    %226 = vector.broadcast %225 : vector<64x1xf32> to vector<64x64xf32>
    %227 = arith.mulf %224, %226 : vector<64x64xf32>
    %228 = arith.truncf %227 : vector<64x64xf32> to vector<64x64xbf16>
    %c0_170 = arith.constant 0 : index
    %c512 = arith.constant 512 : index
    %229 = vector.load %arg6[%c0_170, %c512] : memref<64x1024xbf16, #tpu.memory_space<vmem>>, vector<64x64xbf16>
    tpu.vector_store %arg6[%c0_170, %c512], %228 {strides = array<i32>} : memref<64x1024xbf16, #tpu.memory_space<vmem>>, vector<64x64xbf16>,
    %c384_171 = arith.constant 384 : index
    %c0_172 = arith.constant 0 : index
    %230 = vector.load %arg1[%c384_171, %c0_172] : memref<1984x128xbf16, #tpu.memory_space<vmem>>, vector<576x128xbf16>
    %c0_173 = arith.constant 0 : index
    %c0_174 = arith.constant 0 : index
    %231 = vector.load %arg6[%c0_173, %c0_174] : memref<64x1024xbf16, #tpu.memory_space<vmem>>, vector<64x576xbf16>
    %cst_175 = arith.constant dense<0.000000e+00> : vector<64x128xf32>
    %232 = tpu.matmul %231, %230, %cst_175 {dimension_numbers = #tpu.dot_dimension_numbers<[1], [0], [0], [1], [0, 0, 1, 1], [], []>} : vector<64x576xbf16>, vector<576x128xbf16>, vector<64x128xf32> -> vector<64x128xf32>
    %cst_176 = arith.constant dense<0.000000e+00> : vector<128xf32>
    %233 = vector.multi_reduction <add>, %232, %cst_176 [0] : vector<64x128xf32> to vector<128xf32>
    %234 = vector.shape_cast %233 : vector<128xf32> to vector<1x128xf32>
    %cst_177 = arith.constant 6.400000e+01 : f32
    %235 = vector.broadcast %cst_177 : f32 to vector<1x128xf32>
    %236 = arith.divf %234, %235 : vector<1x128xf32>
    %237 = vector.broadcast %236 : vector<1x128xf32> to vector<64x128xf32>
    %238 = arith.subf %232, %237 : vector<64x128xf32>
    %239 = vector.broadcast %236 : vector<1x128xf32> to vector<64x128xf32>
    %240 = arith.subf %232, %239 : vector<64x128xf32>
    %241 = arith.mulf %238, %240 : vector<64x128xf32>
    %cst_178 = arith.constant dense<0.000000e+00> : vector<128xf32>
    %242 = vector.multi_reduction <add>, %241, %cst_178 [0] : vector<64x128xf32> to vector<128xf32>
    %243 = vector.shape_cast %242 : vector<128xf32> to vector<1x128xf32>
    %cst_179 = arith.constant 6.400000e+01 : f32
    %244 = vector.broadcast %cst_179 : f32 to vector<1x128xf32>
    %245 = arith.divf %243, %244 : vector<1x128xf32>
    %246 = vector.broadcast %236 : vector<1x128xf32> to vector<64x128xf32>
    %247 = arith.subf %232, %246 : vector<64x128xf32>
    %cst_180 = arith.constant 9.99999974E-6 : f32
    %248 = vector.broadcast %cst_180 : f32 to vector<1x128xf32>
    %249 = arith.addf %245, %248 : vector<1x128xf32>
    %250 = math.rsqrt %249 : vector<1x128xf32>
    %251 = vector.broadcast %250 : vector<1x128xf32> to vector<64x128xf32>
    %252 = arith.mulf %247, %251 : vector<64x128xf32>
    %c4_181 = arith.constant 4 : index
    %c0_182 = arith.constant 0 : index
    %253 = vector.load %arg3[%c4_181, %c0_182] : memref<24x128xf32, #tpu.memory_space<vmem>>, vector<1x128xf32>
    %c5_183 = arith.constant 5 : index
    %c0_184 = arith.constant 0 : index
    %254 = vector.load %arg3[%c5_183, %c0_184] : memref<24x128xf32, #tpu.memory_space<vmem>>, vector<1x128xf32>
    %255 = vector.broadcast %253 : vector<1x128xf32> to vector<64x128xf32>
    %256 = arith.mulf %252, %255 : vector<64x128xf32>
    %257 = vector.broadcast %254 : vector<1x128xf32> to vector<64x128xf32>
    %258 = arith.addf %256, %257 : vector<64x128xf32>
    %cst_185 = arith.constant 0.000000e+00 : f32
    %259 = vector.broadcast %cst_185 : f32 to vector<64x128xf32>
    %260 = arith.maximumf %258, %259 : vector<64x128xf32>
    %c0_186 = arith.constant 0 : index
    %c9_187 = arith.constant 9 : index
    %261 = vector.load %arg2[%c0_186, %c9_187] : memref<64x17xf32, #tpu.memory_space<vmem>>, vector<64x1xf32>
    %262 = vector.broadcast %261 : vector<64x1xf32> to vector<64x128xf32>
    %263 = arith.mulf %260, %262 : vector<64x128xf32>
    %264 = arith.truncf %263 : vector<64x128xf32> to vector<64x128xbf16>
    %c0_188 = arith.constant 0 : index
    %c0_189 = arith.constant 0 : index
    %265 = vector.load %arg6[%c0_188, %c0_189] : memref<64x1024xbf16, #tpu.memory_space<vmem>>, vector<64x128xbf16>
    tpu.vector_store %arg6[%c0_188, %c0_189], %264 {strides = array<i32>} : memref<64x1024xbf16, #tpu.memory_space<vmem>>, vector<64x128xbf16>,
    %c0_190 = arith.constant 0 : index
    %c10 = arith.constant 10 : index
    %266 = vector.load %arg2[%c0_190, %c10] : memref<64x17xf32, #tpu.memory_space<vmem>>, vector<64x1xf32>
    %267 = vector.broadcast %266 : vector<64x1xf32> to vector<64x128xf32>
    %268 = arith.mulf %260, %267 : vector<64x128xf32>
    %269 = arith.truncf %268 : vector<64x128xf32> to vector<64x128xbf16>
    %c0_191 = arith.constant 0 : index
    %c128_192 = arith.constant 128 : index
    %270 = vector.load %arg6[%c0_191, %c128_192] : memref<64x1024xbf16, #tpu.memory_space<vmem>>, vector<64x128xbf16>
    tpu.vector_store %arg6[%c0_191, %c128_192], %269 {strides = array<i32>} : memref<64x1024xbf16, #tpu.memory_space<vmem>>, vector<64x128xbf16>,
    %c0_193 = arith.constant 0 : index
    %c11 = arith.constant 11 : index
    %271 = vector.load %arg2[%c0_193, %c11] : memref<64x17xf32, #tpu.memory_space<vmem>>, vector<64x1xf32>
    %272 = vector.broadcast %271 : vector<64x1xf32> to vector<64x128xf32>
    %273 = arith.mulf %260, %272 : vector<64x128xf32>
    %274 = arith.truncf %273 : vector<64x128xf32> to vector<64x128xbf16>
    %c0_194 = arith.constant 0 : index
    %c256_195 = arith.constant 256 : index
    %275 = vector.load %arg6[%c0_194, %c256_195] : memref<64x1024xbf16, #tpu.memory_space<vmem>>, vector<64x128xbf16>
    tpu.vector_store %arg6[%c0_194, %c256_195], %274 {strides = array<i32>} : memref<64x1024xbf16, #tpu.memory_space<vmem>>, vector<64x128xbf16>,
    %c0_196 = arith.constant 0 : index
    %c12 = arith.constant 12 : index
    %276 = vector.load %arg2[%c0_196, %c12] : memref<64x17xf32, #tpu.memory_space<vmem>>, vector<64x1xf32>
    %277 = vector.broadcast %276 : vector<64x1xf32> to vector<64x128xf32>
    %278 = arith.mulf %260, %277 : vector<64x128xf32>
    %279 = arith.truncf %278 : vector<64x128xf32> to vector<64x128xbf16>
    %c0_197 = arith.constant 0 : index
    %c384_198 = arith.constant 384 : index
    %280 = vector.load %arg6[%c0_197, %c384_198] : memref<64x1024xbf16, #tpu.memory_space<vmem>>, vector<64x128xbf16>
    tpu.vector_store %arg6[%c0_197, %c384_198], %279 {strides = array<i32>} : memref<64x1024xbf16, #tpu.memory_space<vmem>>, vector<64x128xbf16>,
    %c0_199 = arith.constant 0 : index
    %c13 = arith.constant 13 : index
    %281 = vector.load %arg2[%c0_199, %c13] : memref<64x17xf32, #tpu.memory_space<vmem>>, vector<64x1xf32>
    %282 = vector.broadcast %281 : vector<64x1xf32> to vector<64x128xf32>
    %283 = arith.mulf %260, %282 : vector<64x128xf32>
    %284 = arith.truncf %283 : vector<64x128xf32> to vector<64x128xbf16>
    %c0_200 = arith.constant 0 : index
    %c512_201 = arith.constant 512 : index
    %285 = vector.load %arg6[%c0_200, %c512_201] : memref<64x1024xbf16, #tpu.memory_space<vmem>>, vector<64x128xbf16>
    tpu.vector_store %arg6[%c0_200, %c512_201], %284 {strides = array<i32>} : memref<64x1024xbf16, #tpu.memory_space<vmem>>, vector<64x128xbf16>,
    %c0_202 = arith.constant 0 : index
    %c14 = arith.constant 14 : index
    %286 = vector.load %arg2[%c0_202, %c14] : memref<64x17xf32, #tpu.memory_space<vmem>>, vector<64x1xf32>
    %287 = vector.broadcast %286 : vector<64x1xf32> to vector<64x128xf32>
    %288 = arith.mulf %260, %287 : vector<64x128xf32>
    %289 = arith.truncf %288 : vector<64x128xf32> to vector<64x128xbf16>
    %c0_203 = arith.constant 0 : index
    %c640 = arith.constant 640 : index
    %290 = vector.load %arg6[%c0_203, %c640] : memref<64x1024xbf16, #tpu.memory_space<vmem>>, vector<64x128xbf16>
    tpu.vector_store %arg6[%c0_203, %c640], %289 {strides = array<i32>} : memref<64x1024xbf16, #tpu.memory_space<vmem>>, vector<64x128xbf16>,
    %c0_204 = arith.constant 0 : index
    %c15_205 = arith.constant 15 : index
    %291 = vector.load %arg2[%c0_204, %c15_205] : memref<64x17xf32, #tpu.memory_space<vmem>>, vector<64x1xf32>
    %292 = vector.broadcast %291 : vector<64x1xf32> to vector<64x128xf32>
    %293 = arith.mulf %260, %292 : vector<64x128xf32>
    %294 = arith.truncf %293 : vector<64x128xf32> to vector<64x128xbf16>
    %c0_206 = arith.constant 0 : index
    %c768 = arith.constant 768 : index
    %295 = vector.load %arg6[%c0_206, %c768] : memref<64x1024xbf16, #tpu.memory_space<vmem>>, vector<64x128xbf16>
    tpu.vector_store %arg6[%c0_206, %c768], %294 {strides = array<i32>} : memref<64x1024xbf16, #tpu.memory_space<vmem>>, vector<64x128xbf16>,
    %c0_207 = arith.constant 0 : index
    %c16_208 = arith.constant 16 : index
    %296 = vector.load %arg2[%c0_207, %c16_208] : memref<64x17xf32, #tpu.memory_space<vmem>>, vector<64x1xf32>
    %297 = vector.broadcast %296 : vector<64x1xf32> to vector<64x128xf32>
    %298 = arith.mulf %260, %297 : vector<64x128xf32>
    %299 = arith.truncf %298 : vector<64x128xf32> to vector<64x128xbf16>
    %c0_209 = arith.constant 0 : index
    %c896 = arith.constant 896 : index
    %300 = vector.load %arg6[%c0_209, %c896] : memref<64x1024xbf16, #tpu.memory_space<vmem>>, vector<64x128xbf16>
    tpu.vector_store %arg6[%c0_209, %c896], %299 {strides = array<i32>} : memref<64x1024xbf16, #tpu.memory_space<vmem>>, vector<64x128xbf16>,
    %c960 = arith.constant 960 : index
    %c0_210 = arith.constant 0 : index
    %301 = vector.load %arg1[%c960, %c0_210] : memref<1984x128xbf16, #tpu.memory_space<vmem>>, vector<1024x32xbf16>
    %c0_211 = arith.constant 0 : index
    %c0_212 = arith.constant 0 : index
    %302 = vector.load %arg6[%c0_211, %c0_212] : memref<64x1024xbf16, #tpu.memory_space<vmem>>, vector<64x1024xbf16>
    %cst_213 = arith.constant dense<0.000000e+00> : vector<64x32xf32>
    %303 = tpu.matmul %302, %301, %cst_213 {dimension_numbers = #tpu.dot_dimension_numbers<[1], [0], [0], [1], [0, 0, 1, 1], [], []>} : vector<64x1024xbf16>, vector<1024x32xbf16>, vector<64x32xf32> -> vector<64x32xf32>
    %c16_214 = arith.constant 16 : index
    %c0_215 = arith.constant 0 : index
    %304 = vector.load %arg3[%c16_214, %c0_215] : memref<24x128xf32, #tpu.memory_space<vmem>>, vector<2x64xf32>
    %305 = arith.truncf %304 : vector<2x64xf32> to vector<2x64xbf16>
    %306 = arith.truncf %303 : vector<64x32xf32> to vector<64x32xbf16>
    %cst_216 = arith.constant dense<0.000000e+00> : vector<2x32xf32>
    %307 = tpu.matmul %305, %306, %cst_216 {dimension_numbers = #tpu.dot_dimension_numbers<[1], [0], [0], [1], [0, 0, 1, 1], [], []>} : vector<2x64xbf16>, vector<64x32xbf16>, vector<2x32xf32> -> vector<2x32xf32>
    %c6_217 = arith.constant 6 : index
    %c0_218 = arith.constant 0 : index
    %308 = vector.load %arg3[%c6_217, %c0_218] : memref<24x128xf32, #tpu.memory_space<vmem>>, vector<1x32xf32>
    %309 = vector.broadcast %308 : vector<1x32xf32> to vector<2x32xf32>
    %310 = arith.addf %307, %309 : vector<2x32xf32>
    %cst_219 = arith.constant dense<0.000000e+00> : vector<2xf32>
    %311 = vector.multi_reduction <add>, %310, %cst_219 [1] : vector<2x32xf32> to vector<2xf32>
    %312 = vector.shape_cast %311 : vector<2xf32> to vector<2x1xf32>
    %cst_220 = arith.constant 3.200000e+01 : f32
    %313 = vector.broadcast %cst_220 : f32 to vector<2x1xf32>
    %314 = arith.divf %312, %313 : vector<2x1xf32>
    %315 = vector.broadcast %314 : vector<2x1xf32> to vector<2x32xf32>
    %316 = arith.subf %310, %315 : vector<2x32xf32>
    %317 = vector.broadcast %314 : vector<2x1xf32> to vector<2x32xf32>
    %318 = arith.subf %310, %317 : vector<2x32xf32>
    %319 = arith.mulf %316, %318 : vector<2x32xf32>
    %cst_221 = arith.constant dense<0.000000e+00> : vector<2xf32>
    %320 = vector.multi_reduction <add>, %319, %cst_221 [1] : vector<2x32xf32> to vector<2xf32>
    %321 = vector.shape_cast %320 : vector<2xf32> to vector<2x1xf32>
    %cst_222 = arith.constant 3.200000e+01 : f32
    %322 = vector.broadcast %cst_222 : f32 to vector<2x1xf32>
    %323 = arith.divf %321, %322 : vector<2x1xf32>
    %324 = vector.broadcast %314 : vector<2x1xf32> to vector<2x32xf32>
    %325 = arith.subf %310, %324 : vector<2x32xf32>
    %cst_223 = arith.constant 9.99999974E-6 : f32
    %326 = vector.broadcast %cst_223 : f32 to vector<2x1xf32>
    %327 = arith.addf %323, %326 : vector<2x1xf32>
    %328 = math.rsqrt %327 : vector<2x1xf32>
    %329 = vector.broadcast %328 : vector<2x1xf32> to vector<2x32xf32>
    %330 = arith.mulf %325, %329 : vector<2x32xf32>
    %c7_224 = arith.constant 7 : index
    %c0_225 = arith.constant 0 : index
    %331 = vector.load %arg3[%c7_224, %c0_225] : memref<24x128xf32, #tpu.memory_space<vmem>>, vector<1x32xf32>
    %332 = vector.broadcast %331 : vector<1x32xf32> to vector<2x32xf32>
    %333 = arith.mulf %330, %332 : vector<2x32xf32>
    %c8_226 = arith.constant 8 : index
    %c0_227 = arith.constant 0 : index
    %334 = vector.load %arg3[%c8_226, %c0_227] : memref<24x128xf32, #tpu.memory_space<vmem>>, vector<1x32xf32>
    %335 = vector.broadcast %334 : vector<1x32xf32> to vector<2x32xf32>
    %336 = arith.addf %333, %335 : vector<2x32xf32>
    %cst_228 = arith.constant 0.000000e+00 : f32
    %337 = vector.broadcast %cst_228 : f32 to vector<2x32xf32>
    %338 = arith.maximumf %336, %337 : vector<2x32xf32>
    %c0_229 = arith.constant 0 : index
    %c0_230 = arith.constant 0 : index
    %339 = vector.load %arg4[%c0_229, %c0_230] : memref<2x32xf32, #tpu.memory_space<vmem>>, vector<2x32xf32>
    tpu.vector_store %arg4[%c0_229, %c0_230], %338 {strides = array<i32>} : memref<2x32xf32, #tpu.memory_space<vmem>>, vector<2x32xf32>,
    return
  }
}

</mosaic_0001>

<bundles_post_ra>
// kernel: forward.1
= control target key start
LH: loop header
LB: loop body
LE: loop exit
PB: predicated region body
PF: predicated region fallthrough
CT: control target
= control target key end

     0   :  { %9 = vsyncpa [#allocation5], 0  ;;  %s8162_s0 = inlined_call_operand.vmem [shape: f32[64,8], index: 0, kind: input, shape index: {}]   ;;  %s8163_s1 = inlined_call_operand.hbm [shape: bf16[1984,128], index: 1, kind: input, shape index: {}]   ;;  %s8164_s2 = inlined_call_operand.vmem [shape: f32[64,17], index: 2, kind: input, shape index: {}]   ;;  %s8165_s3 = inlined_call_operand.vmem [shape: f32[24,128], index: 3, kind: input, shape index: {}]   ;;  %s8166_s4 = inlined_call_operand.hbm [shape: f32[2,32], index: 4, kind: output, shape index: {}]  }
   0x1   :  { %10 = vsyncpa [#allocation6], 0  ;;  %s5850_s15 = smov [#allocation4]   ;;  %s5802_s19 = scalar_lea.hbm %s8163_s1, 15872 }
   0x2   :  { %s18_s16 = sshll.u32 %s5850_s15, 4  ;;  %p5803_p0 = scmp.ne.s32.totalorder %s8163_s1, %s5802_s19  ;;  %s19_s16 = int_to_ptr.vmem [resolvable:$true] %s18_s16 }
   0x3   :  { %p5806_p1 = scmp.lt.u32.totalorder %s5802_s19, %s8163_s1 }
   0x5   :  { %p5808_p2 = pnand %p5806_p1, %p5803_p0 }
   0x7   :  { %5811 = shalt.err (!%p5808_p2)
}
   0x8   :  { %s5812_s24 = scalar_lea.vmem %s19_s16, 15872  ;;  %p5817_p4 = scmp.lt.s32.totalorder %s19_s16, %s19_s16 }
   0x9   :  { %p5813_p3 = scmp.ne.s32.totalorder %s19_s16, %s5812_s24  ;;  %p5818_p5 = scmp.lt.s32.totalorder %s5812_s24, %s5812_s24 }
   0xb   :  { %p5819_p6 = por %p5818_p5, %p5817_p4 }
   0xd   :  { %p5820_p7 = pnand %p5819_p6, %p5813_p3 }
   0xf   :  { %5823 = shalt.err (!%p5820_p7)
}
  0x10   :  { %s5851_s25 = smov 64   ;;  %s5852_s26 = smov 4  }
  0x11   :  { %24 = dma.hbm_to_vmem [thread:$0]  %s8163_s1, 15872, %s19_s16, [#allocation5], %s5851_s25, %s5851_s25, %s5852_s26  }
  0x12   :  { %5846 = dma.done.wait [#allocation5], 15872  }
  0x13   :  { %5847 = vsyncadd [#allocation5], 4294951424  ;;  %v8183_v0 = vmov 1   ;;  %v5854_v1 = vmov 0.0   ;;  %v5925_v2 = vld [vmem:[%s8164_s2 + $0x10] sm:$0xff]  ;;  %v5930_v3 = vld [vmem:[%s8164_s2] sm:$0xff] }
  0x14   :  { %5514 = vset.pattern.permute.xlu1 %v8183_v0  ;;  %5513 = vset.pattern.permute.xlu0 %v8183_v0  ;;  %36 = vst [vmem:[#allocation2 + $0x18] sm:$0xff] %v5854_v1  ;;  %33 = vst [vmem:[#allocation2] sm:$0xff] %v5854_v1  ;;  %vm53_vm0 = vcmask 64512   ;;  %v5937_v4 = vld [vmem:[%s8164_s2 + $0x18] sm:$0xff]  ;;  %v5942_v5 = vld [vmem:[%s8164_s2 + $0x8] sm:$0xff]  ;;  %v8175_v10 = vmov 2  }
  0x15   :  { %34 = vst [vmem:[#allocation2 + $0x8] sm:$0xff] %v5854_v1  ;;  %35 = vst [vmem:[#allocation2 + $0x10] sm:$0xff] %v5854_v1  ;;  %162 = vperm.xlu1 %5514, %v5925_v2   ;;  %152 = vperm.xlu0 %5513, %v5930_v3   ;;  %v46_v6 = vld [vmem:[%s8162_s0 + $0x8] sm:$0xff]  ;;  %v47_v7 = vld [vmem:[%s8162_s0 + $0x10] sm:$0xff]  ;;  %v8181_v15 = vmov 3   ;;  %v8171_v20 = vmov 4  }
  0x16   :  { %37 = vst [vmem:[#allocation2 + $0x20] sm:$0xff] %v5854_v1  ;;  %38 = vst [vmem:[#allocation2 + $0x28] sm:$0xff] %v5854_v1  ;;  %v45_v8 = vld [vmem:[%s8162_s0] sm:$0xff]  ;;  %v5957_v9 = vld [vmem:[%s8164_s2 + $0x28] sm:$0xff]  ;;  %v8177_v21 = vmov 5   ;;  %v8169_v22 = vmov 6  }
  0x17   :  { %39 = vst [vmem:[#allocation2 + $0x30] sm:$0xff] %v5854_v1  ;;  %40 = vst [vmem:[#allocation2 + $0x38] sm:$0xff] %v5854_v1  ;;  %v5969_v11 = vld [vmem:[%s8164_s2 + $0x30] sm:$0xff]  ;;  %v49_v12 = vld [vmem:[%s8162_s0 + $0x20] sm:$0xff]  ;;  %v8179_v23 = vmov 7   ;;  %v8167_v24 = vmov 8  }
  0x18   :  { %41 = vst [vmem:[#allocation2 + $0x40] sm:$0xff] %v5854_v1  ;;  %42 = vst [vmem:[#allocation2 + $0x48] sm:$0xff] %v5854_v1  ;;  %v48_v13 = vld [vmem:[%s8162_s0 + $0x18] sm:$0xff]  ;;  %v50_v14 = vld [vmem:[%s8162_s0 + $0x28] sm:$0xff]  ;;  %v8173_v25 = vmov 0   ;;  %s5864_s8 = smov 16  }
  0x19   :  { %43 = vst [vmem:[#allocation2 + $0x50] sm:$0xff] %v5854_v1  ;;  %44 = vst [vmem:[#allocation2 + $0x58] sm:$0xff] %v5854_v1  ;;  %167 = vperm.xlu1 %5514, %v5937_v4   ;;  %157 = vperm.xlu0 %5513, %v5942_v5   ;;  %v5993_v16 = vld [vmem:[%s8164_s2 + $0x20] sm:$0xff]  ;;  %v6000_v17 = vld [vmem:[%s8164_s2 + $0x38] sm:$0xff]  ;;  %s5865_s9 = smov 24   ;;  %s5866_s10 = smov 32  }
  0x1a   :  { %55 = vst.msk [vmem:[#allocation2 + $0x18] sm:$0xff] %vm53_vm0, %v46_v6  ;;  %56 = vst.msk [vmem:[#allocation2 + $0x20] sm:$0xff] %vm53_vm0, %v47_v7  ;;  %v51_v18 = vld [vmem:[%s8162_s0 + $0x30] sm:$0xff]  ;;  %v52_v19 = vld [vmem:[%s8162_s0 + $0x38] sm:$0xff]  ;;  %s5863_s0 = smov 8   ;;  %s5867_s11 = smov 40  }
  0x1b   :  { %54 = vst.msk [vmem:[#allocation2 + $0x10] sm:$0xff] %vm53_vm0, %v45_v8  ;;  %58 = vst.msk [vmem:[#allocation2 + $0x30] sm:$0xff] %vm53_vm0, %v49_v12  ;;  %s5868_s12 = smov 48   ;;  %s5869_s13 = smov 56   ;;  %vm899_vm1 = vcmask 1043456   ;;  %vm218_vm2 = vcmask 130112  }
  0x1c   :  { %57 = vst.msk [vmem:[#allocation2 + $0x28] sm:$0xff] %vm53_vm0, %v48_v13  ;;  %59 = vst.msk [vmem:[#allocation2 + $0x38] sm:$0xff] %vm53_vm0, %v50_v14  ;;  %vm307_vm3 = vcmask 195712   ;;  %vm396_vm4 = vcmask 261312   ;;  %vm485_vm5 = vcmask 326912   ;;  %vm574_vm6 = vcmask 392512  }
  0x1d   :  { %5515 = vset.pattern.permute.xlu1 %v8175_v10  ;;  %177 = vperm.xlu0 %5513, %v5957_v9   ;;  %60 = vst.msk [vmem:[#allocation2 + $0x40] sm:$0xff] %vm53_vm0, %v51_v18  ;;  %61 = vst.msk [vmem:[#allocation2 + $0x48] sm:$0xff] %vm53_vm0, %v52_v19  ;;  %vm663_vm7 = vcmask 458112   ;;  %vm752_vm8 = vcmask 523712   ;;  %vm841_vm9 = vcmask 589312   ;;  %vm886_vm10 = vcmask 588800  }
  0x1e   :  { %246 = vperm.xlu1 %5515, %v5942_v5   ;;  %vm968_vm11 = vcmask 261120   ;;  %vm1238_vm12 = vcmask 523520   ;;  %vm1327_vm13 = vcmask 785920   ;;  %vm1416_vm14 = vcmask 1048320   ;;  %s5880_s28 = smov [#allocation7]  }
  0x1f   :  { %vm2127_vm15 = vcmask 523264   ;;  %s4961_s1 = sshll.u32 %s5880_s28, 4  ;;  %s4962_s1 = int_to_ptr.vmem [resolvable:$true] %s4961_s1 }
  0x20   :  { %s5824_s29 = scalar_lea.vmem %s4962_s1, 32  ;;  %p5829_p9 = scmp.lt.s32.totalorder %s4962_s1, %s4962_s1 }
  0x21   :  { %182 = vperm.xlu0 %5513, %v5969_v11   ;;  %v6116_v60 = vld [vmem:[#allocation2 + $0x18] sm:$0xff]  ;;  %v6128_v14 = vld [vmem:[#allocation2 + $0x20] sm:$0xff]  ;;  %p5825_p8 = scmp.ne.s32.totalorder %s4962_s1, %s5824_s29  ;;  %p5830_p10 = scmp.lt.s32.totalorder %s5824_s29, %s5824_s29 }
  0x22   :  { %251 = vperm.xlu1 %5515, %v5925_v2   ;;  %v135_v28 = vld [vmem:[#allocation2 + $0x10] sm:$0xff] }
  0x23   :  { %v224_v38 = vld [vmem:[#allocation2 + $0x11] sm:$0xff]  ;;  %v223_v39 = vld [vmem:[#allocation2 + $0x9] sm:$0xff]  ;;  %p5831_p11 = por %p5830_p10, %p5829_p9 }
  0x24   :  { %v6101_v51 = vld [vmem:[#allocation2 + $0xf] sm:$0xff]  ;;  %v6103_v52 = vld [vmem:[#allocation2 + $0x17] sm:$0xff] }
  0x25   :  { %5524 = vset.pattern.permute.xlu0 %v8175_v10  ;;  %p5832_p12 = pnand %p5831_p11, %p5825_p8 }
  0x26   :  { %5516 = vset.pattern.permute.xlu1 %v8181_v15  ;;  %241 = vperm.xlu0 %5524, %v5930_v3  }
  0x27   :  { %330 = vperm.xlu1 %5516, %v5930_v3  }
  0x2a   :  { %256 = vperm.xlu0 %5524, %v5937_v4  }
  0x2b   :  { %340 = vperm.xlu1 %5516, %v5925_v2  }
  0x2e   :  { %261 = vperm.xlu0 %5524, %v5993_v16  }
  0x2f   :  { %345 = vperm.xlu1 %5516, %v5937_v4  }
  0x32   :  { %276 = vperm.xlu0 %5524, %v6000_v17  }
  0x33   :  { %5517 = vset.pattern.permute.xlu1 %v8171_v20 }
  0x34   :  { %424 = vperm.xlu1 %5517, %v5942_v5  }
  0x36   :  { %5527 = vset.pattern.permute.xlu0 %v8181_v15 }
  0x37   :  { %335 = vperm.xlu0 %5527, %v5942_v5  }
  0x38   :  { %429 = vperm.xlu1 %5517, %v5925_v2  }
  0x3b   :  { %355 = vperm.xlu0 %5527, %v5957_v9  }
  0x3c   :  { %5518 = vset.pattern.permute.xlu1 %v8177_v21 }
  0x3d   :  { %508 = vperm.xlu1 %5518, %v5930_v3  }
  0x3f   :  { %5529 = vset.pattern.permute.xlu0 %v8171_v20 }
  0x40   :  { %419 = vperm.xlu0 %5529, %v5930_v3  }
  0x41   :  { %518 = vperm.xlu1 %5518, %v5925_v2  }
  0x44   :  { %434 = vperm.xlu0 %5529, %v5937_v4  }
  0x45   :  { %523 = vperm.xlu1 %5518, %v5937_v4  }
  0x48   :  { %439 = vperm.xlu0 %5529, %v5993_v16  }
  0x49   :  { %5519 = vset.pattern.permute.xlu1 %v8169_v22 }
  0x4a   :  { %602 = vperm.xlu1 %5519, %v5942_v5  }
  0x4c   :  { %454 = vperm.xlu0 %5529, %v6000_v17  }
  0x4e   :  { %607 = vperm.xlu1 %5519, %v5925_v2  }
  0x50   :  { %5531 = vset.pattern.permute.xlu0 %v8177_v21 }
  0x51   :  { %513 = vperm.xlu0 %5531, %v5942_v5  }
  0x52   :  { %5520 = vset.pattern.permute.xlu1 %v8179_v23 }
  0x53   :  { %686 = vperm.xlu1 %5520, %v5930_v3  }
  0x55   :  { %533 = vperm.xlu0 %5531, %v5957_v9  }
  0x57   :  { %696 = vperm.xlu1 %5520, %v5925_v2  }
  0x59   :  { %5533 = vset.pattern.permute.xlu0 %v8169_v22 }
  0x5a   :  { %597 = vperm.xlu0 %5533, %v5930_v3  }
  0x5b   :  { %701 = vperm.xlu1 %5520, %v5937_v4  }
  0x5e   :  { %612 = vperm.xlu0 %5533, %v5937_v4  }
  0x5f   :  { %5521 = vset.pattern.permute.xlu1 %v8167_v24 }
  0x60   :  { %780 = vperm.xlu1 %5521, %v5942_v5  }
  0x62   :  { %617 = vperm.xlu0 %5533, %v5993_v16  }
  0x64   :  { %5522 = vset.pattern.permute.xlu1 %v8183_v0 }
  0x65   :  { %172 = vperm.xlu1 %5522, %v5993_v16  }
  0x66   :  { %632 = vperm.xlu0 %5533, %v6000_v17  }
  0x69   :  { %5523 = vset.pattern.permute.xlu1 %v8167_v24 }
  0x6a   :  { %785 = vperm.xlu1 %5523, %v5925_v2   ;;  %5535 = vset.pattern.permute.xlu0 %v8179_v23 }
  0x6b   :  { %691 = vperm.xlu0 %5535, %v5942_v5  }
  0x6e   :  { %790 = vperm.xlu1 %5523, %v5937_v4  }
  0x6f   :  { %711 = vperm.xlu0 %5535, %v5957_v9  }
  0x72   :  { %5525 = vset.pattern.permute.xlu1 %v8183_v0 }
  0x73   :  { %187 = vperm.xlu1 %5525, %v6000_v17   ;;  %5537 = vset.pattern.permute.xlu0 %v8167_v24 }
  0x74   :  { %775 = vperm.xlu0 %5537, %v5930_v3  }
  0x77   :  { %5526 = vset.pattern.permute.xlu1 %v8175_v10 }
  0x78   :  { %266 = vperm.xlu1 %5526, %v5957_v9   ;;  %795 = vperm.xlu0 %5537, %v5993_v16  }
  0x7c   :  { %271 = vperm.xlu1 %5526, %v5969_v11   ;;  %810 = vperm.xlu0 %5537, %v6000_v17  }
  0x80   :  { %5528 = vset.pattern.permute.xlu1 %v8181_v15  ;;  %5540 = vset.pattern.permute.xlu0 %v8173_v25 }
  0x81   :  { %350 = vperm.xlu1 %5528, %v5993_v16   ;;  %85 = vperm.xlu0 %5540, %v5942_v5  }
  0x85   :  { %360 = vperm.xlu1 %5528, %v5969_v11   ;;  %100 = vperm.xlu0 %5540, %v5993_v16  }
  0x89   :  { %365 = vperm.xlu1 %5528, %v6000_v17   ;;  %110 = vperm.xlu0 %5540, %v5969_v11  }
  0x8d   :  { %5530 = vset.pattern.permute.xlu1 %v8171_v20  ;;  %5541 = vset.pattern.permute.xlu0 %v8177_v21 }
  0x8e   :  { %444 = vperm.xlu1 %5530, %v5957_v9  }
  0x92   :  { %449 = vperm.xlu1 %5530, %v5969_v11  }
  0x94   :  { %v6073_v26 = vpop.permute.xlu1 %162  ;;  %v153_v27 = vpop.permute.xlu0 %152 }
  0x95   :  { %v190_v29 = vmul.f32 0.0, %v153_v27  ;;  %v6136_v27 = vld [vmem:[#allocation2 + $0x21] sm:$0xff] }
  0x96   :  { %5532 = vset.pattern.permute.xlu1 %v8177_v21 }
  0x97   :  { %528 = vperm.xlu1 %5532, %v5993_v16  }
  0x98   :  { %v6077_v30 = vpop.permute.xlu1 %167  ;;  %v158_v31 = vpop.permute.xlu0 %157 }
  0x99   :  { %v191_v32 = vmul.f32 %v158_v31, %v135_v28  ;;  %v193_v18 = vmul.f32 %v6077_v30, %v6128_v14  ;;  %v6145_v30 = vld [vmem:[#allocation2 + $0x27] sm:$0xff] }
  0x9b   :  { %v198_v33 = vpack.c.bf16 %v191_v32, %v190_v29  ;;  %538 = vperm.xlu1 %5532, %v5969_v11  }
  0x9c   :  { %v6080_v34 = vpop.permute.xlu0 %177 }
  0x9d   :  { %v247_v35 = vpop.permute.xlu1 %246  ;;  %206 = vrot.lane.b32.xlu0 %v198_v33, %s5863_s0 }
  0x9e   :  { %v280_v41 = vmul.f32 %v247_v35, %v224_v38 }
  0x9f   :  { %543 = vperm.xlu1 %5532, %v6000_v17  }
  0xa0   :  { %v6084_v36 = vpop.permute.xlu0 %182 }
  0xa1   :  { %v6086_v37 = vpop.permute.xlu1 %251 }
  0xa3   :  { %5534 = vset.pattern.permute.xlu1 %v8169_v22 }
  0xa4   :  { %622 = vperm.xlu1 %5534, %v5957_v9  }
  0xa5   :  { %v242_v40 = vpop.permute.xlu0 %241 }
  0xa6   :  { %v279_v42 = vmul.f32 %v242_v40, %v223_v39  ;;  %v331_v43 = vpop.permute.xlu1 %330  ;;  %v404_v40 = vld [vmem:[#allocation2 + $0x28] sm:$0xff] }
  0xa7   :  { %v368_v54 = vmul.f32 %v331_v43, %v6101_v51 }
  0xa8   :  { %v287_v44 = vpack.c.bf16 %v280_v41, %v279_v42  ;;  %627 = vperm.xlu1 %5534, %v5969_v11  }
  0xa9   :  { %v257_v45 = vpop.permute.xlu0 %256 }
  0xaa   :  { %v6091_v46 = vpop.permute.xlu1 %340  ;;  %295 = vrot.lane.b32.xlu0 %v287_v44, %s5864_s8  ;;  %v282_v32 = vmul.f32 %v257_v45, %v6136_v27 }
  0xac   :  { %5536 = vset.pattern.permute.xlu1 %v8179_v23 }
  0xad   :  { %706 = vperm.xlu1 %5536, %v5993_v16   ;;  %v6096_v47 = vpop.permute.xlu0 %261  ;;  %v6131_v16 = vld [vmem:[#allocation2 + $0x19] sm:$0xff] }
  0xae   :  { %v346_v48 = vpop.permute.xlu1 %345  ;;  %v281_v35 = vmul.f32 %v6086_v37, %v6131_v16 }
  0xb1   :  { %716 = vperm.xlu1 %5536, %v5969_v11   ;;  %v6099_v49 = vpop.permute.xlu0 %276 }
  0xb3   :  { %v425_v50 = vpop.permute.xlu1 %424 }
  0xb4   :  { %v458_v62 = vmul.f32 %v425_v50, %v6116_v60 }
  0xb5   :  { %721 = vperm.xlu1 %5536, %v6000_v17  }
  0xb6   :  { %v336_v53 = vpop.permute.xlu0 %335 }
  0xb7   :  { %v369_v55 = vmul.f32 %v336_v53, %v6103_v52  ;;  %v6108_v56 = vpop.permute.xlu1 %429 }
  0xb9   :  { %v376_v57 = vpack.c.bf16 %v369_v55, %v368_v54  ;;  %5538 = vset.pattern.permute.xlu1 %v8167_v24  ;;  %v6159_v54 = vld [vmem:[#allocation2 + $0x29] sm:$0xff] }
  0xba   :  { %800 = vperm.xlu1 %5538, %v5957_v9   ;;  %v6112_v58 = vpop.permute.xlu0 %355 }
  0xbb   :  { %384 = vrot.lane.b32.xlu0 %v376_v57, %s5865_s9 }
  0xbc   :  { %v509_v59 = vpop.permute.xlu1 %508 }
  0xbd   :  { %v546_v19 = vmul.f32 %v509_v59, %v224_v38  ;;  %v371_v38 = vmul.f32 %v346_v48, %v6145_v30  ;;  %v459_v48 = vmul.f32 %v6108_v56, %v6128_v14 }
  0xbe   :  { %805 = vperm.xlu1 %5538, %v5969_v11  }
  0xbf   :  { %v420_v61 = vpop.permute.xlu0 %419 }
  0xc0   :  { %v457_v63 = vmul.f32 %v420_v61, %v135_v28  ;;  %v519_v1 = vpop.permute.xlu1 %518  ;;  %v6168_v61 = vld [vmem:[#allocation2 + $0x2f] sm:$0xff] }
  0xc2   :  { %v465_v5 = vpack.c.bf16 %v458_v62, %v457_v63  ;;  %5539 = vset.pattern.permute.xlu1 %v8173_v25  ;;  %v5667_v62 = vld [vmem:[#allocation4] sm:$0xff]   ;;  %v548_v63 = vmul.f32 %v519_v1, %v6136_v27 }
  0xc3   :  { %v435_v6 = vpop.permute.xlu0 %434  ;;  %80 = vperm.xlu1 %5539, %v5930_v3   ;;  %5423 = vmatprep.subr.bf16.mxu0 %v5667_v62 }
  0xc4   :  { %v524_v7 = vpop.permute.xlu1 %523  ;;  %473 = vrot.lane.b32.xlu0 %v465_v5, %s5866_s10  ;;  %v460_v50 = vmul.f32 %v435_v6, %v404_v40  ;;  %5424 = vmatpush3.bf16.msra.mxu0 %v5667_v62 }
  0xc6   :  { %v466_v57 = vpack.c.bf16 %v460_v50, %v459_v48 }
  0xc7   :  { %90 = vperm.xlu1 %5539, %v5925_v2   ;;  %v6123_v8 = vpop.permute.xlu0 %439 }
  0xc9   :  { %v603_v11 = vpop.permute.xlu1 %602 }
  0xcb   :  { %95 = vperm.xlu1 %5539, %v5937_v4   ;;  %v6126_v12 = vpop.permute.xlu0 %454  ;;  %v192_v4 = vmul.f32 %v6073_v26, %v6116_v60  ;;  %v6150_v26 = vld [vmem:[#allocation2 + $0x1f] sm:$0xff] }
  0xcc   :  { %v636_v41 = vmul.f32 %v603_v11, %v6150_v26  ;;  %v370_v44 = vmul.f32 %v6091_v46, %v6150_v26  ;;  %v549_v46 = vmul.f32 %v524_v7, %v6159_v54 }
  0xcd   :  { %v608_v13 = vpop.permute.xlu1 %607 }
  0xce   :  { %v377_v45 = vpack.c.bf16 %v371_v38, %v370_v44  ;;  %v555_v6 = vpack.c.bf16 %v549_v46, %v548_v63  ;;  %v637_v7 = vmul.f32 %v608_v13, %v6145_v30 }
  0xcf   :  { %105 = vperm.xlu1 %5539, %v5957_v9   ;;  %v199_v9 = vpack.c.bf16 %v193_v18, %v192_v4  ;;  %v6177_v18 = vld [vmem:[#allocation2 + $0x30] sm:$0xff] }
  0xd0   :  { %v514_v3 = vpop.permute.xlu0 %513 }
  0xd1   :  { %v547_v2 = vmul.f32 %v514_v3, %v6131_v16  ;;  %v5668_v3 = vld [vmem:[#allocation4 + $0x8] sm:$0xff]  }
  0xd2   :  { %v687_v28 = vpop.permute.xlu1 %686  ;;  %5425 = vmatprep.subr.bf16.mxu0 %v5668_v3 }
  0xd3   :  { %v554_v29 = vpack.c.bf16 %v547_v2, %v546_v19  ;;  %115 = vperm.xlu1 %5539, %v6000_v17   ;;  %v288_v17 = vpack.c.bf16 %v282_v32, %v281_v35  ;;  %5426 = vmatpush3.bf16.msra.mxu0 %v5668_v3 }
  0xd4   :  { %v6141_v31 = vpop.permute.xlu0 %533 }
  0xd5   :  { %562 = vrot.lane.b32.xlu0 %v554_v29, %s5867_s11  ;;  %v5669_v29 = vld [vmem:[#allocation4 + $0x10] sm:$0xff]  }
  0xd6   :  { %v697_v33 = vpop.permute.xlu1 %696  ;;  %5427 = vmatprep.subr.bf16.mxu0 %v5669_v29 }
  0xd7   :  { %208 = vrot.lane.b32.xlu1 %v199_v9, %s5863_s0  ;;  %v724_v9 = vmul.f32 %v687_v28, %v6116_v60  ;;  %v726_v32 = vmul.f32 %v697_v33, %v404_v40  ;;  %5428 = vmatpush3.bf16.msra.mxu0 %v5669_v29  ;;  %v6189_v60 = vld [vmem:[#allocation2 + $0x38] sm:$0xff] }
  0xd8   :  { %5542 = vset.pattern.permute.xlu1 %v8177_v21  ;;  %v196_v44 = vmul.f32 %v6084_v36, %v6189_v60 }
  0xd9   :  { %v598_v39 = vpop.permute.xlu0 %597 }
  0xda   :  { %v635_v42 = vmul.f32 %v598_v39, %v6103_v52  ;;  %v702_v43 = vpop.permute.xlu1 %701 }
  0xdb   :  { %297 = vrot.lane.b32.xlu1 %v288_v17, %s5864_s8  ;;  %v727_v1 = vmul.f32 %v702_v43, %v6177_v18  ;;  %v195_v43 = vmul.f32 %v6080_v34, %v6177_v18 }
  0xdc   :  { %v643_v37 = vpack.c.bf16 %v636_v41, %v635_v42  ;;  %v5670_v42 = vld [vmem:[#allocation4 + $0x18] sm:$0xff]  }
  0xdd   :  { %v613_v53 = vpop.permute.xlu0 %612  ;;  %v733_v13 = vpack.c.bf16 %v727_v1, %v726_v32  ;;  %5429 = vmatprep.subr.bf16.mxu0 %v5670_v42  ;;  %v6212_v1 = vld [vmem:[#allocation2 + $0x37] sm:$0xff]  ;;  %v319_v32 = vld [vmem:[#allocation2 + $0x47] sm:$0xff] }
  0xde   :  { %651 = vrot.lane.b32.xlu0 %v643_v37, %s5868_s12  ;;  %v638_v56 = vmul.f32 %v613_v53, %v6168_v61  ;;  %5430 = vmatpush3.bf16.msra.mxu0 %v5670_v42  ;;  %v760_v37 = vld [vmem:[#allocation2 + $0x31] sm:$0xff]  ;;  %v373_v29 = vmul.f32 %v6112_v58, %v6212_v1  ;;  %v461_v58 = vmul.f32 %v6123_v8, %v6177_v18 }
  0xdf   :  { %v781_v55 = vpop.permute.xlu1 %780  ;;  %386 = vrot.lane.b32.xlu1 %v377_v45, %s5865_s9 }
  0xe0   :  { %v644_v19 = vpack.c.bf16 %v638_v56, %v637_v7  ;;  %v814_v50 = vmul.f32 %v781_v55, %v6136_v27  ;;  %v6204_v27 = vld [vmem:[#allocation2 + $0x39] sm:$0xff]  ;;  %v283_v55 = vmul.f32 %v6096_v47, %v6159_v54 }
  0xe1   :  { %v6166_v59 = vpop.permute.xlu0 %617 }
  0xe3   :  { %475 = vrot.lane.b32.xlu1 %v466_v57, %s5866_s10 }
  0xe4   :  { %v173_v5 = vpop.permute.xlu1 %172 }
  0xe5   :  { %v6173_v11 = vpop.permute.xlu0 %632  ;;  %v194_v17 = vmul.f32 %v404_v40, %v173_v5  ;;  %v5671_v40 = vld [vmem:[#allocation4 + $0x20] ss:$0 sps:$4 sm:$0xff]   ;;  %v6202_v5 = vld [vmem:[#allocation2 + $0x41] sm:$0xff] }
  0xe6   :  { %5481 = vmatprep.subr.msk.bf16.mxu0 %vm899_vm1, %v5671_v40  ;;  %v901_v48 = vsel %vm899_vm1, %v5671_v40, 0  ;;  %v286_v3 = vmul.f32 %v6099_v49, %v6202_v5  ;;  %vm5879_vm1 = vmmov 0  }
  0xe7   :  { %564 = vrot.lane.b32.xlu1 %v555_v6, %s5867_s11  ;;  %v200_v28 = vpack.c.bf16 %v195_v43, %v194_v17  ;;  %5432 = vmatpush3.bf16.msra.mxu0 %v901_v48  ;;  %v408_v43 = vld [vmem:[#allocation2 + $0x48] sm:$0xff] }
  0xe8   :  { %v464_v40 = vmul.f32 %v6126_v12, %v408_v43 }
  0xe9   :  { %v786_v2 = vpop.permute.xlu1 %785 }
  0xea   :  { %v692_v4 = vpop.permute.xlu0 %691  ;;  %v815_v36 = vmul.f32 %v786_v2, %v6159_v54 }
  0xeb   :  { %v725_v35 = vmul.f32 %v692_v4, %v6128_v14  ;;  %653 = vrot.lane.b32.xlu1 %v644_v19, %s5868_s12  ;;  %v6191_v14 = vld [vmem:[#allocation2 + $0x40] sm:$0xff] }
  0xed   :  { %v732_v38 = vpack.c.bf16 %v725_v35, %v724_v9  ;;  %v791_v39 = vpop.permute.xlu1 %790  ;;  %v6220_v9 = vld [vmem:[#allocation2 + $0x3f] sm:$0xff] }
  0xee   :  { %v6183_v41 = vpop.permute.xlu0 %711  ;;  %v816_v46 = vmul.f32 %v791_v39, %v760_v37 }
  0xef   :  { %742 = vrot.lane.b32.xlu1 %v733_v13, %s5869_s13  ;;  %740 = vrot.lane.b32.xlu0 %v732_v38, %s5869_s13 }
  0xf0   :  { %v822_v56 = vpack.c.bf16 %v816_v46, %v815_v36 }
  0xf2   :  { %v188_v33 = vpop.permute.xlu1 %187 }
  0xf3   :  { %v197_v34 = vmul.f32 %v6191_v14, %v188_v33  ;;  %v776_v45 = vpop.permute.xlu0 %775  ;;  %210 = vrot.lane.b32.xlu1 %v200_v28, %s5863_s0 }
  0xf4   :  { %v813_v53 = vmul.f32 %v776_v45, %v6131_v16 }
  0xf5   :  { %v201_v57 = vpack.c.bf16 %v197_v34, %v196_v44 }
  0xf6   :  { %v821_v62 = vpack.c.bf16 %v814_v50, %v813_v53  ;;  %v551_v50 = vmul.f32 %v6141_v31, %v6204_v27 }
  0xf7   :  { %v267_v63 = vpop.permute.xlu1 %266  ;;  %212 = vrot.lane.b32.xlu1 %v201_v57, %s5863_s0  ;;  %v796_v48 = vpop.permute.xlu0 %795  ;;  %v497_v57 = vld [vmem:[#allocation2 + $0x49] sm:$0xff]  ;;  %s5870_s0 = smov 96  }
  0xf8   :  { %829 = vrot.lane.b32.xlu0 %v821_v62, %s5851_s25  ;;  %v284_v6 = vmul.f32 %v760_v37, %v267_v63 }
  0xfa   :  { %v289_v19 = vpack.c.bf16 %v284_v6, %v283_v55 }
  0xfb   :  { %v272_v16 = vpop.permute.xlu1 %271  ;;  %v811_v63 = vpop.permute.xlu0 %810 }
  0xfc   :  { %v285_v7 = vmul.f32 %v6204_v27, %v272_v16  ;;  %831 = vrot.lane.b32.xlu0 %v822_v56, %s5851_s25  ;;  %v639_v56 = vmul.f32 %v6166_v59, %v6212_v1 }
  0xfe   :  { %v290_v2 = vpack.c.bf16 %v286_v3, %v285_v7 }
 0x100   :  { %v351_v4 = vpop.permute.xlu1 %350  ;;  %301 = vrot.lane.b32.xlu1 %v290_v2, %s5864_s8  ;;  %299 = vrot.lane.b32.xlu0 %v289_v19, %s5864_s8  ;;  %v86_v55 = vpop.permute.xlu0 %85 }
 0x101   :  { %v372_v47 = vmul.f32 %v6168_v61, %v351_v4 }
 0x103   :  { %v378_v54 = vpack.c.bf16 %v373_v29, %v372_v47  ;;  %v729_v29 = vmul.f32 %v6183_v41, %v6191_v14  ;;  %v817_v41 = vmul.f32 %v796_v48, %v6204_v27 }
 0x104   :  { %v361_v49 = vpop.permute.xlu1 %360  ;;  %v101_v47 = vpop.permute.xlu0 %100 }
 0x105   :  { %388 = vrot.lane.b32.xlu0 %v378_v54, %s5865_s9  ;;  %v374_v13 = vmul.f32 %v361_v49, %v6220_v9 }
 0x108   :  { %v366_v35 = vpop.permute.xlu1 %365 }
 0x109   :  { %v375_v17 = vmul.f32 %v366_v35, %v319_v32  ;;  %v6246_v35 = vpop.permute.xlu0 %110 }
 0x10b   :  { %v379_v38 = vpack.c.bf16 %v375_v17, %v374_v13  ;;  %v6248_v13 = vld [vmem:[#allocation2] sm:$0xff] }
 0x10d   :  { %v445_v39 = vpop.permute.xlu1 %444  ;;  %390 = vrot.lane.b32.xlu1 %v379_v38, %s5865_s9 }
 0x10e   :  { %v462_v42 = vmul.f32 %v445_v39, %v6189_v60 }
 0x10f   :  { %v207_v39 = vpop.permute.xlu0 %206 }
 0x110   :  { %v467_v28 = vpack.c.bf16 %v462_v42, %v461_v58 }
 0x111   :  { %v450_v33 = vpop.permute.xlu1 %449 }
 0x112   :  { %v463_v44 = vmul.f32 %v6191_v14, %v450_v33  ;;  %477 = vrot.lane.b32.xlu0 %v467_v28, %s5866_s10  ;;  %v764_v14 = vld [vmem:[#allocation2 + $0x51] sm:$0xff] }
 0x113   :  { %v820_v33 = vmul.f32 %v811_v63, %v764_v14 }
 0x114   :  { %v468_v34 = vpack.c.bf16 %v464_v40, %v463_v44 }
 0x116   :  { %v529_v45 = vpop.permute.xlu1 %528  ;;  %479 = vrot.lane.b32.xlu1 %v468_v34, %s5866_s10  ;;  %v62_v34 = vld [vmem:[#allocation2 + $0x7] sm:$0xff] }
 0x117   :  { %v550_v53 = vmul.f32 %v760_v37, %v529_v45  ;;  %v586_v37 = vld [vmem:[#allocation2 + $0x4f] sm:$0xff]  ;;  %v119_v45 = vmul.f32 %v6101_v51, %v86_v55 }
 0x118   :  { %v642_v7 = vmul.f32 %v6173_v11, %v586_v37  ;;  %v6271_v51 = vld [vmem:[%s8164_s2 + $0x10] sm:$0xff] }
 0x119   :  { %v556_v8 = vpack.c.bf16 %v551_v50, %v550_v53  ;;  %v6259_v50 = vld [vmem:[%s8164_s2] sm:$0xff] }
 0x11a   :  { %v539_v18 = vpop.permute.xlu1 %538 }
 0x11b   :  { %566 = vrot.lane.b32.xlu0 %v556_v8, %s5867_s11  ;;  %v552_v12 = vmul.f32 %v539_v18, %v6202_v5  ;;  %v6266_v8 = vld [vmem:[%s8164_s2 + $0x8] sm:$0xff] }
 0x11e   :  { %v544_v46 = vpop.permute.xlu1 %543 }
 0x11f   :  { %v553_v62 = vmul.f32 %v544_v46, %v497_v57 }
 0x121   :  { %v557_v36 = vpack.c.bf16 %v553_v62, %v552_v12  ;;  %v6282_v12 = vld [vmem:[%s8164_s2 + $0x20] sm:$0xff] }
 0x123   :  { %v623_v6 = vpop.permute.xlu1 %622  ;;  %568 = vrot.lane.b32.xlu1 %v557_v36, %s5867_s11  ;;  %v122_v36 = vmul.f32 %v6145_v30, %v101_v47  ;;  %v124_v30 = vmul.f32 %v6212_v1, %v6246_v35  ;;  %v6313_v1 = vld [vmem:[%s8164_s2 + $0x18] sm:$0xff] }
 0x124   :  { %v640_v31 = vmul.f32 %v623_v6, %v6220_v9 }
 0x126   :  { %v645_v16 = vpack.c.bf16 %v640_v31, %v639_v56  ;;  %v6295_v56 = vld [vmem:[%s8164_s2 + $0x30] sm:$0xff] }
 0x127   :  { %v628_v3 = vpop.permute.xlu1 %627 }
 0x128   :  { %v641_v19 = vmul.f32 %v628_v3, %v319_v32  ;;  %655 = vrot.lane.b32.xlu0 %v645_v16, %s5868_s12 }
 0x12a   :  { %v646_v2 = vpack.c.bf16 %v642_v7, %v641_v19  ;;  %v6323_v19 = vld [vmem:[%s8164_s2 + $0x28] sm:$0xff] }
 0x12c   :  { %v707_v4 = vpop.permute.xlu1 %706  ;;  %657 = vrot.lane.b32.xlu1 %v646_v2, %s5868_s12 }
 0x12d   :  { %v728_v59 = vmul.f32 %v707_v4, %v6189_v60  ;;  %v6332_v4 = vld [vmem:[%s8164_s2 + $0x38] sm:$0xff] }
 0x12f   :  { %v734_v54 = vpack.c.bf16 %v729_v29, %v728_v59 }
 0x130   :  { %v717_v49 = vpop.permute.xlu1 %716 }
 0x131   :  { %744 = vrot.lane.b32.xlu0 %v734_v54, %s5869_s13  ;;  %v730_v32 = vmul.f32 %v717_v49, %v408_v43  ;;  %v296_v43 = vpop.permute.xlu0 %295 }
 0x134   :  { %v722_v11 = vpop.permute.xlu1 %721 }
 0x135   :  { %v731_v17 = vmul.f32 %v6248_v13, %v722_v11 }
 0x137   :  { %v735_v38 = vpack.c.bf16 %v731_v17, %v730_v32 }
 0x139   :  { %v801_v58 = vpop.permute.xlu1 %800  ;;  %746 = vrot.lane.b32.xlu1 %v735_v38, %s5869_s13 }
 0x13a   :  { %v818_v60 = vmul.f32 %v801_v58, %v6202_v5  ;;  %v385_v5 = vpop.permute.xlu0 %384 }
 0x13c   :  { %v823_v42 = vpack.c.bf16 %v818_v60, %v817_v41 }
 0x13d   :  { %v806_v28 = vpop.permute.xlu1 %805 }
 0x13e   :  { %v819_v40 = vmul.f32 %v806_v28, %v497_v57  ;;  %833 = vrot.lane.b32.xlu0 %v823_v42, %s5851_s25  ;;  %v474_v57 = vpop.permute.xlu0 %473 }
 0x140   :  { %v824_v44 = vpack.c.bf16 %v820_v33, %v819_v40 }
 0x142   :  { %v81_v27 = vpop.permute.xlu1 %80  ;;  %835 = vrot.lane.b32.xlu1 %v824_v44, %s5851_s25  ;;  %1511 = vperm.xlu0 %5541, %v6259_v50  }
 0x143   :  { %v118_v53 = vmul.f32 %v81_v27, %v62_v34 }
 0x145   :  { %v126_v18 = vpack.c.bf16 %v119_v45, %v118_v53 }
 0x146   :  { %v91_v48 = vpop.permute.xlu1 %90  ;;  %1516 = vperm.xlu1 %5542, %v6266_v8   ;;  %1521 = vperm.xlu0 %5541, %v6271_v51  }
 0x147   :  { %130 = vst.msk [vmem:[#allocation3] sm:$0xff] %vm53_vm0, %v126_v18  ;;  %v120_v46 = vmul.f32 %v6103_v52, %v91_v48  ;;  %v563_v63 = vpop.permute.xlu0 %562 }
 0x148   :  { %219 = vst.msk [vmem:[#allocation3] sm:$0xff] %vm218_vm2, %v207_v39 }
 0x149   :  { %308 = vst.msk [vmem:[#allocation3] sm:$0xff] %vm307_vm3, %v296_v43 }
 0x14a   :  { %397 = vst.msk [vmem:[#allocation3] sm:$0xff] %vm396_vm4, %v385_v5  ;;  %v96_v62 = vpop.permute.xlu1 %95  ;;  %5543 = vset.pattern.permute.xlu1 %v8183_v0  ;;  %1531 = vperm.xlu0 %5541, %v6282_v12  }
 0x14b   :  { %486 = vst.msk [vmem:[#allocation3] sm:$0xff] %vm485_vm5, %v474_v57  ;;  %v121_v52 = vmul.f32 %v6150_v26, %v96_v62  ;;  %1172 = vperm.xlu1 %5543, %v6259_v50  }
 0x14c   :  { %575 = vst.msk [vmem:[#allocation3] sm:$0xff] %vm574_vm6, %v563_v63 }
 0x14d   :  { %v127_v6 = vpack.c.bf16 %v121_v52, %v120_v46 }
 0x14e   :  { %v106_v31 = vpop.permute.xlu1 %105  ;;  %1541 = vperm.xlu0 %5541, %v6295_v56  }
 0x14f   :  { %131 = vst.msk [vmem:[#allocation3 + $0x40] sm:$0xff] %vm53_vm0, %v127_v6  ;;  %v123_v26 = vmul.f32 %v6168_v61, %v106_v31  ;;  %5544 = vset.pattern.permute.xlu1 %v8169_v22 }
 0x150   :  { %v652_v37 = vpop.permute.xlu0 %651  ;;  %1599 = vperm.xlu1 %5544, %v6259_v50  }
 0x151   :  { %v128_v16 = vpack.c.bf16 %v123_v26, %v122_v36  ;;  %664 = vst.msk [vmem:[#allocation3] sm:$0xff] %vm663_vm7, %v652_v37 }
 0x152   :  { %v116_v55 = vpop.permute.xlu1 %115  ;;  %5560 = vset.pattern.permute.xlu0 %v8183_v0 }
 0x153   :  { %132 = vst.msk [vmem:[#allocation3 + $0x80] sm:$0xff] %vm53_vm0, %v128_v16  ;;  %v125_v3 = vmul.f32 %v6220_v9, %v116_v55  ;;  %1177 = vperm.xlu0 %5560, %v6266_v8  }
 0x154   :  { %1604 = vperm.xlu1 %5544, %v6266_v8  }
 0x155   :  { %v129_v61 = vpack.c.bf16 %v125_v3, %v124_v30 }
 0x156   :  { %v209_v7 = vpop.permute.xlu1 %208 }
 0x157   :  { %133 = vst.msk [vmem:[#allocation3 + $0xc0] sm:$0xff] %vm53_vm0, %v129_v61  ;;  %1187 = vperm.xlu0 %5560, %v6313_v1   ;;  %vm2396_vm0 = vcmask 1048064  }
 0x158   :  { %220 = vst.msk [vmem:[#allocation3 + $0x40] sm:$0xff] %vm218_vm2, %v209_v7  ;;  %5545 = vset.pattern.permute.xlu1 %v8175_v10 }
 0x159   :  { %1266 = vperm.xlu1 %5545, %v6266_v8  }
 0x15a   :  { %v298_v9 = vpop.permute.xlu1 %297 }
 0x15b   :  { %309 = vst.msk [vmem:[#allocation3 + $0x40] sm:$0xff] %vm307_vm3, %v298_v9  ;;  %1197 = vperm.xlu0 %5560, %v6323_v19  }
 0x15d   :  { %5546 = vset.pattern.permute.xlu1 %v8179_v23 }
 0x15e   :  { %v387_v2 = vpop.permute.xlu1 %386  ;;  %1687 = vperm.xlu1 %5546, %v6259_v50  }
 0x15f   :  { %398 = vst.msk [vmem:[#allocation3 + $0x40] sm:$0xff] %vm396_vm4, %v387_v2  ;;  %1207 = vperm.xlu0 %5560, %v6332_v4  }
 0x161   :  { %v741_v29 = vpop.permute.xlu0 %740 }
 0x162   :  { %753 = vst.msk [vmem:[#allocation3] sm:$0xff] %vm752_vm8, %v741_v29  ;;  %v476_v47 = vpop.permute.xlu1 %475  ;;  %5547 = vset.pattern.permute.xlu1 %v8181_v15 }
 0x163   :  { %487 = vst.msk [vmem:[#allocation3 + $0x40] sm:$0xff] %vm485_vm5, %v476_v47  ;;  %1350 = vperm.xlu1 %5547, %v6259_v50   ;;  %5563 = vset.pattern.permute.xlu0 %v8175_v10 }
 0x164   :  { %1261 = vperm.xlu0 %5563, %v6259_v50  }
 0x166   :  { %v565_v59 = vpop.permute.xlu1 %564 }
 0x167   :  { %576 = vst.msk [vmem:[#allocation3 + $0x40] sm:$0xff] %vm574_vm6, %v565_v59  ;;  %1355 = vperm.xlu1 %5547, %v6266_v8  }
 0x168   :  { %1271 = vperm.xlu0 %5563, %v6271_v51  }
 0x16a   :  { %v654_v54 = vpop.permute.xlu1 %653  ;;  %v830_v49 = vpop.permute.xlu0 %829 }
 0x16b   :  { %665 = vst.msk [vmem:[#allocation3 + $0x40] sm:$0xff] %vm663_vm7, %v654_v54  ;;  %5548 = vset.pattern.permute.xlu1 %v8177_v21 }
 0x16c   :  { %842 = vst.msk [vmem:[#allocation3] sm:$0xff] %vm841_vm9, %v830_v49  ;;  %1526 = vperm.xlu1 %5548, %v6313_v1   ;;  %1281 = vperm.xlu0 %5563, %v6282_v12  }
 0x16e   :  { %v743_v35 = vpop.permute.xlu1 %742  ;;  %v832_v11 = vpop.permute.xlu0 %831 }
 0x16f   :  { %754 = vst.msk [vmem:[#allocation3 + $0x40] sm:$0xff] %vm752_vm8, %v743_v35 }
 0x170   :  { %843 = vst.msk [vmem:[#allocation3 + $0x40] sm:$0xff] %vm841_vm9, %v832_v11  ;;  %5549 = vset.pattern.permute.xlu1 %v8183_v0  ;;  %1291 = vperm.xlu0 %5563, %v6295_v56  }
 0x171   :  { %1182 = vperm.xlu1 %5549, %v6271_v51  }
 0x172   :  { %v211_v32 = vpop.permute.xlu1 %210  ;;  %v300_v17 = vpop.permute.xlu0 %299 }
 0x173   :  { %v855_v38 = vld [vmem:[#allocation3] sm:$0xff]  ;;  %221 = vst.msk [vmem:[#allocation3 + $0x80] sm:$0xff] %vm218_vm2, %v211_v32 }
 0x174   :  { %5433 = vmatprep.mubr.msk.bf16.mxu0 %vm886_vm10, %v855_v38  ;;  %310 = vst.msk [vmem:[#allocation3 + $0x80] sm:$0xff] %vm307_vm3, %v300_v17  ;;  %5565 = vset.pattern.permute.xlu0 %v8179_v23 }
 0x175   :  { %5550 = vset.pattern.permute.xlu1 %v8169_v22  ;;  %1692 = vperm.xlu0 %5565, %v6266_v8  }
 0x176   :  { %v213_v39 = vpop.permute.xlu1 %212  ;;  %1609 = vperm.xlu1 %5550, %v6271_v51  }
 0x177   :  { %222 = vst.msk [vmem:[#allocation3 + $0xc0] sm:$0xff] %vm218_vm2, %v213_v39  ;;  %v389_v58 = vpop.permute.xlu0 %388  ;;  %v856_v41 = vld [vmem:[#allocation3 + $0x40] sm:$0xff]  ;;  %vm4926_vm2 = vcmask 254976  }
 0x178   :  { %399 = vst.msk [vmem:[#allocation3 + $0x80] sm:$0xff] %vm396_vm4, %v389_v58  ;;  %5434 = vmatmul.mubr.msk.bf16.vlgmr.msra.gmra.mrb[0].mxu0 %vm886_vm10, %v856_v41 }
 0x179   :  { %1702 = vperm.xlu0 %5565, %v6313_v1  }
 0x17a   :  { %v302_v60 = vpop.permute.xlu1 %301  ;;  %1614 = vperm.xlu1 %5550, %v6313_v1  }
 0x17b   :  { %311 = vst.msk [vmem:[#allocation3 + $0xc0] sm:$0xff] %vm307_vm3, %v302_v60 }
 0x17d   :  { %1712 = vperm.xlu0 %5565, %v6323_v19  }
 0x17e   :  { %5551 = vset.pattern.permute.xlu1 %v8175_v10 }
 0x17f   :  { %v391_v14 = vpop.permute.xlu1 %390  ;;  %1276 = vperm.xlu1 %5551, %v6313_v1  }
 0x180   :  { %400 = vst.msk [vmem:[#allocation3 + $0xc0] sm:$0xff] %vm396_vm4, %v391_v14 }
 0x181   :  { %1722 = vperm.xlu0 %5565, %v6332_v4  }
 0x183   :  { %5552 = vset.pattern.permute.xlu1 %v8179_v23 }
 0x184   :  { %v478_v42 = vpop.permute.xlu0 %477  ;;  %1697 = vperm.xlu1 %5552, %v6271_v51  }
 0x185   :  { %488 = vst.msk [vmem:[#allocation3 + $0x80] sm:$0xff] %vm485_vm5, %v478_v42  ;;  %5571 = vset.pattern.permute.xlu0 %v8173_v25 }
 0x186   :  { %1105 = vperm.xlu0 %5571, %v6266_v8  }
 0x188   :  { %v480_v28 = vpop.permute.xlu1 %479  ;;  %5553 = vset.pattern.permute.xlu1 %v8181_v15 }
 0x189   :  { %489 = vst.msk [vmem:[#allocation3 + $0xc0] sm:$0xff] %vm485_vm5, %v480_v28  ;;  %1360 = vperm.xlu1 %5553, %v6271_v51   ;;  %v5672_v28 = vld [vmem:[#allocation4 + $0xb0] sm:$0xff]  }
 0x18a   :  { %1110 = vperm.xlu0 %5571, %v6271_v51   ;;  %5441 = vmatprep.subr.bf16.mxu0 %v5672_v28 }
 0x18b   :  { %5442 = vmatpush3.bf16.msra.mxu0 %v5672_v28 }
 0x18d   :  { %v567_v33 = vpop.permute.xlu0 %566  ;;  %1365 = vperm.xlu1 %5553, %v6313_v1  }
 0x18e   :  { %577 = vst.msk [vmem:[#allocation3 + $0x80] sm:$0xff] %vm574_vm6, %v567_v33  ;;  %1125 = vperm.xlu0 %5571, %v6323_v19  }
 0x191   :  { %5554 = vset.pattern.permute.xlu1 %v8177_v21 }
 0x192   :  { %1536 = vperm.xlu1 %5554, %v6323_v19   ;;  %5576 = vset.pattern.permute.xlu0 %v8171_v20 }
 0x193   :  { %1439 = vperm.xlu0 %5576, %v6259_v50  }
 0x195   :  { %v569_v40 = vpop.permute.xlu1 %568 }
 0x196   :  { %578 = vst.msk [vmem:[#allocation3 + $0xc0] sm:$0xff] %vm574_vm6, %v569_v40  ;;  %5555 = vset.pattern.permute.xlu1 %v8183_v0  ;;  %v5673_v40 = vld [vmem:[#allocation4 + $0xb8] sm:$0xff]  }
 0x197   :  { %1192 = vperm.xlu1 %5555, %v6282_v12   ;;  %1459 = vperm.xlu0 %5576, %v6282_v12  }
 0x198   :  { %5443 = vmatprep.subr.bf16.mxu0 %v5673_v40 }
 0x199   :  { %5444 = vmatpush3.bf16.msra.mxu0 %v5673_v40 }
 0x19a   :  { %v656_v43 = vpop.permute.xlu0 %655 }
 0x19b   :  { %666 = vst.msk [vmem:[#allocation3 + $0x80] sm:$0xff] %vm663_vm7, %v656_v43  ;;  %5556 = vset.pattern.permute.xlu1 %v8169_v22  ;;  %1474 = vperm.xlu0 %5576, %v6332_v4  }
 0x19c   :  { %1619 = vperm.xlu1 %5556, %v6282_v12  }
 0x19e   :  { %v658_v44 = vpop.permute.xlu1 %657 }
 0x19f   :  { %667 = vst.msk [vmem:[#allocation3 + $0xc0] sm:$0xff] %vm663_vm7, %v658_v44  ;;  %5579 = vset.pattern.permute.xlu0 %v8167_v24 }
 0x1a0   :  { %1624 = vperm.xlu1 %5556, %v6323_v19   ;;  %1785 = vperm.xlu0 %5579, %v6271_v51  }
 0x1a3   :  { %v745_v34 = vpop.permute.xlu0 %744 }
 0x1a4   :  { %755 = vst.msk [vmem:[#allocation3 + $0x80] sm:$0xff] %vm752_vm8, %v745_v34  ;;  %5557 = vset.pattern.permute.xlu1 %v8175_v10  ;;  %1795 = vperm.xlu0 %5579, %v6282_v12  }
 0x1a5   :  { %1286 = vperm.xlu1 %5557, %v6323_v19  }
 0x1a8   :  { %1810 = vperm.xlu0 %5579, %v6332_v4  }
 0x1a9   :  { %5558 = vset.pattern.permute.xlu1 %v8179_v23 }
 0x1aa   :  { %1707 = vperm.xlu1 %5558, %v6282_v12  }
 0x1ab   :  { %v747_v45 = vpop.permute.xlu1 %746 }
 0x1ac   :  { %756 = vst.msk [vmem:[#allocation3 + $0xc0] sm:$0xff] %vm752_vm8, %v747_v45  ;;  %5583 = vset.pattern.permute.xlu0 %v8181_v15 }
 0x1ae   :  { %5559 = vset.pattern.permute.xlu1 %v8181_v15 }
 0x1af   :  { %1370 = vperm.xlu1 %5559, %v6282_v12  }
 0x1b0   :  { %v834_v27 = vpop.permute.xlu0 %833 }
 0x1b1   :  { %844 = vst.msk [vmem:[#allocation3 + $0x80] sm:$0xff] %vm841_vm9, %v834_v27 }
 0x1b3   :  { %1375 = vperm.xlu1 %5559, %v6323_v19  }
 0x1b4   :  { %v836_v5 = vpop.permute.xlu1 %835 }
 0x1b5   :  { %845 = vst.msk [vmem:[#allocation3 + $0xc0] sm:$0xff] %vm841_vm9, %v836_v5 }
 0x1b7   :  { %5561 = vset.pattern.permute.xlu1 %v8177_v21 }
 0x1b8   :  { %v857_v53 = vld [vmem:[#allocation3 + $0x80] sm:$0xff]  ;;  %1546 = vperm.xlu1 %5561, %v6332_v4  }
 0x1b9   :  { %5437 = vmatprep.mubr.msk.bf16.mxu0 %vm886_vm10, %v857_v53 }
 0x1bc   :  { %v858_v18 = vld [vmem:[#allocation3 + $0xc0] sm:$0xff]  ;;  %5562 = vset.pattern.permute.xlu1 %v8183_v0 }
 0x1bd   :  { %5438 = vmatmul.mubr.msk.bf16.gmra.mrb[4].mxu0 %vm886_vm10, %v858_v18  ;;  %1202 = vperm.xlu1 %5562, %v6295_v56  }
 0x1c1   :  { %5564 = vset.pattern.permute.xlu1 %v8169_v22  ;;  %v6512_v35 = vpop.permute.xlu0 %1511 }
 0x1c2   :  { %1629 = vperm.xlu1 %5564, %v6295_v56  }
 0x1c5   :  { %v6433_v48 = vpop.permute.xlu1 %1516  ;;  %v6516_v32 = vpop.permute.xlu0 %1521 }
 0x1c6   :  { %1634 = vperm.xlu1 %5564, %v6332_v4  }
 0x1c9   :  { %v6520_v38 = vpop.permute.xlu0 %1531 }
 0x1ca   :  { %5566 = vset.pattern.permute.xlu1 %v8175_v10  ;;  %v6438_v57 = vpop.permute.xlu1 %1172  ;;  %8211 = vst [vmem:[#allocation23_spill] sm:$0xff] %v6520_v38 }
 0x1cb   :  { %1296 = vperm.xlu1 %5566, %v6332_v4  }
 0x1cd   :  { %v6524_v58 = vpop.permute.xlu0 %1541 }
 0x1ce   :  { %8213 = vst [vmem:[#allocation25_spill] sm:$0xff] %v6524_v58 }
 0x1cf   :  { %5567 = vset.pattern.permute.xlu1 %v8179_v23  ;;  %v6442_v46 = vpop.permute.xlu1 %1599 }
 0x1d0   :  { %1717 = vperm.xlu1 %5567, %v6295_v56  }
 0x1d2   :  { %v6528_v60 = vpop.permute.xlu0 %1177 }
 0x1d3   :  { %v6446_v62 = vpop.permute.xlu1 %1604 }
 0x1d4   :  { %5568 = vset.pattern.permute.xlu1 %v8181_v15 }
 0x1d5   :  { %1380 = vperm.xlu1 %5568, %v6295_v56  }
 0x1d6   :  { %v6532_v42 = vpop.permute.xlu0 %1187 }
 0x1d7   :  { %8216 = vst [vmem:[#allocation28_spill] sm:$0xff] %v6532_v42 }
 0x1d8   :  { %v6450_v63 = vpop.permute.xlu1 %1266 }
 0x1d9   :  { %1385 = vperm.xlu1 %5568, %v6332_v4  }
 0x1da   :  { %v6536_v43 = vpop.permute.xlu0 %1197 }
 0x1db   :  { %8218 = vst [vmem:[#allocation30_spill] sm:$0xff] %v6536_v43 }
 0x1dd   :  { %5569 = vset.pattern.permute.xlu1 %v8171_v20 }
 0x1de   :  { %1444 = vperm.xlu1 %5569, %v6266_v8   ;;  %v6540_v34 = vpop.permute.xlu0 %1207 }
 0x1df   :  { %8220 = vst [vmem:[#allocation32_spill] sm:$0xff] %v6540_v34 }
 0x1e2   :  { %5570 = vset.pattern.permute.xlu1 %v8173_v25 }
 0x1e3   :  { %1100 = vperm.xlu1 %5570, %v6259_v50   ;;  %v6544_v27 = vpop.permute.xlu0 %1261 }
 0x1e7   :  { %5572 = vset.pattern.permute.xlu1 %v8171_v20 }
 0x1e8   :  { %1449 = vperm.xlu1 %5572, %v6271_v51   ;;  %v6454_v51 = vpop.permute.xlu1 %1687 }
 0x1ec   :  { %1454 = vperm.xlu1 %5572, %v6313_v1   ;;  %v6459_v52 = vpop.permute.xlu1 %1350 }
 0x1f0   :  { %5573 = vset.pattern.permute.xlu1 %v8173_v25  ;;  %v6462_v36 = vpop.permute.xlu1 %1355 }
 0x1f1   :  { %1115 = vperm.xlu1 %5573, %v6313_v1  }
 0x1f4   :  { %v6466_v6 = vpop.permute.xlu1 %1526 }
 0x1f5   :  { %5574 = vset.pattern.permute.xlu1 %v8171_v20 }
 0x1f6   :  { %1464 = vperm.xlu1 %5574, %v6323_v19  }
 0x1fa   :  { %5575 = vset.pattern.permute.xlu1 %v8173_v25 }
 0x1fb   :  { %1120 = vperm.xlu1 %5575, %v6282_v12  }
 0x1ff   :  { %5577 = vset.pattern.permute.xlu1 %v8167_v24 }
 0x200   :  { %1775 = vperm.xlu1 %5577, %v6259_v50   ;;  %v6471_v50 = vpop.permute.xlu1 %1182 }
 0x201   :  { %8198 = vst [vmem:[#allocation10_spill] sm:$0xff] %v6471_v50 }
 0x204   :  { %1780 = vperm.xlu1 %5577, %v6266_v8   ;;  %v6475_v8 = vpop.permute.xlu1 %1609 }
 0x208   :  { %1790 = vperm.xlu1 %5577, %v6313_v1   ;;  %v6478_v12 = vpop.permute.xlu1 %1614 }
 0x209   :  { %8199 = vst [vmem:[#allocation11_spill] sm:$0xff] %v6478_v12 }
 0x20c   :  { %5578 = vset.pattern.permute.xlu1 %v8171_v20  ;;  %v6481_v31 = vpop.permute.xlu1 %1276 }
 0x20d   :  { %1469 = vperm.xlu1 %5578, %v6295_v56   ;;  %8200 = vst [vmem:[#allocation12_spill] sm:$0xff] %v6481_v31 }
 0x210   :  { %v6483_v26 = vpop.permute.xlu1 %1697 }
 0x211   :  { %5580 = vset.pattern.permute.xlu1 %v8173_v25  ;;  %8201 = vst [vmem:[#allocation13_spill] sm:$0xff] %v6483_v26 }
 0x212   :  { %1130 = vperm.xlu1 %5580, %v6295_v56  }
 0x214   :  { %v6485_v37 = vpop.permute.xlu1 %1360 }
 0x215   :  { %8202 = vst [vmem:[#allocation14_spill] sm:$0xff] %v6485_v37 }
 0x216   :  { %1135 = vperm.xlu1 %5580, %v6332_v4  }
 0x218   :  { %v6487_v30 = vpop.permute.xlu1 %1365 }
 0x219   :  { %8203 = vst [vmem:[#allocation15_spill] sm:$0xff] %v6487_v30 }
 0x21a   :  { %5581 = vset.pattern.permute.xlu1 %v8167_v24 }
 0x21b   :  { %1800 = vperm.xlu1 %5581, %v6323_v19  }
 0x21c   :  { %v6489_v16 = vpop.permute.xlu1 %1536 }
 0x21d   :  { %8204 = vst [vmem:[#allocation16_spill] sm:$0xff] %v6489_v16 }
 0x21f   :  { %1805 = vperm.xlu1 %5581, %v6295_v56  }
 0x220   :  { %v6491_v55 = vpop.permute.xlu1 %1192 }
 0x221   :  { %8205 = vst [vmem:[#allocation17_spill] sm:$0xff] %v6491_v55 }
 0x223   :  { %5582 = vset.pattern.permute.xlu1 %v8181_v15 }
 0x224   :  { %v6499_v7 = vpop.permute.xlu1 %1619 }
 0x225   :  { %8206 = vst [vmem:[#allocation18_spill] sm:$0xff] %v6499_v7 }
 0x228   :  { %v6508_v59 = vpop.permute.xlu1 %1624 }
 0x229   :  { %8207 = vst [vmem:[#allocation19_spill] sm:$0xff] %v6508_v59 }
 0x22c   :  { %v6510_v49 = vpop.permute.xlu1 %1286 }
 0x22d   :  { %8208 = vst [vmem:[#allocation20_spill] sm:$0xff] %v6510_v49 }
 0x230   :  { %v6514_v11 = vpop.permute.xlu1 %1707 }
 0x231   :  { %8209 = vst [vmem:[#allocation21_spill] sm:$0xff] %v6514_v11 }
 0x234   :  { %v6518_v17 = vpop.permute.xlu1 %1370 }
 0x235   :  { %8210 = vst [vmem:[#allocation22_spill] sm:$0xff] %v6518_v17 }
 0x238   :  { %v6522_v39 = vpop.permute.xlu1 %1375 }
 0x239   :  { %8212 = vst [vmem:[#allocation24_spill] sm:$0xff] %v6522_v39 }
 0x23c   :  { %v6526_v41 = vpop.permute.xlu1 %1546 }
 0x23d   :  { %8214 = vst [vmem:[#allocation26_spill] sm:$0xff] %v6526_v41 }
 0x240   :  { %v6530_v14 = vpop.permute.xlu1 %1202 }
 0x241   :  { %8215 = vst [vmem:[#allocation27_spill] sm:$0xff] %v6530_v14 }
 0x244   :  { %v6534_v33 = vpop.permute.xlu1 %1629 }
 0x245   :  { %8217 = vst [vmem:[#allocation29_spill] sm:$0xff] %v6534_v33 }
 0x248   :  { %v6538_v44 = vpop.permute.xlu1 %1634 }
 0x249   :  { %8219 = vst [vmem:[#allocation31_spill] sm:$0xff] %v6538_v44 }
 0x24b   :  { %v6493_v3 = vpop.f32.mrb[0].mxu0 }
 0x24c   :  { %v6495_v56 = vpop.f32.mrb[1].mxu0  ;;  %v972_v4 = vsel %vm968_vm11, %v6493_v3, 0.0  ;;  %v6542_v45 = vpop.permute.xlu1 %1296 }
 0x24d   :  { %v6497_v61 = vpop.f32.mrb[2].mxu0  ;;  %v969_v9 = vsel %vm968_vm11, %v6495_v56, 0.0  ;;  %8221 = vst [vmem:[#allocation33_spill] sm:$0xff] %v6542_v45 }
 0x24e   :  { %v940_v1 = vpop.f32.mrb[3].mxu0  ;;  %v974_v47 = vsel %vm968_vm11, %v6497_v61, 0.0 }
 0x24f   :  { %v970_v19 = vsel %vm968_vm11, %v940_v1, 0.0 }
 0x250   :  { %v971_v2 = vadd.f32 %v970_v19, %v969_v9  ;;  %v6546_v5 = vpop.permute.xlu1 %1717 }
 0x251   :  { %8222 = vst [vmem:[#allocation34_spill] sm:$0xff] %v6546_v5  ;;  %v5678_v5 = vld [vmem:[#allocation4 + $0x80] sm:$0xff]  }
 0x252   :  { %v973_v29 = vadd.f32 %v972_v4, %v971_v2 }
 0x254   :  { %v975_v54 = vadd.f32 %v974_v47, %v973_v29  ;;  %v6550_v47 = vpop.permute.xlu0 %1271  ;;  %v6552_v40 = vpop.permute.xlu1 %1380 }
 0x255   :  { %8223 = vst [vmem:[#allocation35_spill] sm:$0xff] %v6550_v47  ;;  %8224 = vst [vmem:[#allocation36_spill] sm:$0xff] %v6552_v40 }
 0x258   :  { %v6556_v10 = vpop.permute.xlu0 %1281  ;;  %v6558_v23 = vpop.permute.xlu1 %1385 }
 0x259   :  { %8225 = vst [vmem:[#allocation37_spill] sm:$0xff] %v6556_v10  ;;  %8226 = vst [vmem:[#allocation38_spill] sm:$0xff] %v6558_v23  ;;  %v5676_v23 = vld [vmem:[#allocation4 + $0x78] sm:$0xff]  }
 0x25c   :  { %v6560_v15 = vpop.permute.xlu0 %1291 }
 0x25d   :  { %8227 = vst [vmem:[#allocation39_spill] sm:$0xff] %v6560_v15  ;;  %v6562_v45 = vpop.permute.xlu1 %1444 }
 0x260   :  { %v6564_v40 = vpop.permute.xlu0 %1692 }
 0x290   :  { %v5439_v53 = vpop.f32.mrb[4].mxu0 }
 0x291   :  { %v953_v18 = vpop.f32.mrb[5].mxu0  ;;  %v980_v24 = vsel %vm968_vm11, %v5439_v53, 0.0 }
 0x292   :  { %v976_v9 = vsel %vm968_vm11, %v953_v18, 0.0  ;;  %v5440_v19 = vpop.f32.mrb[6].mxu0 }
 0x293   :  { %v977_v2 = vadd.f32 %v976_v9, %v975_v54  ;;  %v956_v4 = vpop.f32.mrb[7].mxu0  ;;  %v982_v20 = vsel %vm968_vm11, %v5440_v19, 0.0 }
 0x294   :  { %v978_v29 = vsel %vm968_vm11, %v956_v4, 0.0 }
 0x295   :  { %v979_v28 = vadd.f32 %v978_v29, %v977_v2 }
 0x297   :  { %v981_v22 = vadd.f32 %v980_v24, %v979_v28  ;;  %v6566_v28 = vpop.permute.xlu1 %1100 }
 0x299   :  { %v983_v25 = vadd.f32 %v982_v20, %v981_v22 }
 0x29b   :  { %v984_v21 = vrot.slane %v983_v25, 4 }
 0x29d   :  { %v985_v54 = vadd.f32 %v984_v21, %v983_v25 }
 0x29f   :  { %v986_v9 = vrot.slane %v985_v54, 2 }
 0x2a1   :  { %v987_v0 = vadd.f32 %v986_v9, %v985_v54  ;;  %v5674_v54 = vld [vmem:[#allocation4 + $0x70] sm:$0xff]  }
 0x2a2   :  { %v5675_v9 = vld [vmem:[#allocation4 + $0x30] sm:$0xff]   ;;  %5124 = vmatprep.subr.bf16.mxu1 %v5674_v54 }
 0x2a3   :  { %v988_v2 = vrot.slane %v987_v0, 1  ;;  %5125 = vmatpush3.bf16.msra.mxu1 %v5675_v9  ;;  %v5679_v9 = vld [vmem:[#allocation4 + $0x40] sm:$0xff]  }
 0x2a4   :  { %5126 = vmatprep.subr.bf16.mxu1 %v5676_v23 }
 0x2a5   :  { %v989_v29 = vadd.f32 %v988_v2, %v987_v0 }
 0x2a7   :  { %v991_v24 = vmul.f32 0.015625, %v989_v29 }
 0x2a9   :  { %v6569_v20 = vsub.f32 %v6495_v56, %v991_v24  ;;  %v6571_v22 = vsub.f32 %v940_v1, %v991_v24  ;;  %v6574_v21 = vsub.f32 %v6493_v3, %v991_v24  ;;  %v6577_v25 = vsub.f32 %v6497_v61, %v991_v24  ;;  %v6593_v1 = vpop.permute.xlu0 %1702 }
 0x2aa   :  { %v6579_v0 = vsub.f32 %v953_v18, %v991_v24  ;;  %v6581_v2 = vsub.f32 %v956_v4, %v991_v24  ;;  %v6583_v29 = vsub.f32 %v5439_v53, %v991_v24  ;;  %v6585_v15 = vsub.f32 %v5440_v19, %v991_v24  ;;  %8228 = vst [vmem:[#allocation40_spill] sm:$0xff] %v6593_v1  ;;  %v5677_v18 = vld [vmem:[#allocation4 + $0x38] sm:$0xff]   ;;  %v6599_v24 = vpop.permute.xlu1 %1449 }
 0x2ab   :  { %v1000_v56 = vmul.f32 %v6569_v20, %v6569_v20  ;;  %v1001_v3 = vmul.f32 %v6571_v22, %v6571_v22  ;;  %v1002_v61 = vmul.f32 %v6574_v21, %v6574_v21  ;;  %v1003_v53 = vmul.f32 %v6577_v25, %v6577_v25  ;;  %5127 = vmatpush3.bf16.msra.mxu1 %v5677_v18 }
 0x2ac   :  { %v1004_v14 = vmul.f32 %v6579_v0, %v6579_v0  ;;  %v1005_v33 = vmul.f32 %v6581_v2, %v6581_v2  ;;  %5128 = vmatprep.subr.bf16.mxu1 %v5678_v5  ;;  %v1006_v23 = vmul.f32 %v6583_v29, %v6583_v29  ;;  %v1007_v18 = vmul.f32 %v6585_v15, %v6585_v15 }
 0x2ad   :  { %v1008_v19 = vsel %vm968_vm11, %v1000_v56, 0.0  ;;  %v1009_v4 = vsel %vm968_vm11, %v1001_v3, 0.0  ;;  %v1011_v54 = vsel %vm968_vm11, %v1002_v61, 0.0  ;;  %v1013_v56 = vsel %vm968_vm11, %v1003_v53, 0.0  ;;  %v5680_v3 = vld [vmem:[#allocation4 + $0x88] sm:$0xff]   ;;  %v6607_v17 = vpop.permute.xlu0 %1712 }
 0x2ae   :  { %v1010_v34 = vadd.f32 %v1009_v4, %v1008_v19  ;;  %8229 = vst [vmem:[#allocation41_spill] sm:$0xff] %v6607_v17  ;;  %v1015_v19 = vsel %vm968_vm11, %v1004_v14, 0.0  ;;  %v6612_v4 = vpop.permute.xlu1 %1454  ;;  %v5681_v61 = vld [vmem:[#allocation4 + $0x48] sm:$0xff]   ;;  %v1017_v53 = vsel %vm968_vm11, %v1005_v33, 0.0  ;;  %v1021_v14 = vsel %vm968_vm11, %v1007_v18, 0.0 }
 0x2af   :  { %5129 = vmatpush3.bf16.msra.mxu1 %v5679_v9 }
 0x2b0   :  { %v1012_v44 = vadd.f32 %v1011_v54, %v1010_v34  ;;  %5130 = vmatprep.subr.bf16.mxu1 %v5680_v3 }
 0x2b2   :  { %v1014_v39 = vadd.f32 %v1013_v56, %v1012_v44  ;;  %v1019_v44 = vsel %vm968_vm11, %v1006_v23, 0.0  ;;  %v6618_v56 = vpop.permute.xlu0 %1722  ;;  %v6621_v41 = vpop.permute.xlu1 %1115 }
 0x2b3   :  { %8230 = vst [vmem:[#allocation42_spill] sm:$0xff] %v6618_v56  ;;  %5131 = vmatpush3.bf16.msra.mxu1 %v5681_v61 }
 0x2b4   :  { %v1016_v34 = vadd.f32 %v1015_v19, %v1014_v39 }
 0x2b6   :  { %v1018_v5 = vadd.f32 %v1017_v53, %v1016_v34  ;;  %v6623_v58 = vpop.permute.xlu0 %1105  ;;  %v6625_v49 = vpop.permute.xlu1 %1464 }
 0x2b8   :  { %v1020_v54 = vadd.f32 %v1019_v44, %v1018_v5 }
 0x2ba   :  { %v1022_v39 = vadd.f32 %v1021_v14, %v1020_v54  ;;  %v6627_v53 = vpop.permute.xlu0 %1110  ;;  %v6629_v23 = vpop.permute.xlu1 %1120 }
 0x2bc   :  { %v1023_v9 = vrot.slane %v1022_v39, 4 }
 0x2be   :  { %v1024_v19 = vadd.f32 %v1023_v9, %v1022_v39  ;;  %v6631_v18 = vpop.permute.xlu0 %1125  ;;  %v6633_v56 = vpop.permute.xlu1 %1775  ;;  %v4979_v9 = vld [vmem:[%s8165_s3] ss:$0 sm:$0xff] }
 0x2c0   :  { %v1025_v33 = vrot.slane %v1024_v19, 2 }
 0x2c2   :  { %v1026_v3 = vadd.f32 %v1025_v33, %v1024_v19  ;;  %v6635_v54 = vpop.permute.xlu0 %1439  ;;  %v6637_v14 = vpop.permute.xlu1 %1780 }
 0x2c4   :  { %v1027_v34 = vrot.slane %v1026_v3, 1 }
 0x2c6   :  { %v1028_v5 = vadd.f32 %v1027_v34, %v1026_v3  ;;  %v6642_v19 = vpop.permute.xlu0 %1459 }
 0x2c8   :  { %v1029_v61 = vmul.f32 0.015625, %v1028_v5 }
 0x2ca   :  { %v1030_v44 = vadd.f32 1e-05, %v1029_v61  ;;  %v6648_v61 = vpop.permute.xlu1 %1790 }
 0x2cc   :  { %5790 = vrsqrt.f32 %v1030_v44 }
 0x2d6   :  { %v5791_v39 = vpop.eup %5790 }
 0x2d7   :  { %v1032_v33 = vmul.f32 %v5791_v39, %v6569_v20  ;;  %v1033_v3 = vmul.f32 %v5791_v39, %v6571_v22  ;;  %v1034_v34 = vmul.f32 %v5791_v39, %v6574_v21  ;;  %v1035_v5 = vmul.f32 %v5791_v39, %v6577_v25  ;;  %v4980_v20 = vld [vmem:[%s8165_s3 + $0x1] ss:$0 sm:$0xff] }
 0x2d8   :  { %v1036_v44 = vmul.f32 %v5791_v39, %v6579_v0  ;;  %v1037_v10 = vmul.f32 %v5791_v39, %v6581_v2  ;;  %v1038_v17 = vmul.f32 %v5791_v39, %v6583_v29  ;;  %v1039_v11 = vmul.f32 %v5791_v39, %v6585_v15  ;;  %v6657_v39 = vpop.permute.xlu0 %1474 }
 0x2d9   :  { %v1046_v43 = vmul.f32 %v4979_v9, %v1032_v33  ;;  %v1047_v22 = vmul.f32 %v4979_v9, %v1033_v3  ;;  %v1048_v55 = vmul.f32 %v4979_v9, %v1034_v34  ;;  %v1049_v21 = vmul.f32 %v4979_v9, %v1035_v5  ;;  %v6659_v34 = vpop.permute.xlu1 %1469 }
 0x2da   :  { %v1050_v59 = vmul.f32 %v4979_v9, %v1036_v44  ;;  %v1051_v25 = vmul.f32 %v4979_v9, %v1037_v10  ;;  %v1052_v7 = vmul.f32 %v4979_v9, %v1038_v17  ;;  %v1053_v30 = vmul.f32 %v4979_v9, %v1039_v11 }
 0x2db   :  { %v1058_v37 = vadd.f32 %v4980_v20, %v1046_v43  ;;  %v1059_v0 = vadd.f32 %v4980_v20, %v1047_v22  ;;  %v1060_v16 = vadd.f32 %v4980_v20, %v1048_v55  ;;  %v1061_v2 = vadd.f32 %v4980_v20, %v1049_v21  ;;  %v1764_v22 = vld [vmem:[#allocation2 + $0x51] sm:$0xff] }
 0x2dc   :  { %v1062_v38 = vadd.f32 %v4980_v20, %v1050_v59  ;;  %v1063_v29 = vadd.f32 %v4980_v20, %v1051_v25  ;;  %v1064_v31 = vadd.f32 %v4980_v20, %v1052_v7  ;;  %v1065_v15 = vadd.f32 %v4980_v20, %v1053_v30  ;;  %v1082_v20 = vld [vmem:[#allocation2 + $0x7] sm:$0xff] }
 0x2dd   :  { %v1066_v47 = vmax.f32 %v1058_v37, 0.0  ;;  %v1067_v1 = vmax.f32 %v1059_v0, 0.0  ;;  %v1068_v33 = vmax.f32 %v1060_v16, 0.0  ;;  %v1069_v3 = vmax.f32 %v1061_v2, 0.0  ;;  %v6669_v37 = vpop.permute.xlu0 %1785 }
 0x2de   :  { %v1070_v5 = vmax.f32 %v1062_v38, 0.0  ;;  %v1071_v10 = vmax.f32 %v1063_v29, 0.0  ;;  %v1072_v17 = vmax.f32 %v1064_v31, 0.0  ;;  %v1073_v11 = vmax.f32 %v1065_v15, 0.0  ;;  %v6671_v31 = vpop.permute.xlu1 %1130 }
 0x2df   :  { %1074 = vst.msk [vmem:[#allocation2 + $0x10] sm:$0xff] %vm968_vm11, %v1066_v47  ;;  %1075 = vst.msk [vmem:[#allocation2 + $0x18] sm:$0xff] %vm968_vm11, %v1067_v1  ;;  %v1210_v16 = vmul.f32 %v6248_v13, %v6438_v57 }
 0x2e0   :  { %1076 = vst.msk [vmem:[#allocation2 + $0x20] sm:$0xff] %vm968_vm11, %v1068_v33  ;;  %1077 = vst.msk [vmem:[#allocation2 + $0x28] sm:$0xff] %vm968_vm11, %v1069_v3 }
 0x2e1   :  { %1078 = vst.msk [vmem:[#allocation2 + $0x30] sm:$0xff] %vm968_vm11, %v1070_v5  ;;  %1079 = vst.msk [vmem:[#allocation2 + $0x38] sm:$0xff] %vm968_vm11, %v1071_v10  ;;  %v6676_v7 = vpop.permute.xlu0 %1795  ;;  %v1138_v10 = vmul.f32 %v6566_v28, %v1082_v20 }
 0x2e2   :  { %1080 = vst.msk [vmem:[#allocation2 + $0x40] sm:$0xff] %vm968_vm11, %v1072_v17  ;;  %1081 = vst.msk [vmem:[#allocation2 + $0x48] sm:$0xff] %vm968_vm11, %v1073_v11  ;;  %v6678_v38 = vpop.permute.xlu1 %1135  ;;  %v5683_v11 = vld [vmem:[#allocation4 + $0x50] sm:$0xff]  }
 0x2e6   :  { %v1155_v30 = vld [vmem:[#allocation2 + $0x10] sm:$0xff]  ;;  %v6690_v57 = vld [vmem:[#allocation2 + $0x18] sm:$0xff]  ;;  %v1801_v5 = vpop.permute.xlu1 %1800 }
 0x2e7   :  { %v1211_v55 = vmul.f32 %v6528_v60, %v1155_v30  ;;  %v1243_v43 = vld [vmem:[#allocation2 + $0x9] sm:$0xff]  ;;  %v6680_v47 = vld [vmem:[#allocation2 + $0x11] sm:$0xff]  ;;  %v6682_v1 = vld [vmem:[#allocation2 + $0x20] sm:$0xff]  ;;  %v1478_v28 = vmul.f32 %v6562_v45, %v6690_v57 }
 0x2e8   :  { %v1299_v9 = vmul.f32 %v6544_v27, %v1243_v43  ;;  %v1300_v44 = vmul.f32 %v6450_v63, %v6680_v47  ;;  %v6688_v13 = vld [vmem:[#allocation2 + $0x28] sm:$0xff]  ;;  %v6692_v21 = vld [vmem:[#allocation2 + $0x38] sm:$0xff]  ;;  %v1479_v27 = vmul.f32 %v6599_v24, %v6682_v1  ;;  %v1811_v63 = vpop.permute.xlu0 %1810  ;;  %v5682_v24 = vld [vmem:[#allocation4 + $0x90] sm:$0xff]  }
 0x2e9   :  { %v1218_v59 = vpack.c.bf16 %v1211_v55, %v1210_v16  ;;  %8231 = vst [vmem:[#allocation43_spill] sm:$0xff] %v6688_v13  ;;  %8232 = vst [vmem:[#allocation44_spill] sm:$0xff] %v6692_v21  ;;  %v6694_v25 = vld [vmem:[#allocation2 + $0x19] sm:$0xff]  ;;  %v6696_v0 = vld [vmem:[#allocation2 + $0x21] sm:$0xff]  ;;  %v1480_v29 = vmul.f32 %v6612_v4, %v6688_v13  ;;  %v6720_v43 = vmul.f32 %v1811_v63, %v1764_v22  ;;  %5132 = vmatprep.subr.bf16.mxu1 %v5682_v24 }
 0x2ea   :  { %v1307_v60 = vpack.c.bf16 %v1300_v44, %v1299_v9  ;;  %v6700_v2 = vld [vmem:[#allocation2 + $0x1f] sm:$0xff]  ;;  %v6704_v15 = vld [vmem:[#allocation2 + $0x27] sm:$0xff]  ;;  %v6706_v33 = vld [vmem:[#allocation2 + $0xf] sm:$0xff]  ;;  %5133 = vmatpush3.bf16.msra.mxu1 %v5683_v11  ;;  %v1806_v11 = vpop.permute.xlu1 %1805 }
 0x2eb   :  { %1226 = vrot.lane.b32.xlu1 %v1218_v59, %s5866_s10  ;;  %v6708_v3 = vld [vmem:[#allocation2 + $0x17] sm:$0xff]  ;;  %v6712_v17 = vld [vmem:[#allocation2 + $0x2f] sm:$0xff]  ;;  %v6714_v16 = vld [vmem:[#allocation2 + $0x40] sm:$0xff]  ;;  %v1486_v4 = vpack.c.bf16 %v1480_v29, %v1479_v27  ;;  %v1141_v59 = vmul.f32 %v6621_v41, %v6700_v2  ;;  %v1142_v20 = vmul.f32 %v6629_v23, %v6704_v15  ;;  %v1139_v27 = vmul.f32 %v6623_v58, %v6706_v33 }
 0x2ec   :  { %v6716_v55 = vld [vmem:[#allocation2 + $0x31] sm:$0xff]  ;;  %v6722_v9 = vld [vmem:[#allocation2 + $0x41] sm:$0xff]  ;;  %v1813_v41 = vmul.f32 %v6633_v56, %v6694_v25  ;;  %v6738_v63 = vld [vmem:[#allocation2 + $0x29] sm:$0xff]  ;;  %v1482_v29 = vmul.f32 %v6625_v49, %v6692_v21  ;;  %v1140_v45 = vmul.f32 %v6627_v53, %v6708_v3  ;;  %v1814_v23 = vmul.f32 %v6637_v14, %v6696_v0 }
 0x2ed   :  { %v6724_v44 = vld [vmem:[#allocation2 + $0x30] sm:$0xff]  ;;  %v6736_v22 = vld [vmem:[#allocation2 + $0x3f] sm:$0xff]  ;;  %1490 = vst.msk [vmem:[#allocation3 + $0x48] sm:$0xff] %vm968_vm11, %v1486_v4  ;;  %v1143_v58 = vmul.f32 %v6631_v18, %v6712_v17  ;;  %v1146_v26 = vpack.c.bf16 %v1139_v27, %v1138_v10  ;;  %v1816_v4 = vmul.f32 %v6648_v61, %v6716_v55  ;;  %v1477_v49 = vmul.f32 %v6635_v54, %v1155_v30  ;;  %v5689_v27 = vld [vmem:[#allocation4 + $0x68] sm:$0xff]  }
 0x2ee   :  { %v6749_v56 = vld [vmem:[#allocation2 + $0x37] sm:$0xff]  ;;  %v1483_v53 = vmul.f32 %v6659_v34, %v6714_v16  ;;  %v1147_v14 = vpack.c.bf16 %v1141_v59, %v1140_v45  ;;  %v1821_v42 = vpack.c.bf16 %v1814_v23, %v1813_v41  ;;  %v1481_v18 = vmul.f32 %v6642_v19, %v6724_v44  ;;  %v6760_v12 = vld [vmem:[#allocation2 + $0x49] sm:$0xff]  ;;  %v5687_v59 = vld [vmem:[#allocation4 + $0x60] sm:$0xff]  }
 0x2ef   :  { %1315 = vrot.lane.b32.xlu1 %v1307_v60, %s5851_s25  ;;  %v6726_v60 = vld [vmem:[#allocation2 + $0x48] sm:$0xff]  ;;  %v6751_v24 = vld [vmem:[#allocation2 + $0x39] sm:$0xff]  ;;  %v1148_v50 = vpack.c.bf16 %v1143_v58, %v1142_v20  ;;  %1150 = vst.msk [vmem:[#allocation3] sm:$0xff] %vm968_vm11, %v1146_v26  ;;  %v1485_v10 = vpack.c.bf16 %v1478_v28, %v1477_v49  ;;  %v1144_v54 = vmul.f32 %v6671_v31, %v6749_v56 }
 0x2f0   :  { %v5684_v21 = vld [vmem:[#allocation4 + $0x98] sm:$0xff]   ;;  %v1484_v61 = vmul.f32 %v6726_v60, %v6657_v39  ;;  %v1145_v34 = vmul.f32 %v6736_v22, %v6678_v38  ;;  %1151 = vst.msk [vmem:[#allocation3 + $0x40] sm:$0xff] %vm968_vm11, %v1147_v14  ;;  %1825 = vst.msk [vmem:[#allocation3 + $0x10] sm:$0xff] %vm968_vm11, %v1821_v42  ;;  %v1487_v19 = vpack.c.bf16 %v1482_v29, %v1481_v18  ;;  %v8233_v29 = vld [vmem:[#allocation11_spill] sm:$0xff] }
 0x2f1   :  { %v5685_v13 = vld [vmem:[#allocation4 + $0x58] sm:$0xff]   ;;  %5134 = vmatprep.subr.bf16.mxu1 %v5684_v21  ;;  %1152 = vst.msk [vmem:[#allocation3 + $0x80] sm:$0xff] %vm968_vm11, %v1148_v50  ;;  %v1815_v26 = vmul.f32 %v6669_v37, %v6738_v63  ;;  %v1818_v30 = vmul.f32 %v1801_v5, %v6722_v9  ;;  %v1817_v31 = vmul.f32 %v6676_v7, %v6751_v24  ;;  %1489 = vst.msk [vmem:[#allocation3 + $0x8] sm:$0xff] %vm968_vm11, %v1485_v10  ;;  %v5686_v50 = vld [vmem:[#allocation4 + $0xa0] sm:$0xff]  }
 0x2f2   :  { %5135 = vmatpush3.bf16.msra.mxu1 %v5685_v13  ;;  %v1488_v39 = vpack.c.bf16 %v1484_v61, %v1483_v53  ;;  %v1149_v38 = vpack.c.bf16 %v1145_v34, %v1144_v54  ;;  %v1819_v21 = vmul.f32 %v1806_v11, %v6760_v12  ;;  %v1549_v42 = vmul.f32 %v6512_v35, %v6680_v47  ;;  %v8235_v58 = vld [vmem:[#allocation28_spill] sm:$0xff]  ;;  %v8236_v53 = vld [vmem:[#allocation43_spill] sm:$0xff]  ;;  %v8237_v14 = vld [vmem:[#allocation13_spill] sm:$0xff] }
 0x2f3   :  { %1491 = vst.msk [vmem:[#allocation3 + $0x88] sm:$0xff] %vm968_vm11, %v1487_v19  ;;  %v1822_v37 = vpack.c.bf16 %v1816_v4, %v1815_v26  ;;  %v1823_v28 = vpack.c.bf16 %v1818_v30, %v1817_v31  ;;  %v1550_v5 = vmul.f32 %v6433_v48, %v6694_v25  ;;  %v1388_v13 = vmul.f32 %v6459_v52, %v6706_v33  ;;  %v5688_v33 = vld [vmem:[#allocation4 + $0xa8] sm:$0xff]   ;;  %v8238_v11 = vld [vmem:[#allocation40_spill] sm:$0xff] }
 0x2f4   :  { %1492 = vst.msk [vmem:[#allocation3 + $0xc8] sm:$0xff] %vm968_vm11, %v1488_v39  ;;  %1153 = vst.msk [vmem:[#allocation3 + $0xc0] sm:$0xff] %vm968_vm11, %v1149_v38  ;;  %v1824_v7 = vpack.c.bf16 %v6720_v43, %v1819_v21  ;;  %v1389_v35 = vmul.f32 %v6462_v36, %v6708_v3  ;;  %5136 = vmatprep.subr.bf16.mxu1 %v5686_v50  ;;  %v1637_v48 = vmul.f32 %v6442_v46, %v6708_v3  ;;  %v8240_v34 = vld [vmem:[#allocation12_spill] sm:$0xff]  ;;  %v8241_v30 = vld [vmem:[#allocation23_spill] sm:$0xff] }
 0x2f5   :  { %1826 = vst.msk [vmem:[#allocation3 + $0x50] sm:$0xff] %vm968_vm11, %v1822_v37  ;;  %1827 = vst.msk [vmem:[#allocation3 + $0x90] sm:$0xff] %vm968_vm11, %v1823_v28  ;;  %v1557_v47 = vpack.c.bf16 %v1550_v5, %v1549_v42  ;;  %v1638_v20 = vmul.f32 %v6446_v62, %v6700_v2  ;;  %v1551_v52 = vmul.f32 %v6516_v32, %v6696_v0  ;;  %v8242_v39 = vld [vmem:[#allocation16_spill] sm:$0xff]  ;;  %v8245_v28 = vld [vmem:[#allocation18_spill] sm:$0xff] }
 0x2f6   :  { %5137 = vmatpush3.bf16.msra.mxu1 %v5687_v59  ;;  %1828 = vst.msk [vmem:[#allocation3 + $0xd0] sm:$0xff] %vm968_vm11, %v1824_v7  ;;  %v1396_v43 = vpack.c.bf16 %v1389_v35, %v1388_v13  ;;  %v1552_v36 = vmul.f32 %v6466_v6, %v6738_v63  ;;  %v1725_v46 = vmul.f32 %v6454_v51, %v6690_v57  ;;  %v8234_v51 = vld [vmem:[#allocation10_spill] sm:$0xff]  ;;  %v8246_v7 = vld [vmem:[#allocation19_spill] sm:$0xff]  ;;  %v8247_v35 = vld [vmem:[#allocation17_spill] sm:$0xff] }
 0x2f7   :  { %1565 = vrot.lane.b32.xlu0 %v1557_v47, %s5866_s10  ;;  %v1867_v41 = vld [vmem:[#allocation3 + $0x10] sm:$0xff]  ;;  %v1726_v62 = vmul.f32 %v6564_v40, %v6682_v1  ;;  %v1645_v3 = vpack.c.bf16 %v1638_v20, %v1637_v48  ;;  %v1639_v6 = vmul.f32 %v6475_v8, %v6704_v15  ;;  %v1640_v45 = vmul.f32 %v8233_v29, %v6712_v17  ;;  %v8248_v48 = vld [vmem:[#allocation30_spill] sm:$0xff] }
 0x2f8   :  { %1404 = vrot.lane.b32.xlu1 %v1396_v43, %s5870_s0  ;;  %5445 = vmatprep.mubr.msk.bf16.mxu0 %vm968_vm11, %v1867_v41  ;;  %v1558_v32 = vpack.c.bf16 %v1552_v36, %v1551_v52  ;;  %v1212_v40 = vmul.f32 %v8234_v51, %v6690_v57  ;;  %v1213_v4 = vmul.f32 %v8235_v58, %v6682_v1  ;;  %v8239_v1 = vld [vmem:[#allocation35_spill] sm:$0xff]  ;;  %v8249_v43 = vld [vmem:[#allocation44_spill] sm:$0xff]  ;;  %v8251_v36 = vld [vmem:[#allocation41_spill] sm:$0xff] }
 0x2f9   :  { %5138 = vmatprep.subr.bf16.mxu1 %v5688_v33  ;;  %v1733_v49 = vpack.c.bf16 %v1726_v62, %v1725_v46  ;;  %v1727_v18 = vmul.f32 %v8237_v14, %v8236_v53  ;;  %v1728_v10 = vmul.f32 %v8238_v11, %v6724_v44  ;;  %v1646_v54 = vpack.c.bf16 %v1640_v45, %v1639_v6  ;;  %v8252_v46 = vld [vmem:[#allocation37_spill] sm:$0xff]  ;;  %v8255_v45 = vld [vmem:[#allocation26_spill] sm:$0xff]  ;;  %v8259_v14 = vld [vmem:[#allocation31_spill] sm:$0xff] }
 0x2fa   :  { %5139 = vmatpush3.bf16.msra.mxu1 %v5689_v27  ;;  %v1219_v57 = vpack.c.bf16 %v1213_v4, %v1212_v40  ;;  %v1301_v61 = vmul.f32 %v8239_v1, %v6694_v25  ;;  %v1302_v19 = vmul.f32 %v8240_v34, %v6696_v0  ;;  %v1553_v31 = vmul.f32 %v8241_v30, %v6716_v55  ;;  %v8243_v25 = vld [vmem:[#allocation14_spill] sm:$0xff]  ;;  %v8244_v0 = vld [vmem:[#allocation15_spill] sm:$0xff]  ;;  %v8254_v6 = vld [vmem:[#allocation25_spill] sm:$0xff] }
 0x2fb   :  { %1653 = vrot.lane.b32.xlu0 %v1645_v3, %s5851_s25  ;;  %v1734_v26 = vpack.c.bf16 %v1728_v10, %v1727_v18  ;;  %v1554_v38 = vmul.f32 %v8242_v39, %v6751_v24  ;;  %v1390_v50 = vmul.f32 %v8243_v25, %v6700_v2  ;;  %v1391_v59 = vmul.f32 %v8244_v0, %v6704_v15  ;;  %v8250_v15 = vld [vmem:[#allocation21_spill] sm:$0xff]  ;;  %v8253_v3 = vld [vmem:[#allocation20_spill] sm:$0xff]  ;;  %v1587_v51 = vld [vmem:[#allocation2 + $0x47] sm:$0xff] }
 0x2fc   :  { %v1870_v23 = vld [vmem:[#allocation3 + $0x50] sm:$0xff]  ;;  %1567 = vrot.lane.b32.xlu1 %v1558_v32, %s5866_s10  ;;  %v1308_v42 = vpack.c.bf16 %v1302_v19, %v1301_v61  ;;  %v1641_v5 = vmul.f32 %v8245_v28, %v6749_v56  ;;  %v1642_v13 = vmul.f32 %v8246_v7, %v6736_v22  ;;  %v1214_v47 = vmul.f32 %v8247_v35, %v8236_v53  ;;  %v8256_v4 = vld [vmem:[#allocation22_spill] sm:$0xff]  ;;  %v8264_v30 = vld [vmem:[#allocation33_spill] sm:$0xff] }
 0x2fd   :  { %5446 = vmatmul.mubr.msk.bf16.vlgmr.msra.gmra.mrb[8].mxu0 %vm968_vm11, %v1870_v23  ;;  %v1873_v8 = vld [vmem:[#allocation3 + $0x90] sm:$0xff]  ;;  %v1559_v37 = vpack.c.bf16 %v1554_v38, %v1553_v31  ;;  %v1215_v2 = vmul.f32 %v8248_v48, %v6724_v44  ;;  %v1397_v20 = vpack.c.bf16 %v1391_v59, %v1390_v50  ;;  %v1729_v52 = vmul.f32 %v8250_v15, %v8249_v43  ;;  %v8262_v61 = vld [vmem:[#allocation34_spill] sm:$0xff]  ;;  %v6919_v28 = vld [vmem:[%s8164_s2 + $0x18] sm:$0xff] }
 0x2fe   :  { %5449 = vmatprep.mubr.msk.bf16.mxu0 %vm968_vm11, %v1873_v8  ;;  %v1876_v21 = vld [vmem:[#allocation3 + $0xd0] sm:$0xff]  ;;  %v1730_v33 = vmul.f32 %v8251_v36, %v6714_v16  ;;  %v1647_v27 = vpack.c.bf16 %v1642_v13, %v1641_v5  ;;  %v1303_v62 = vmul.f32 %v8252_v46, %v6738_v63  ;;  %v1304_v32 = vmul.f32 %v8253_v3, %v6716_v55  ;;  %v8258_v8 = vld [vmem:[#allocation29_spill] sm:$0xff]  ;;  %v8263_v19 = vld [vmem:[#allocation42_spill] sm:$0xff] }
 0x2ff   :  { %1741 = vrot.lane.b32.xlu0 %v1733_v49, %s5870_s0  ;;  %v1220_v41 = vpack.c.bf16 %v1215_v2, %v1214_v47  ;;  %v1555_v29 = vmul.f32 %v8254_v6, %v6722_v9  ;;  %v1556_v23 = vmul.f32 %v6760_v12, %v8255_v45  ;;  %v1588_v40 = vld [vmem:[#allocation2 + $0x4f] sm:$0xff]  ;;  %v1392_v63 = vmul.f32 %v8256_v4, %v6712_v17  ;;  %v5799_v34 = vld [vmem:[#allocation2] sm:$0xff]  ;;  %v6945_v35 = vld [vmem:[%s8164_s2 + $0x38] sm:$0xff] }
 0x300   :  { %1655 = vrot.lane.b32.xlu1 %v1646_v54, %s5851_s25  ;;  %v1735_v44 = vpack.c.bf16 %v1730_v33, %v1729_v52  ;;  %v1309_v58 = vpack.c.bf16 %v1304_v32, %v1303_v62  ;;  %v8257_v49 = vld [vmem:[#allocation24_spill] sm:$0xff]  ;;  %v1643_v53 = vmul.f32 %v8258_v8, %v1587_v51  ;;  %v1644_v18 = vmul.f32 %v8259_v14, %v1588_v40  ;;  %v8260_v12 = vld [vmem:[#allocation27_spill] sm:$0xff]  ;;  %v8267_v25 = vld [vmem:[#allocation38_spill] sm:$0xff] }
 0x301   :  { %v1393_v55 = vmul.f32 %v8257_v49, %v6749_v56  ;;  %v1560_v11 = vpack.c.bf16 %v1556_v23, %v1555_v29  ;;  %v1216_v10 = vmul.f32 %v8260_v12, %v8249_v43  ;;  %v8261_v54 = vld [vmem:[#allocation32_spill] sm:$0xff]  ;;  %v1731_v56 = vmul.f32 %v8262_v61, %v6726_v60  ;;  %v8265_v38 = vld [vmem:[#allocation39_spill] sm:$0xff]  ;;  %v6897_v59 = vld [vmem:[%s8164_s2] sm:$0xff] }
 0x302   :  { %v1648_v17 = vpack.c.bf16 %v1644_v18, %v1643_v53  ;;  %v1306_v31 = vmul.f32 %v8264_v30, %v6722_v9  ;;  %v8266_v60 = vld [vmem:[#allocation36_spill] sm:$0xff]  ;;  %v1395_v50 = vmul.f32 %v1587_v51, %v8267_v25  ;;  %v8269_v5 = vmov 3   ;;  %v6927_v7 = vld [vmem:[%s8164_s2 + $0x28] sm:$0xff]  ;;  %v6937_v13 = vld [vmem:[%s8164_s2 + $0x20] sm:$0xff] }
 0x303   :  { %1228 = vrot.lane.b32.xlu0 %v1219_v57, %s5866_s10  ;;  %v1217_v57 = vmul.f32 %v8261_v54, %v6714_v16  ;;  %v1398_v1 = vpack.c.bf16 %v1393_v55, %v1392_v63  ;;  %v8270_v47 = vmov 7   ;;  %v8271_v48 = vmov 5   ;;  %v6963_v2 = vld [vmem:[%s8164_s2 + $0x30] sm:$0xff] }
 0x304   :  { %1743 = vrot.lane.b32.xlu1 %v1734_v26, %s5870_s0  ;;  %v1732_v26 = vmul.f32 %v5799_v34, %v8263_v19  ;;  %v8273_v52 = vmov 0   ;;  %v8274_v46 = vmov 4   ;;  %v8275_v40 = vmov 6  }
 0x305   :  { %5450 = vmatmul.mubr.msk.bf16.gmra.mrb[12].mxu0 %vm968_vm11, %v1876_v21  ;;  %v1221_v39 = vpack.c.bf16 %v1217_v57, %v1216_v10  ;;  %v1305_v21 = vmul.f32 %v8265_v38, %v6751_v24  ;;  %v8268_v24 = vmov 1   ;;  %v8276_v12 = vmov 8  }
 0x306   :  { %v1736_v16 = vpack.c.bf16 %v1732_v26, %v1731_v56 }
 0x307   :  { %1317 = vrot.lane.b32.xlu0 %v1308_v42, %s5851_s25  ;;  %v1394_v42 = vmul.f32 %v8266_v60, %v6736_v22  ;;  %v1310_v0 = vpack.c.bf16 %v1306_v31, %v1305_v21  ;;  %v6907_v22 = vld [vmem:[%s8164_s2 + $0x8] sm:$0xff] }
 0x308   :  { %1569 = vrot.lane.b32.xlu1 %v1559_v37, %s5866_s10  ;;  %v6914_v37 = vld [vmem:[%s8164_s2 + $0x10] sm:$0xff] }
 0x309   :  { %v1399_v9 = vpack.c.bf16 %v1395_v50, %v1394_v42 }
 0x30b   :  { %1406 = vrot.lane.b32.xlu0 %v1397_v20, %s5870_s0  ;;  %v8272_v20 = vmov 2  }
 0x30c   :  { %1657 = vrot.lane.b32.xlu1 %v1647_v27, %s5851_s25 }
 0x30f   :  { %1230 = vrot.lane.b32.xlu0 %v1220_v41, %s5866_s10 }
 0x310   :  { %1745 = vrot.lane.b32.xlu1 %v1735_v44, %s5870_s0 }
 0x313   :  { %1319 = vrot.lane.b32.xlu0 %v1309_v58, %s5851_s25 }
 0x314   :  { %1571 = vrot.lane.b32.xlu1 %v1560_v11, %s5866_s10 }
 0x317   :  { %1408 = vrot.lane.b32.xlu0 %v1398_v1, %s5870_s0 }
 0x318   :  { %1659 = vrot.lane.b32.xlu1 %v1648_v17, %s5851_s25 }
 0x31b   :  { %1232 = vrot.lane.b32.xlu0 %v1221_v39, %s5866_s10 }
 0x31c   :  { %1747 = vrot.lane.b32.xlu1 %v1736_v16, %s5870_s0 }
 0x31f   :  { %1321 = vrot.lane.b32.xlu0 %v1310_v0, %s5851_s25 }
 0x320   :  { %2491 = vperm.xlu1 %5582, %v6897_v59  }
 0x323   :  { %1410 = vrot.lane.b32.xlu0 %v1399_v9, %s5870_s0 }
 0x324   :  { %5584 = vset.pattern.permute.xlu1 %v8268_v24 }
 0x325   :  { %2330 = vperm.xlu1 %5584, %v6897_v59  }
 0x327   :  { %2496 = vperm.xlu0 %5583, %v6907_v22  }
 0x329   :  { %2335 = vperm.xlu1 %5584, %v6907_v22  }
 0x32b   :  { %2501 = vperm.xlu0 %5583, %v6914_v37  }
 0x32d   :  { %5585 = vset.pattern.permute.xlu1 %v8269_v5 }
 0x32e   :  { %2506 = vperm.xlu1 %5585, %v6919_v28  }
 0x32f   :  { %2516 = vperm.xlu0 %5583, %v6927_v7  }
 0x332   :  { %5586 = vset.pattern.permute.xlu1 %v8268_v24 }
 0x333   :  { %2345 = vperm.xlu1 %5586, %v6919_v28   ;;  %5588 = vset.pattern.permute.xlu0 %v8268_v24 }
 0x334   :  { %2340 = vperm.xlu0 %5588, %v6914_v37  }
 0x337   :  { %5587 = vset.pattern.permute.xlu1 %v8269_v5 }
 0x338   :  { %2511 = vperm.xlu1 %5587, %v6937_v13   ;;  %2350 = vperm.xlu0 %5588, %v6937_v13  }
 0x33c   :  { %5589 = vset.pattern.permute.xlu1 %v8270_v47  ;;  %2365 = vperm.xlu0 %5588, %v6945_v35  }
 0x33d   :  { %2811 = vperm.xlu1 %5589, %v6897_v59  }
 0x340   :  { %5595 = vset.pattern.permute.xlu0 %v8270_v47 }
 0x341   :  { %2816 = vperm.xlu1 %5589, %v6907_v22   ;;  %2821 = vperm.xlu0 %5595, %v6914_v37  }
 0x345   :  { %5590 = vset.pattern.permute.xlu1 %v8268_v24  ;;  %2831 = vperm.xlu0 %5595, %v6937_v13  }
 0x346   :  { %2355 = vperm.xlu1 %5590, %v6927_v7  }
 0x349   :  { %5597 = vset.pattern.permute.xlu0 %v8271_v48 }
 0x34a   :  { %5591 = vset.pattern.permute.xlu1 %v8271_v48  ;;  %2656 = vperm.xlu0 %5597, %v6907_v22  }
 0x34b   :  { %2651 = vperm.xlu1 %5591, %v6897_v59  }
 0x34e   :  { %2676 = vperm.xlu0 %5597, %v6927_v7  }
 0x34f   :  { %5592 = vset.pattern.permute.xlu1 %v8269_v5 }
 0x350   :  { %2521 = vperm.xlu1 %5592, %v6963_v2  }
 0x352   :  { %2681 = vperm.xlu0 %5597, %v6963_v2  }
 0x354   :  { %2526 = vperm.xlu1 %5592, %v6945_v35  }
 0x356   :  { %5602 = vset.pattern.permute.xlu0 %v8272_v20 }
 0x357   :  { %2419 = vperm.xlu0 %5602, %v6897_v59  }
 0x358   :  { %5593 = vset.pattern.permute.xlu1 %v8270_v47 }
 0x359   :  { %2826 = vperm.xlu1 %5593, %v6919_v28  }
 0x35b   :  { %2439 = vperm.xlu0 %5602, %v6937_v13  }
 0x35d   :  { %v1227_v43 = vpop.permute.xlu1 %1226  ;;  %5594 = vset.pattern.permute.xlu1 %v8268_v24 }
 0x35e   :  { %1239 = vst.msk [vmem:[#allocation3] sm:$0xff] %vm1238_vm12, %v1227_v43  ;;  %2360 = vperm.xlu1 %5594, %v6963_v2  }
 0x35f   :  { %2454 = vperm.xlu0 %5602, %v6945_v35  }
 0x361   :  { %v1316_v15 = vpop.permute.xlu1 %1315 }
 0x362   :  { %1328 = vst.msk [vmem:[#allocation3] sm:$0xff] %vm1327_vm13, %v1316_v15  ;;  %5596 = vset.pattern.permute.xlu1 %v8271_v48 }
 0x363   :  { %2661 = vperm.xlu1 %5596, %v6914_v37   ;;  %5612 = vset.pattern.permute.xlu0 %v8273_v52 }
 0x364   :  { %2263 = vperm.xlu0 %5612, %v6907_v22  }
 0x367   :  { %2666 = vperm.xlu1 %5596, %v6919_v28  }
 0x368   :  { %2268 = vperm.xlu0 %5612, %v6914_v37  }
 0x369   :  { %v1566_v36 = vpop.permute.xlu0 %1565 }
 0x36a   :  { %1577 = vst.msk [vmem:[#allocation3 + $0x8] sm:$0xff] %vm1238_vm12, %v1566_v36  ;;  %v1405_v33 = vpop.permute.xlu1 %1404 }
 0x36b   :  { %1417 = vst.msk [vmem:[#allocation3] sm:$0xff] %vm1416_vm14, %v1405_v33  ;;  %5598 = vset.pattern.permute.xlu1 %v8270_v47 }
 0x36c   :  { %2836 = vperm.xlu1 %5598, %v6927_v7   ;;  %2288 = vperm.xlu0 %5612, %v6963_v2  }
 0x36d   :  { %v1654_v27 = vpop.permute.xlu0 %1653 }
 0x36e   :  { %1665 = vst.msk [vmem:[#allocation3 + $0x8] sm:$0xff] %vm1327_vm13, %v1654_v27  ;;  %v1568_v41 = vpop.permute.xlu1 %1567 }
 0x36f   :  { %1578 = vst.msk [vmem:[#allocation3 + $0x48] sm:$0xff] %vm1238_vm12, %v1568_v41 }
 0x370   :  { %5599 = vset.pattern.permute.xlu1 %v8271_v48  ;;  %5614 = vset.pattern.permute.xlu0 %v8274_v46 }
 0x371   :  { %v1742_v62 = vpop.permute.xlu0 %1741  ;;  %2671 = vperm.xlu1 %5599, %v6937_v13   ;;  %2579 = vperm.xlu0 %5614, %v6897_v59  }
 0x372   :  { %1753 = vst.msk [vmem:[#allocation3 + $0x8] sm:$0xff] %vm1416_vm14, %v1742_v62  ;;  %v1656_v3 = vpop.permute.xlu1 %1655  ;;  %v1865_v6 = vld [vmem:[#allocation3] sm:$0xff] }
 0x373   :  { %1666 = vst.msk [vmem:[#allocation3 + $0x48] sm:$0xff] %vm1327_vm13, %v1656_v3 }
 0x375   :  { %v1229_v32 = vpop.permute.xlu0 %1228  ;;  %5600 = vset.pattern.permute.xlu1 %v8270_v47  ;;  %2594 = vperm.xlu0 %5614, %v6919_v28  }
 0x376   :  { %1240 = vst.msk [vmem:[#allocation3 + $0x40] sm:$0xff] %vm1238_vm12, %v1229_v32  ;;  %v1744_v44 = vpop.permute.xlu1 %1743  ;;  %2841 = vperm.xlu1 %5600, %v6963_v2  }
 0x377   :  { %1754 = vst.msk [vmem:[#allocation3 + $0x48] sm:$0xff] %vm1416_vm14, %v1744_v44 }
 0x379   :  { %v1318_v29 = vpop.permute.xlu0 %1317  ;;  %v1866_v45 = vld [vmem:[#allocation3 + $0x8] sm:$0xff]  ;;  %2604 = vperm.xlu0 %5614, %v6927_v7  }
 0x37a   :  { %1329 = vst.msk [vmem:[#allocation3 + $0x40] sm:$0xff] %vm1327_vm13, %v1318_v29  ;;  %2029 = vmatprep.mubr.bf16.mxu1 %v1866_v45  ;;  %v1570_v23 = vpop.permute.xlu1 %1569  ;;  %2846 = vperm.xlu1 %5600, %v6945_v35  }
 0x37b   :  { %2030 = vmatmul.mubr.bf16.vlgmr.msra.gmra.mrb[0].mxu1 %v1865_v6  ;;  %1579 = vst.msk [vmem:[#allocation3 + $0x88] sm:$0xff] %vm1238_vm12, %v1570_v23 }
 0x37d   :  { %v1407_v51 = vpop.permute.xlu0 %1406  ;;  %5619 = vset.pattern.permute.xlu0 %v8275_v40 }
 0x37e   :  { %1418 = vst.msk [vmem:[#allocation3 + $0x40] sm:$0xff] %vm1416_vm14, %v1407_v51  ;;  %v1658_v58 = vpop.permute.xlu1 %1657  ;;  %v1869_v4 = vld [vmem:[#allocation3 + $0x48] sm:$0xff]  ;;  %5601 = vset.pattern.permute.xlu1 %v8271_v48  ;;  %2744 = vperm.xlu0 %5619, %v6907_v22  }
 0x37f   :  { %1667 = vst.msk [vmem:[#allocation3 + $0x88] sm:$0xff] %vm1327_vm13, %v1658_v58  ;;  %2037 = vmatprep.mubr.bf16.mxu1 %v1869_v4  ;;  %2686 = vperm.xlu1 %5601, %v6945_v35  }
 0x381   :  { %v1231_v63 = vpop.permute.xlu0 %1230 }
 0x382   :  { %1241 = vst.msk [vmem:[#allocation3 + $0x80] sm:$0xff] %vm1238_vm12, %v1231_v63  ;;  %v1746_v49 = vpop.permute.xlu1 %1745  ;;  %2759 = vperm.xlu0 %5619, %v6937_v13  }
 0x383   :  { %1755 = vst.msk [vmem:[#allocation3 + $0x88] sm:$0xff] %vm1416_vm14, %v1746_v49  ;;  %5603 = vset.pattern.permute.xlu1 %v8272_v20 }
 0x384   :  { %2424 = vperm.xlu1 %5603, %v6907_v22  }
 0x385   :  { %v1320_v55 = vpop.permute.xlu0 %1319  ;;  %v1868_v8 = vld [vmem:[#allocation3 + $0x40] sm:$0xff] }
 0x386   :  { %1330 = vst.msk [vmem:[#allocation3 + $0x80] sm:$0xff] %vm1327_vm13, %v1320_v55  ;;  %2038 = vmatmul.mubr.bf16.gmra.mrb[4].mxu1 %v1868_v8  ;;  %v1572_v53 = vpop.permute.xlu1 %1571  ;;  %2774 = vperm.xlu0 %5619, %v6945_v35  }
 0x387   :  { %1580 = vst.msk [vmem:[#allocation3 + $0xc8] sm:$0xff] %vm1238_vm12, %v1572_v53 }
 0x388   :  { %5604 = vset.pattern.permute.xlu1 %v8273_v52 }
 0x389   :  { %v1409_v14 = vpop.permute.xlu0 %1408  ;;  %2258 = vperm.xlu1 %5604, %v6897_v59  }
 0x38a   :  { %1419 = vst.msk [vmem:[#allocation3 + $0x80] sm:$0xff] %vm1416_vm14, %v1409_v14  ;;  %v1660_v18 = vpop.permute.xlu1 %1659  ;;  %v1872_v11 = vld [vmem:[#allocation3 + $0x88] sm:$0xff]  ;;  %5622 = vset.pattern.permute.xlu0 %v8276_v12 }
 0x38b   :  { %1668 = vst.msk [vmem:[#allocation3 + $0xc8] sm:$0xff] %vm1327_vm13, %v1660_v18  ;;  %2045 = vmatprep.mubr.bf16.mxu1 %v1872_v11 }
 0x38d   :  { %v1233_v10 = vpop.permute.xlu0 %1232  ;;  %5605 = vset.pattern.permute.xlu1 %v8272_v20 }
 0x38e   :  { %1242 = vst.msk [vmem:[#allocation3 + $0xc0] sm:$0xff] %vm1238_vm12, %v1233_v10  ;;  %v1748_v54 = vpop.permute.xlu1 %1747  ;;  %2429 = vperm.xlu1 %5605, %v6914_v37  }
 0x38f   :  { %1756 = vst.msk [vmem:[#allocation3 + $0xc8] sm:$0xff] %vm1416_vm14, %v1748_v54 }
 0x391   :  { %v1322_v57 = vpop.permute.xlu0 %1321  ;;  %v1871_v1 = vld [vmem:[#allocation3 + $0x80] sm:$0xff] }
 0x392   :  { %1331 = vst.msk [vmem:[#allocation3 + $0xc0] sm:$0xff] %vm1327_vm13, %v1322_v57  ;;  %2046 = vmatmul.mubr.bf16.gmra.mrb[8].mxu1 %v1871_v1  ;;  %2434 = vperm.xlu1 %5605, %v6919_v28  }
 0x395   :  { %v1411_v17 = vpop.permute.xlu0 %1410 }
 0x396   :  { %1420 = vst.msk [vmem:[#allocation3 + $0xc0] sm:$0xff] %vm1416_vm14, %v1411_v17  ;;  %v1875_v61 = vld [vmem:[#allocation3 + $0xc8] sm:$0xff]  ;;  %5606 = vset.pattern.permute.xlu1 %v8273_v52 }
 0x397   :  { %2053 = vmatprep.mubr.bf16.mxu1 %v1875_v61  ;;  %2273 = vperm.xlu1 %5606, %v6919_v28  }
 0x39b   :  { %5607 = vset.pattern.permute.xlu1 %v8272_v20 }
 0x39c   :  { %2444 = vperm.xlu1 %5607, %v6927_v7  }
 0x39d   :  { %v1874_v56 = vld [vmem:[#allocation3 + $0xc0] sm:$0xff] }
 0x39e   :  { %2054 = vmatmul.mubr.bf16.gmra.mrb[12].mxu1 %v1874_v56 }
 0x39f   :  { %v7062_v31 = vpop.permute.xlu1 %2491 }
 0x3a0   :  { %5608 = vset.pattern.permute.xlu1 %v8275_v40 }
 0x3a1   :  { %2739 = vperm.xlu1 %5608, %v6897_v59  }
 0x3a4   :  { %v7073_v60 = vpop.permute.xlu1 %2330 }
 0x3a5   :  { %5609 = vset.pattern.permute.xlu1 %v8273_v52 }
 0x3a6   :  { %2278 = vperm.xlu1 %5609, %v6937_v13   ;;  %v7123_v62 = vpop.permute.xlu0 %2496 }
 0x3a8   :  { %v7077_v42 = vpop.permute.xlu1 %2335 }
 0x3aa   :  { %2283 = vperm.xlu1 %5609, %v6927_v7   ;;  %v7133_v23 = vpop.permute.xlu0 %2501 }
 0x3ad   :  { %v7082_v25 = vpop.permute.xlu1 %2506 }
 0x3ae   :  { %5610 = vset.pattern.permute.xlu1 %v8274_v46  ;;  %v7144_v14 = vpop.permute.xlu0 %2516 }
 0x3af   :  { %2584 = vperm.xlu1 %5610, %v6907_v22  }
 0x3b2   :  { %v7085_v50 = vpop.permute.xlu1 %2345 }
 0x3b3   :  { %5611 = vset.pattern.permute.xlu1 %v8272_v20  ;;  %v7150_v57 = vpop.permute.xlu0 %2340 }
 0x3b4   :  { %2449 = vperm.xlu1 %5611, %v6963_v2  }
 0x3b7   :  { %v7089_v0 = vpop.permute.xlu1 %2511 }
 0x3b8   :  { %5613 = vset.pattern.permute.xlu1 %v8275_v40 }
 0x3b9   :  { %2749 = vperm.xlu1 %5613, %v6914_v37  }
 0x3bd   :  { %2754 = vperm.xlu1 %5613, %v6919_v28  }
 0x3c1   :  { %5615 = vset.pattern.permute.xlu1 %v8273_v52 }
 0x3c2   :  { %2293 = vperm.xlu1 %5615, %v6945_v35  }
 0x3c6   :  { %5616 = vset.pattern.permute.xlu1 %v8274_v46 }
 0x3c7   :  { %2589 = vperm.xlu1 %5616, %v6914_v37  }
 0x3cb   :  { %5617 = vset.pattern.permute.xlu1 %v8275_v40 }
 0x3cc   :  { %2764 = vperm.xlu1 %5617, %v6927_v7  }
 0x3d0   :  { %v7056_v34 = vpop.f32.mrb[8].mxu0  ;;  %5618 = vset.pattern.permute.xlu1 %v8274_v46 }
 0x3d1   :  { %v2096_v19 = vpop.f32.mrb[9].mxu0  ;;  %2599 = vperm.xlu1 %5618, %v6937_v13  }
 0x3d2   :  { %v5448_v26 = vpop.f32.mrb[10].mxu0 }
 0x3d3   :  { %v2099_v30 = vpop.f32.mrb[11].mxu0 }
 0x3d5   :  { %5620 = vset.pattern.permute.xlu1 %v8276_v12 }
 0x3d6   :  { %2899 = vperm.xlu1 %5620, %v6897_v59   ;;  %v7091_v59 = vpop.permute.xlu1 %2811 }
 0x3d7   :  { %8277 = vst [vmem:[#allocation11_spill] sm:$0xff] %v7091_v59 }
 0x3d8   :  { %v7064_v39 = vpop.f32.mrb[12].mxu0 }
 0x3d9   :  { %v7066_v38 = vpop.f32.mrb[13].mxu0 }
 0x3da   :  { %v7068_v21 = vpop.f32.mrb[14].mxu0  ;;  %2904 = vperm.xlu1 %5620, %v6907_v22   ;;  %v7093_v9 = vpop.permute.xlu1 %2816 }
 0x3db   :  { %v7071_v16 = vpop.f32.mrb[15].mxu0  ;;  %8278 = vst [vmem:[#allocation10_spill] sm:$0xff] %v7093_v9 }
 0x3de   :  { %2914 = vperm.xlu1 %5620, %v6919_v28   ;;  %v7095_v24 = vpop.permute.xlu1 %2355 }
 0x3df   :  { %8279 = vst [vmem:[#allocation28_spill] sm:$0xff] %v7095_v24 }
 0x3e2   :  { %5621 = vset.pattern.permute.xlu1 %v8275_v40  ;;  %v7097_v22 = vpop.permute.xlu1 %2651 }
 0x3e3   :  { %2769 = vperm.xlu1 %5621, %v6963_v2   ;;  %8280 = vst [vmem:[#allocation43_spill] sm:$0xff] %v7097_v22 }
 0x3e6   :  { %v7099_v37 = vpop.permute.xlu1 %2521 }
 0x3e7   :  { %5623 = vset.pattern.permute.xlu1 %v8274_v46  ;;  %8281 = vst [vmem:[#allocation13_spill] sm:$0xff] %v7099_v37 }
 0x3e8   :  { %2609 = vperm.xlu1 %5623, %v6963_v2  }
 0x3ea   :  { %v7101_v28 = vpop.permute.xlu1 %2526 }
 0x3eb   :  { %8282 = vst [vmem:[#allocation40_spill] sm:$0xff] %v7101_v28 }
 0x3ec   :  { %2614 = vperm.xlu1 %5623, %v6945_v35  }
 0x3ee   :  { %v7103_v5 = vpop.permute.xlu1 %2826 }
 0x3ef   :  { %8283 = vst [vmem:[#allocation35_spill] sm:$0xff] %v7103_v5 }
 0x3f0   :  { %5624 = vset.pattern.permute.xlu1 %v8276_v12 }
 0x3f1   :  { %2924 = vperm.xlu1 %5624, %v6927_v7  }
 0x3f2   :  { %v7105_v13 = vpop.permute.xlu1 %2360 }
 0x3f3   :  { %8284 = vst [vmem:[#allocation12_spill] sm:$0xff] %v7105_v13 }
 0x3f6   :  { %v7107_v35 = vpop.permute.xlu1 %2661 }
 0x3f7   :  { %8285 = vst [vmem:[#allocation23_spill] sm:$0xff] %v7107_v35  ;;  %v5004_v35 = vld [vmem:[%s8165_s3 + $0x3] ss:$0 sm:$0xff] }
 0x3fa   :  { %v7109_v7 = vpop.permute.xlu1 %2666 }
 0x3fb   :  { %8286 = vst [vmem:[#allocation16_spill] sm:$0xff] %v7109_v7 }
 0x3fe   :  { %v7111_v47 = vpop.permute.xlu1 %2836 }
 0x3ff   :  { %8287 = vst [vmem:[#allocation14_spill] sm:$0xff] %v7111_v47 }
 0x402   :  { %v7113_v48 = vpop.permute.xlu1 %2671 }
 0x403   :  { %8288 = vst [vmem:[#allocation15_spill] sm:$0xff] %v7113_v48 }
 0x406   :  { %v7115_v2 = vpop.permute.xlu1 %2841 }
 0x407   :  { %8289 = vst [vmem:[#allocation18_spill] sm:$0xff] %v7115_v2 }
 0x40a   :  { %v7117_v20 = vpop.permute.xlu1 %2846 }
 0x40b   :  { %8290 = vst [vmem:[#allocation19_spill] sm:$0xff] %v7117_v20 }
 0x40e   :  { %v7119_v52 = vpop.permute.xlu1 %2686 }
 0x40f   :  { %8291 = vst [vmem:[#allocation17_spill] sm:$0xff] %v7119_v52 }
 0x412   :  { %v7127_v32 = vpop.permute.xlu1 %2424 }
 0x416   :  { %v7135_v4 = vpop.permute.xlu1 %2258 }
 0x41a   :  { %v7148_v12 = vpop.permute.xlu1 %2429 }
 0x41e   :  { %v7152_v56 = vpop.permute.xlu1 %2434 }
 0x44e   :  { %v5140_v43 = vpop.f32.mrb[0].mxu1 }
 0x44f   :  { %v5141_v15 = vpop.f32.mrb[1].mxu1 }
 0x450   :  { %v5142_v36 = vadd.f32 %v5141_v15, %v5140_v43  ;;  %v5143_v33 = vpop.f32.mrb[2].mxu1  ;;  %v7157_v15 = vpop.permute.xlu0 %2350 }
 0x451   :  { %v5144_v27 = vpop.f32.mrb[3].mxu1  ;;  %8292 = vst [vmem:[#allocation30_spill] sm:$0xff] %v7157_v15 }
 0x452   :  { %v7121_v41 = vadd.f32 %v5142_v36, %v2096_v19  ;;  %v5145_v46 = vadd.f32 %v5144_v27, %v5143_v33  ;;  %v7160_v27 = vpop.permute.xlu1 %2273 }
 0x454   :  { %v7125_v3 = vadd.f32 %v5145_v46, %v2099_v30  ;;  %v2128_v44 = vsel %vm2127_vm15, %v7121_v41, 0.0 }
 0x456   :  { %v2129_v6 = vsel %vm2127_vm15, %v7125_v3, 0.0 }
 0x457   :  { %v2130_v29 = vadd.f32 %v2129_v6, %v2128_v44  ;;  %v7162_v6 = vpop.permute.xlu0 %2365 }
 0x458   :  { %8293 = vst [vmem:[#allocation44_spill] sm:$0xff] %v7162_v6 }
 0x459   :  { %v5146_v45 = vpop.f32.mrb[4].mxu1 }
 0x45a   :  { %v5147_v51 = vpop.f32.mrb[5].mxu1 }
 0x45b   :  { %v5148_v40 = vadd.f32 %v5147_v51, %v5146_v45  ;;  %v5149_v58 = vpop.f32.mrb[6].mxu1 }
 0x45c   :  { %v5150_v63 = vpop.f32.mrb[7].mxu1 }
 0x45d   :  { %v7138_v49 = vadd.f32 %v7056_v34, %v5148_v40  ;;  %v5151_v55 = vadd.f32 %v5150_v63, %v5149_v58 }
 0x45f   :  { %v2131_v8 = vsel %vm2127_vm15, %v7138_v49, 0.0  ;;  %v7142_v53 = vadd.f32 %v5448_v26, %v5151_v55 }
 0x460   :  { %v2132_v18 = vadd.f32 %v2131_v8, %v2130_v29  ;;  %v7169_v8 = vpop.permute.xlu0 %2821 }
 0x461   :  { %v2133_v11 = vsel %vm2127_vm15, %v7142_v53, 0.0  ;;  %8294 = vst [vmem:[#allocation21_spill] sm:$0xff] %v7169_v8 }
 0x462   :  { %v2134_v10 = vadd.f32 %v2133_v11, %v2132_v18 }
 0x465   :  { %v5152_v54 = vpop.f32.mrb[8].mxu1 }
 0x466   :  { %v5153_v1 = vpop.f32.mrb[9].mxu1 }
 0x467   :  { %v5154_v17 = vadd.f32 %v5153_v1, %v5152_v54  ;;  %v5155_v61 = vpop.f32.mrb[10].mxu1 }
 0x468   :  { %v5156_v34 = vpop.f32.mrb[11].mxu1 }
 0x469   :  { %v2113_v19 = vadd.f32 %v5154_v17, %v7066_v38  ;;  %v5157_v26 = vadd.f32 %v5156_v34, %v5155_v61  ;;  %v7164_v38 = vpop.permute.xlu1 %2444  ;;  %v7174_v17 = vpop.permute.xlu0 %2831 }
 0x46a   :  { %8295 = vst [vmem:[#allocation41_spill] sm:$0xff] %v7174_v17 }
 0x46b   :  { %v2135_v30 = vsel %vm2127_vm15, %v2113_v19, 0.0  ;;  %v2116_v43 = vadd.f32 %v5157_v26, %v7071_v16 }
 0x46c   :  { %v2136_v36 = vadd.f32 %v2135_v30, %v2134_v10 }
 0x46d   :  { %v2137_v33 = vsel %vm2127_vm15, %v2116_v43, 0.0  ;;  %v7172_v10 = vpop.permute.xlu1 %2739  ;;  %v7178_v30 = vpop.permute.xlu0 %2656 }
 0x46e   :  { %v2138_v46 = vadd.f32 %v2137_v33, %v2136_v36  ;;  %8296 = vst [vmem:[#allocation37_spill] sm:$0xff] %v7178_v30  ;;  %v5690_v36 = vld [vmem:[#allocation4 + $0x100] sm:$0xff]   ;;  %v5692_v33 = vld [vmem:[#allocation4 + $0x108] sm:$0xff]  }
 0x46f   :  { %5170 = vmatprep.subr.bf16.mxu1 %v5690_v36  ;;  %v5695_v36 = vld [vmem:[#allocation4 + $0xd0] sm:$0xff]  }
 0x471   :  { %v5158_v44 = vpop.f32.mrb[12].mxu1  ;;  %v7176_v34 = vpop.permute.xlu1 %2278 }
 0x472   :  { %v5159_v29 = vpop.f32.mrb[13].mxu1 }
 0x473   :  { %v5160_v45 = vadd.f32 %v5159_v29, %v5158_v44  ;;  %v5161_v51 = vpop.f32.mrb[14].mxu1  ;;  %v5698_v29 = vld [vmem:[#allocation4 + $0x180] sm:$0xff]  }
 0x474   :  { %v5162_v40 = vpop.f32.mrb[15].mxu1  ;;  %5210 = vmatprep.subr.bf16.mxu0 %v5698_v29 }
 0x475   :  { %v2121_v58 = vadd.f32 %v7064_v39, %v5160_v45  ;;  %v5163_v16 = vadd.f32 %v5162_v40, %v5161_v51  ;;  %v5693_v51 = vld [vmem:[#allocation4 + $0xc8] sm:$0xff]   ;;  %v5700_v40 = vld [vmem:[#allocation4 + $0x140] sm:$0xff]  }
 0x476   :  { %5211 = vmatpush3.bf16.msra.mxu0 %v5700_v40 }
 0x477   :  { %v2139_v63 = vsel %vm2127_vm15, %v2121_v58, 0.0  ;;  %v2124_v55 = vadd.f32 %v7068_v21, %v5163_v16  ;;  %v5691_v21 = vld [vmem:[#allocation4 + $0xc0] sm:$0xff]   ;;  %v5694_v16 = vld [vmem:[#allocation4 + $0x110] sm:$0xff]  }
 0x478   :  { %v2140_v18 = vadd.f32 %v2139_v63, %v2138_v46  ;;  %v7180_v46 = vpop.permute.xlu1 %2283  ;;  %5171 = vmatpush3.bf16.msra.mxu1 %v5691_v21  ;;  %v5702_v63 = vld [vmem:[#allocation4 + $0x188] sm:$0xff]  }
 0x479   :  { %v2141_v11 = vsel %vm2127_vm15, %v2124_v55, 0.0  ;;  %5172 = vmatprep.subr.bf16.mxu1 %v5692_v33  ;;  %5212 = vmatprep.subr.bf16.mxu0 %v5702_v63 }
 0x47a   :  { %v2142_v54 = vadd.f32 %v2141_v11, %v2140_v18  ;;  %v5704_v11 = vld [vmem:[#allocation4 + $0x148] sm:$0xff]  }
 0x47b   :  { %5213 = vmatpush3.bf16.msra.mxu0 %v5704_v11 }
 0x47c   :  { %v2143_v1 = vrot.slane %v2142_v54, 4  ;;  %5173 = vmatpush3.bf16.msra.mxu1 %v5693_v51 }
 0x47d   :  { %5174 = vmatprep.subr.bf16.mxu1 %v5694_v16  ;;  %v5699_v16 = vld [vmem:[#allocation4 + $0x120] sm:$0xff]  }
 0x47e   :  { %v2144_v61 = vadd.f32 %v2143_v1, %v2142_v54  ;;  %v7182_v54 = vpop.permute.xlu0 %2676 }
 0x47f   :  { %8297 = vst [vmem:[#allocation20_spill] sm:$0xff] %v7182_v54 }
 0x480   :  { %v2145_v39 = vrot.slane %v2144_v61, 2  ;;  %5175 = vmatpush3.bf16.msra.mxu1 %v5695_v36  ;;  %v5701_v36 = vld [vmem:[#allocation4 + $0xe0] sm:$0xff]  }
 0x482   :  { %v2146_v26 = vadd.f32 %v2145_v39, %v2144_v61  ;;  %v7216_v40 = vpop.permute.xlu0 %2681 }
 0x483   :  { %8298 = vst [vmem:[#allocation25_spill] sm:$0xff] %v7216_v40 }
 0x484   :  { %v2147_v44 = vrot.slane %v2146_v26, 1 }
 0x486   :  { %v2148_v45 = vadd.f32 %v2147_v44, %v2146_v26 }
 0x488   :  { %v2149_v18 = vmul.f32 0.015625, %v2148_v45  ;;  %v5697_v45 = vld [vmem:[#allocation4 + $0xd8] sm:$0xff]  }
 0x48a   :  { %v7185_v1 = vsub.f32 %v7121_v41, %v2149_v18  ;;  %v7188_v61 = vsub.f32 %v7125_v3, %v2149_v18  ;;  %v7191_v39 = vsub.f32 %v7138_v49, %v2149_v18  ;;  %v7194_v26 = vsub.f32 %v7142_v53, %v2149_v18  ;;  %v7204_v41 = vpop.permute.xlu1 %2584  ;;  %v5696_v3 = vld [vmem:[#allocation4 + $0x118] sm:$0xff]  }
 0x48b   :  { %v7196_v21 = vsub.f32 %v2113_v19, %v2149_v18  ;;  %v7198_v33 = vsub.f32 %v2116_v43, %v2149_v18  ;;  %v7200_v44 = vsub.f32 %v2121_v58, %v2149_v18  ;;  %v7202_v29 = vsub.f32 %v2124_v55, %v2149_v18  ;;  %5176 = vmatprep.subr.bf16.mxu1 %v5696_v3 }
 0x48c   :  { %v2158_v49 = vmul.f32 %v7185_v1, %v7185_v1  ;;  %v2159_v53 = vmul.f32 %v7188_v61, %v7188_v61  ;;  %v2160_v19 = vmul.f32 %v7191_v39, %v7191_v39  ;;  %v2161_v43 = vmul.f32 %v7194_v26, %v7194_v26  ;;  %5177 = vmatpush3.bf16.msra.mxu1 %v5697_v45 }
 0x48d   :  { %v2162_v63 = vmul.f32 %v7196_v21, %v7196_v21  ;;  %5178 = vmatprep.subr.bf16.mxu1 %v5699_v16  ;;  %v2164_v3 = vmul.f32 %v7200_v44, %v7200_v44 }
 0x48e   :  { %v2166_v58 = vsel %vm2127_vm15, %v2158_v49, 0.0  ;;  %v2167_v55 = vsel %vm2127_vm15, %v2159_v53, 0.0  ;;  %v2169_v18 = vsel %vm2127_vm15, %v2160_v19, 0.0  ;;  %v7221_v2 = vpop.permute.xlu1 %2449  ;;  %v2163_v49 = vmul.f32 %v7198_v33, %v7198_v33  ;;  %v7229_v19 = vpop.permute.xlu0 %2419 }
 0x48f   :  { %v2168_v51 = vadd.f32 %v2167_v55, %v2166_v58  ;;  %v2171_v53 = vsel %vm2127_vm15, %v2161_v43, 0.0  ;;  %v5703_v55 = vld [vmem:[#allocation4 + $0x128] sm:$0xff]   ;;  %v2173_v52 = vsel %vm2127_vm15, %v2162_v63, 0.0  ;;  %v2177_v16 = vsel %vm2127_vm15, %v2164_v3, 0.0 }
 0x490   :  { %5179 = vmatpush3.bf16.msra.mxu1 %v5701_v36  ;;  %v5705_v43 = vld [vmem:[#allocation4 + $0xe8] sm:$0xff]  }
 0x491   :  { %v2170_v11 = vadd.f32 %v2169_v18, %v2168_v51  ;;  %v2165_v51 = vmul.f32 %v7202_v29, %v7202_v29  ;;  %v2175_v18 = vsel %vm2127_vm15, %v2163_v49, 0.0  ;;  %5180 = vmatprep.subr.bf16.mxu1 %v5703_v55 }
 0x492   :  { %v7234_v20 = vpop.permute.xlu1 %2749  ;;  %v7238_v63 = vpop.permute.xlu0 %2439 }
 0x493   :  { %v2172_v58 = vadd.f32 %v2171_v53, %v2170_v11  ;;  %v2179_v53 = vsel %vm2127_vm15, %v2165_v51, 0.0 }
 0x494   :  { %5181 = vmatpush3.bf16.msra.mxu1 %v5705_v43 }
 0x495   :  { %v2174_v40 = vadd.f32 %v2173_v52, %v2172_v58 }
 0x496   :  { %v7240_v54 = vpop.permute.xlu1 %2754  ;;  %v7242_v36 = vpop.permute.xlu0 %2454 }
 0x497   :  { %v2176_v45 = vadd.f32 %v2175_v18, %v2174_v40 }
 0x499   :  { %v2178_v11 = vadd.f32 %v2177_v16, %v2176_v45 }
 0x49a   :  { %v7244_v18 = vpop.permute.xlu1 %2293  ;;  %v7246_v3 = vpop.permute.xlu0 %2263 }
 0x49b   :  { %v2180_v52 = vadd.f32 %v2179_v53, %v2178_v11 }
 0x49d   :  { %v2181_v58 = vrot.slane %v2180_v52, 4 }
 0x49e   :  { %v7248_v51 = vpop.permute.xlu1 %2589  ;;  %v7250_v16 = vpop.permute.xlu0 %2268 }
 0x49f   :  { %v2182_v48 = vadd.f32 %v2181_v58, %v2180_v52  ;;  %v5003_v58 = vld [vmem:[%s8165_s3 + $0x2] ss:$0 sm:$0xff] }
 0x4a1   :  { %v2183_v49 = vrot.slane %v2182_v48, 2 }
 0x4a2   :  { %v7252_v11 = vpop.permute.xlu1 %2764  ;;  %v7254_v53 = vpop.permute.xlu0 %2288 }
 0x4a3   :  { %v2184_v40 = vadd.f32 %v2183_v49, %v2182_v48 }
 0x4a5   :  { %v2185_v55 = vrot.slane %v2184_v40, 1 }
 0x4a6   :  { %v7256_v52 = vpop.permute.xlu1 %2599  ;;  %v7272_v6 = vpop.permute.xlu0 %2579 }
 0x4a7   :  { %v2186_v47 = vadd.f32 %v2185_v55, %v2184_v40 }
 0x4a9   :  { %v2187_v45 = vmul.f32 0.015625, %v2186_v47 }
 0x4aa   :  { %v7274_v5 = vpop.permute.xlu1 %2899 }
 0x4ab   :  { %v2188_v43 = vadd.f32 1e-05, %v2187_v45 }
 0x4ad   :  { %5792 = vrsqrt.f32 %v2188_v43 }
 0x4b7   :  { %v5793_v48 = vpop.eup %5792 }
 0x4b8   :  { %v2190_v49 = vmul.f32 %v5793_v48, %v7185_v1  ;;  %v2191_v47 = vmul.f32 %v5793_v48, %v7188_v61  ;;  %v2192_v40 = vmul.f32 %v5793_v48, %v7191_v39  ;;  %v2193_v55 = vmul.f32 %v5793_v48, %v7194_v26 }
 0x4b9   :  { %v2194_v45 = vmul.f32 %v5793_v48, %v7196_v21  ;;  %v2195_v43 = vmul.f32 %v5793_v48, %v7198_v33  ;;  %v2196_v17 = vmul.f32 %v5793_v48, %v7200_v44  ;;  %v2197_v7 = vmul.f32 %v5793_v48, %v7202_v29 }
 0x4ba   :  { %v2204_v1 = vmul.f32 %v5003_v58, %v2190_v49  ;;  %v2205_v61 = vmul.f32 %v5003_v58, %v2191_v47  ;;  %v2206_v13 = vmul.f32 %v5003_v58, %v2192_v40  ;;  %v2207_v39 = vmul.f32 %v5003_v58, %v2193_v55 }
 0x4bb   :  { %v2208_v28 = vmul.f32 %v5003_v58, %v2194_v45  ;;  %v2209_v26 = vmul.f32 %v5003_v58, %v2195_v43  ;;  %v2210_v37 = vmul.f32 %v5003_v58, %v2196_v17  ;;  %v2211_v21 = vmul.f32 %v5003_v58, %v2197_v7  ;;  %v7276_v17 = vpop.permute.xlu0 %2594 }
 0x4bc   :  { %v2216_v33 = vadd.f32 %v5004_v35, %v2204_v1  ;;  %v2217_v44 = vadd.f32 %v5004_v35, %v2205_v61  ;;  %v2218_v8 = vadd.f32 %v5004_v35, %v2206_v13  ;;  %v2219_v29 = vadd.f32 %v5004_v35, %v2207_v39  ;;  %v2240_v1 = vld [vmem:[#allocation2 + $0x7] sm:$0xff] }
 0x4bd   :  { %v2220_v48 = vadd.f32 %v5004_v35, %v2208_v28  ;;  %v2221_v30 = vadd.f32 %v5004_v35, %v2209_v26  ;;  %v2222_v22 = vadd.f32 %v5004_v35, %v2210_v37  ;;  %v2223_v24 = vadd.f32 %v5004_v35, %v2211_v21 }
 0x4be   :  { %v2224_v15 = vmax.f32 %v2216_v33, 0.0  ;;  %v2225_v9 = vmax.f32 %v2217_v44, 0.0  ;;  %v2226_v49 = vmax.f32 %v2218_v8, 0.0  ;;  %v2227_v47 = vmax.f32 %v2219_v29, 0.0 }
 0x4bf   :  { %v2228_v40 = vmax.f32 %v2220_v48, 0.0  ;;  %v2229_v55 = vmax.f32 %v2221_v30, 0.0  ;;  %v2230_v45 = vmax.f32 %v2222_v22, 0.0  ;;  %v2231_v43 = vmax.f32 %v2223_v24, 0.0  ;;  %v7286_v22 = vpop.permute.xlu1 %2904  ;;  %v7288_v24 = vpop.permute.xlu0 %2604 }
 0x4c0   :  { %2232 = vst.msk [vmem:[#allocation2 + $0x10] sm:$0xff] %vm2127_vm15, %v2224_v15  ;;  %2233 = vst.msk [vmem:[#allocation2 + $0x18] sm:$0xff] %vm2127_vm15, %v2225_v9 }
 0x4c1   :  { %2234 = vst.msk [vmem:[#allocation2 + $0x20] sm:$0xff] %vm2127_vm15, %v2226_v49  ;;  %2235 = vst.msk [vmem:[#allocation2 + $0x28] sm:$0xff] %vm2127_vm15, %v2227_v47  ;;  %v2296_v49 = vmul.f32 %v7135_v4, %v2240_v1 }
 0x4c2   :  { %2236 = vst.msk [vmem:[#allocation2 + $0x30] sm:$0xff] %vm2127_vm15, %v2228_v40  ;;  %2237 = vst.msk [vmem:[#allocation2 + $0x38] sm:$0xff] %vm2127_vm15, %v2229_v55 }
 0x4c3   :  { %2238 = vst.msk [vmem:[#allocation2 + $0x40] sm:$0xff] %vm2127_vm15, %v2230_v45  ;;  %2239 = vst.msk [vmem:[#allocation2 + $0x48] sm:$0xff] %vm2127_vm15, %v2231_v43  ;;  %v7294_v9 = vpop.permute.xlu1 %2914  ;;  %v7306_v58 = vpop.permute.xlu0 %2744 }
 0x4c4   :  { %8299 = vst [vmem:[#allocation26_spill] sm:$0xff] %v7294_v9 }
 0x4c7   :  { %v7315_v26 = vpop.permute.xlu1 %2769  ;;  %v2401_v33 = vld [vmem:[#allocation2 + $0x9] sm:$0xff]  ;;  %v7323_v44 = vld [vmem:[#allocation2 + $0x17] sm:$0xff] }
 0x4c8   :  { %v7290_v37 = vld [vmem:[#allocation2 + $0x19] sm:$0xff]  ;;  %v7292_v28 = vld [vmem:[#allocation2 + $0x21] sm:$0xff]  ;;  %v7338_v45 = vld [vmem:[#allocation2 + $0xf] sm:$0xff]  ;;  %v7356_v1 = vmul.f32 %v7172_v10, %v7323_v44 }
 0x4c9   :  { %v7296_v13 = vld [vmem:[#allocation2 + $0x2f] sm:$0xff]  ;;  %v2459_v35 = vmul.f32 %v7148_v12, %v7290_v37  ;;  %v2460_v7 = vmul.f32 %v7152_v56, %v7292_v28  ;;  %v7302_v8 = vld [vmem:[#allocation2 + $0x27] sm:$0xff]  ;;  %v7309_v61 = vld [vmem:[#allocation2 + $0x1f] sm:$0xff] }
 0x4ca   :  { %v2301_v30 = vmul.f32 %v7296_v13, %v7180_v46  ;;  %v7311_v39 = vld [vmem:[#allocation2 + $0x31] sm:$0xff]  ;;  %v2300_v12 = vmul.f32 %v7176_v34, %v7302_v8  ;;  %v7319_v21 = vld [vmem:[#allocation2 + $0x39] sm:$0xff]  ;;  %v7325_v48 = vld [vmem:[#allocation2 + $0x29] sm:$0xff]  ;;  %v7330_v47 = vmul.f32 %v7160_v27, %v7309_v61  ;;  %v2779_v27 = vmul.f32 %v7234_v20, %v7302_v8 }
 0x4cb   :  { %v2466_v15 = vpack.c.bf16 %v2460_v7, %v2459_v35  ;;  %8300 = vst [vmem:[#allocation22_spill] sm:$0xff] %v7311_v39  ;;  %v7317_v56 = vld [vmem:[#allocation2 + $0x11] sm:$0xff]  ;;  %8302 = vst [vmem:[#allocation29_spill] sm:$0xff] %v7319_v21  ;;  %v2462_v34 = vmul.f32 %v7164_v38, %v7311_v39  ;;  %v7334_v40 = vld [vmem:[#allocation2 + $0x41] sm:$0xff]  ;;  %v2463_v4 = vmul.f32 %v7319_v21, %v7221_v2  ;;  %v2610_v39 = vpop.permute.xlu1 %2609 }
 0x4cc   :  { %8301 = vst [vmem:[#allocation24_spill] sm:$0xff] %v7317_v56  ;;  %v7321_v46 = vld [vmem:[#allocation2 + $0x18] sm:$0xff]  ;;  %v2306_v29 = vpack.c.bf16 %v2301_v30, %v2300_v12  ;;  %8303 = vst [vmem:[#allocation31_spill] sm:$0xff] %v7325_v48  ;;  %v7342_v35 = vld [vmem:[#allocation2 + $0x20] sm:$0xff]  ;;  %v2457_v38 = vmul.f32 %v7229_v19, %v2401_v33  ;;  %v2760_v30 = vpop.permute.xlu0 %2759  ;;  %v2780_v2 = vmul.f32 %v7240_v54, %v7296_v13 }
 0x4cd   :  { %2470 = vst.msk [vmem:[#allocation3 + $0x48] sm:$0xff] %vm2127_vm15, %v2466_v15  ;;  %8304 = vst [vmem:[#allocation27_spill] sm:$0xff] %v7334_v40  ;;  %v7336_v55 = vld [vmem:[#allocation2 + $0x3f] sm:$0xff]  ;;  %v7340_v43 = vld [vmem:[#allocation2 + $0x37] sm:$0xff]  ;;  %v2458_v15 = vmul.f32 %v7317_v56, %v7127_v32  ;;  %v7360_v12 = vmul.f32 %v7204_v41, %v7321_v46  ;;  %v2461_v20 = vmul.f32 %v7238_v63, %v7325_v48 }
 0x4ce   :  { %v7344_v7 = vld [vmem:[#allocation2 + $0x30] sm:$0xff]  ;;  %2310 = vst.msk [vmem:[#allocation3 + $0x80] sm:$0xff] %vm2127_vm15, %v2306_v29  ;;  %v2303_v32 = vmul.f32 %v7244_v18, %v7336_v55  ;;  %v2464_v10 = vmul.f32 %v7334_v40, %v7242_v36  ;;  %v2297_v41 = vmul.f32 %v7246_v3, %v7338_v45  ;;  %v7374_v56 = vld [vmem:[#allocation2 + $0x28] sm:$0xff]  ;;  %v7376_v63 = vld [vmem:[#allocation2 + $0x38] sm:$0xff]  ;;  %v2786_v48 = vpack.c.bf16 %v2780_v2, %v2779_v27 }
 0x4cf   :  { %v5706_v29 = vld [vmem:[#allocation4 + $0x190] sm:$0xff]   ;;  %v2465_v9 = vpack.c.bf16 %v2458_v15, %v2457_v38  ;;  %v2467_v59 = vpack.c.bf16 %v2462_v34, %v2461_v20  ;;  %v2619_v38 = vmul.f32 %v7248_v51, %v7342_v35  ;;  %v2298_v18 = vmul.f32 %v7323_v44, %v7250_v16  ;;  %v7382_v36 = vld [vmem:[#allocation2 + $0x40] sm:$0xff]  ;;  %v5713_v20 = vld [vmem:[#allocation4 + $0xf8] sm:$0xff]  }
 0x4d0   :  { %v5707_v19 = vld [vmem:[#allocation4 + $0x130] sm:$0xff]   ;;  %5214 = vmatprep.subr.bf16.mxu0 %v5706_v29  ;;  %v2468_v3 = vpack.c.bf16 %v2464_v10, %v2463_v4  ;;  %v2304_v15 = vpack.c.bf16 %v2297_v41, %v2296_v49  ;;  %v2621_v40 = vmul.f32 %v7256_v52, %v7344_v7  ;;  %v2302_v27 = vmul.f32 %v7340_v43, %v7254_v53  ;;  %v7389_v34 = vld [vmem:[#allocation2 + $0x47] sm:$0xff]  ;;  %v5710_v53 = vld [vmem:[#allocation4 + $0x198] sm:$0xff]   ;;  %v2615_v41 = vpop.permute.xlu1 %2614 }
 0x4d1   :  { %v5708_v33 = vld [vmem:[#allocation4 + $0x150] sm:$0xff]   ;;  %2469 = vst.msk [vmem:[#allocation3 + $0x8] sm:$0xff] %vm2127_vm15, %v2465_v9  ;;  %5182 = vmatprep.subr.bf16.mxu1 %v5707_v19  ;;  %2790 = vst.msk [vmem:[#allocation3 + $0x58] sm:$0xff] %vm2127_vm15, %v2786_v48  ;;  %v2305_v51 = vpack.c.bf16 %v7330_v47, %v2298_v18  ;;  %v2937_v16 = vmul.f32 %v7274_v5, %v7290_v37  ;;  %v2938_v52 = vmul.f32 %v7286_v22, %v7292_v28  ;;  %v5711_v49 = vld [vmem:[#allocation4 + $0x138] sm:$0xff]   ;;  %v2775_v22 = vpop.permute.xlu0 %2774 }
 0x4d2   :  { %v7372_v21 = vld [vmem:[#allocation2 + $0x10] sm:$0xff]  ;;  %2471 = vst.msk [vmem:[#allocation3 + $0x88] sm:$0xff] %vm2127_vm15, %v2467_v59  ;;  %5215 = vmatpush3.bf16.msra.mxu0 %v5708_v33  ;;  %v5712_v4 = vld [vmem:[#allocation4 + $0x158] sm:$0xff]   ;;  %2472 = vst.msk [vmem:[#allocation3 + $0xc8] sm:$0xff] %vm2127_vm15, %v2468_v3  ;;  %v2782_v59 = vmul.f32 %v7252_v11, %v7336_v55  ;;  %v2307_v48 = vpack.c.bf16 %v2303_v32, %v2302_v27  ;;  %v2620_v5 = vmul.f32 %v7276_v17, %v7374_v56 }
 0x4d3   :  { %v5709_v54 = vld [vmem:[#allocation4 + $0xf0] sm:$0xff]   ;;  %v2617_v9 = vmul.f32 %v7272_v6, %v7372_v21  ;;  %2308 = vst.msk [vmem:[#allocation3] sm:$0xff] %vm2127_vm15, %v2304_v15  ;;  %v2622_v6 = vmul.f32 %v7288_v24, %v7376_v63  ;;  %v7408_v47 = vld [vmem:[#allocation2 + $0x48] sm:$0xff]  ;;  %2309 = vst.msk [vmem:[#allocation3 + $0x40] sm:$0xff] %vm2127_vm15, %v2305_v51  ;;  %v2945_v19 = vpack.c.bf16 %v2938_v52, %v2937_v16  ;;  %5216 = vmatprep.subr.bf16.mxu0 %v5710_v53 }
 0x4d4   :  { %v2728_v2 = vld [vmem:[#allocation2 + $0x4f] sm:$0xff]  ;;  %5183 = vmatpush3.bf16.msra.mxu1 %v5709_v54  ;;  %v2783_v11 = vmul.f32 %v7315_v26, %v7389_v34  ;;  %v2778_v17 = vmul.f32 %v7306_v58, %v7309_v61  ;;  %2311 = vst.msk [vmem:[#allocation3 + $0xc0] sm:$0xff] %vm2127_vm15, %v2307_v48  ;;  %v2626_v24 = vpack.c.bf16 %v2620_v5, %v2619_v38  ;;  %v7419_v54 = vld [vmem:[#allocation2] sm:$0xff] }
 0x4d5   :  { %v2625_v29 = vpack.c.bf16 %v7360_v12, %v2617_v9  ;;  %v2627_v33 = vpack.c.bf16 %v2622_v6, %v2621_v40  ;;  %v2623_v32 = vmul.f32 %v2610_v39, %v7382_v36  ;;  %v2781_v10 = vmul.f32 %v2760_v30, %v7340_v43  ;;  %5184 = vmatprep.subr.bf16.mxu1 %v5711_v49  ;;  %v5714_v39 = vld [vmem:[#allocation4 + $0x1a0] sm:$0xff]   ;;  %v5719_v53 = vld [vmem:[#allocation4 + $0x170] sm:$0xff]  }
 0x4d6   :  { %v2368_v12 = vmul.f32 %v7419_v54, %v7073_v60  ;;  %2949 = vst.msk [vmem:[#allocation3 + $0x20] sm:$0xff] %vm2127_vm15, %v2945_v19  ;;  %v2785_v58 = vpack.c.bf16 %v2778_v17, %v7356_v1  ;;  %v2624_v26 = vmul.f32 %v2615_v41, %v7408_v47  ;;  %v2784_v40 = vmul.f32 %v2775_v22, %v2728_v2  ;;  %v5715_v1 = vld [vmem:[#allocation4 + $0x160] sm:$0xff]   ;;  %v8309_v5 = vld [vmem:[#allocation24_spill] sm:$0xff]  ;;  %v8310_v6 = vld [vmem:[#allocation43_spill] sm:$0xff] }
 0x4d7   :  { %2629 = vst.msk [vmem:[#allocation3 + $0x10] sm:$0xff] %vm2127_vm15, %v2625_v29  ;;  %5217 = vmatpush3.bf16.msra.mxu0 %v5712_v4  ;;  %2630 = vst.msk [vmem:[#allocation3 + $0x50] sm:$0xff] %vm2127_vm15, %v2626_v24  ;;  %v2787_v30 = vpack.c.bf16 %v2782_v59, %v2781_v10  ;;  %v2529_v38 = vmul.f32 %v7062_v31, %v7338_v45  ;;  %v2530_v60 = vmul.f32 %v7323_v44, %v7123_v62  ;;  %v7448_v44 = vld [vmem:[%s8164_s2 + $0x10] sm:$0xff]  ;;  %v7461_v16 = vld [vmem:[%s8164_s2 + $0x20] sm:$0xff] }
 0x4d8   :  { %2631 = vst.msk [vmem:[#allocation3 + $0x90] sm:$0xff] %vm2127_vm15, %v2627_v33  ;;  %v2369_v18 = vmul.f32 %v7372_v21, %v7077_v42  ;;  %5185 = vmatpush3.bf16.msra.mxu1 %v5713_v20  ;;  %2789 = vst.msk [vmem:[#allocation3 + $0x18] sm:$0xff] %vm2127_vm15, %v2785_v58  ;;  %v2628_v3 = vpack.c.bf16 %v2624_v26, %v2623_v32  ;;  %v2788_v15 = vpack.c.bf16 %v2784_v40, %v2783_v11  ;;  %v5716_v42 = vld [vmem:[#allocation4 + $0x1a8] sm:$0xff]   ;;  %v8308_v59 = vld [vmem:[#allocation28_spill] sm:$0xff] }
 0x4d9   :  { %5218 = vmatprep.subr.bf16.mxu0 %v5714_v39  ;;  %2791 = vst.msk [vmem:[#allocation3 + $0x98] sm:$0xff] %vm2127_vm15, %v2787_v30  ;;  %v2537_v27 = vpack.c.bf16 %v2530_v60, %v2529_v38  ;;  %v2531_v31 = vmul.f32 %v7133_v23, %v7309_v61  ;;  %v2532_v62 = vmul.f32 %v7082_v25, %v7302_v8  ;;  %v5717_v21 = vld [vmem:[#allocation4 + $0x168] sm:$0xff]   ;;  %v5718_v61 = vld [vmem:[#allocation4 + $0x1b0] sm:$0xff]   ;;  %v8311_v22 = vld [vmem:[#allocation37_spill] sm:$0xff] }
 0x4da   :  { %v2376_v51 = vpack.c.bf16 %v2369_v18, %v2368_v12  ;;  %2632 = vst.msk [vmem:[#allocation3 + $0xd0] sm:$0xff] %vm2127_vm15, %v2628_v3  ;;  %2792 = vst.msk [vmem:[#allocation3 + $0xd8] sm:$0xff] %vm2127_vm15, %v2788_v15  ;;  %v2533_v25 = vmul.f32 %v7089_v0, %v7296_v13  ;;  %v2534_v23 = vmul.f32 %v7144_v14, %v7340_v43  ;;  %v8305_v13 = vld [vmem:[#allocation11_spill] sm:$0xff]  ;;  %v8306_v9 = vld [vmem:[#allocation10_spill] sm:$0xff] }
 0x4db   :  { %5219 = vmatpush3.bf16.msra.mxu0 %v5715_v1  ;;  %2545 = vrot.lane.b32.xlu0 %v2537_v27, %s5851_s25  ;;  %v2538_v8 = vpack.c.bf16 %v2532_v62, %v2531_v31  ;;  %v2370_v45 = vmul.f32 %v7150_v57, %v7321_v46  ;;  %v2371_v14 = vmul.f32 %v7085_v50, %v7342_v35  ;;  %v5720_v57 = vld [vmem:[#allocation4 + $0x1b8] sm:$0xff]   ;;  %v8307_v49 = vld [vmem:[#allocation30_spill] sm:$0xff]  ;;  %v8313_v17 = vld [vmem:[#allocation35_spill] sm:$0xff] }
 0x4dc   :  { %2384 = vrot.lane.b32.xlu1 %v2376_v51, %s5851_s25  ;;  %5220 = vmatprep.subr.bf16.mxu0 %v5716_v42  ;;  %v2539_v0 = vpack.c.bf16 %v2534_v23, %v2533_v25  ;;  %v2849_v43 = vmul.f32 %v8305_v13, %v7321_v46  ;;  %v2850_v52 = vmul.f32 %v8306_v9, %v7342_v35  ;;  %v5721_v20 = vld [vmem:[#allocation4 + $0x178] sm:$0xff]   ;;  %v7491_v12 = vld [vmem:[#allocation4 + $0x1c0] sm:$0xff]   ;;  %v8318_v30 = vld [vmem:[#allocation23_spill] sm:$0xff] }
 0x4dd   :  { %v2372_v4 = vmul.f32 %v8307_v49, %v7374_v56  ;;  %v2373_v48 = vmul.f32 %v8308_v59, %v7344_v7  ;;  %v2377_v50 = vpack.c.bf16 %v2371_v14, %v2370_v45  ;;  %v2689_v46 = vmul.f32 %v8310_v6, %v8309_v5  ;;  %v8312_v19 = vld [vmem:[#allocation21_spill] sm:$0xff]  ;;  %v8316_v58 = vld [vmem:[#allocation12_spill] sm:$0xff]  ;;  %v8319_v38 = vld [vmem:[#allocation31_spill] sm:$0xff]  ;;  %5453 = vmatprep.subr.bf16.mxu1 %v7491_v12 }
 0x4de   :  { %v2690_v35 = vmul.f32 %v8311_v22, %v7290_v37  ;;  %v2857_v2 = vpack.c.bf16 %v2850_v52, %v2849_v43  ;;  %v2851_v11 = vmul.f32 %v8312_v19, %v7374_v56  ;;  %v2852_v24 = vmul.f32 %v8313_v17, %v7344_v7  ;;  %v8314_v32 = vld [vmem:[#allocation13_spill] sm:$0xff]  ;;  %v8315_v37 = vld [vmem:[#allocation40_spill] sm:$0xff]  ;;  %v8323_v62 = vld [vmem:[#allocation22_spill] sm:$0xff] }
 0x4df   :  { %5221 = vmatpush3.bf16.msra.mxu0 %v5717_v21  ;;  %2909 = vperm.xlu0 %5622, %v7448_v44   ;;  %v2378_v29 = vpack.c.bf16 %v2373_v48, %v2372_v4  ;;  %v2535_v10 = vmul.f32 %v8314_v32, %v7336_v55  ;;  %v2536_v41 = vmul.f32 %v7389_v34, %v8315_v37  ;;  %v8317_v26 = vld [vmem:[#allocation44_spill] sm:$0xff]  ;;  %v8321_v3 = vld [vmem:[#allocation41_spill] sm:$0xff]  ;;  %v8324_v42 = vld [vmem:[#allocation15_spill] sm:$0xff]  ;;  %v5871_v49 = vmov 10  }
 0x4e0   :  { %2547 = vrot.lane.b32.xlu1 %v2538_v8, %s5851_s25  ;;  %5222 = vmatprep.subr.bf16.mxu0 %v5718_v61  ;;  %v2697_v33 = vpack.c.bf16 %v2690_v35, %v2689_v46  ;;  %v2374_v56 = vmul.f32 %v8316_v58, %v7376_v63  ;;  %v2375_v40 = vmul.f32 %v8317_v26, %v7382_v36  ;;  %v8320_v60 = vld [vmem:[#allocation16_spill] sm:$0xff]  ;;  %v8325_v25 = vld [vmem:[#allocation29_spill] sm:$0xff]  ;;  %v5872_v4 = vmov 9   ;;  %v7554_v48 = vld [vmem:[%s8164_s2 + $0x8] sm:$0xff] }
 0x4e1   :  { %v2858_v7 = vpack.c.bf16 %v2852_v24, %v2851_v11  ;;  %v2540_v39 = vpack.c.bf16 %v2536_v41, %v2535_v10  ;;  %v2691_v55 = vmul.f32 %v8318_v30, %v7292_v28  ;;  %v2692_v34 = vmul.f32 %v8320_v60, %v8319_v38  ;;  %v8322_v28 = vld [vmem:[#allocation14_spill] sm:$0xff]  ;;  %v7513_v51 = vld [vmem:[%s8164_s2 + $0x38] sm:$0xff]  ;;  %v7518_v31 = vld [vmem:[%s8164_s2 + $0x30] sm:$0xff] }
 0x4e2   :  { %v2379_v18 = vpack.c.bf16 %v2375_v40, %v2374_v56  ;;  %v2853_v15 = vmul.f32 %v8321_v3, %v7376_v63  ;;  %v2854_v27 = vmul.f32 %v8322_v28, %v7382_v36  ;;  %v2693_v21 = vmul.f32 %v8324_v42, %v8323_v62  ;;  %v8326_v23 = vld [vmem:[#allocation20_spill] sm:$0xff]  ;;  %v7524_v63 = vld [vmem:[#allocation2 + $0x49] sm:$0xff]  ;;  %v8329_v14 = vld [vmem:[#allocation25_spill] sm:$0xff] }
 0x4e3   :  { %2919 = vperm.xlu0 %5622, %v7461_v16   ;;  %5223 = vmatpush3.bf16.msra.mxu0 %v5719_v53  ;;  %v2698_v1 = vpack.c.bf16 %v2692_v34, %v2691_v55  ;;  %v2694_v8 = vmul.f32 %v8326_v23, %v8325_v25  ;;  %v8327_v36 = vld [vmem:[#allocation19_spill] sm:$0xff]  ;;  %v8330_v9 = vld [vmem:[#allocation17_spill] sm:$0xff]  ;;  %v8331_v53 = vld [vmem:[#allocation18_spill] sm:$0xff]  ;;  %v5873_v5 = vmov 12   ;;  %v5874_v6 = vmov 11  }
 0x4e4   :  { %2549 = vrot.lane.b32.xlu1 %v2539_v0, %s5851_s25  ;;  %5224 = vmatprep.subr.bf16.mxu0 %v5720_v57  ;;  %v2856_v61 = vmul.f32 %v7419_v54, %v8327_v36  ;;  %v2859_v45 = vpack.c.bf16 %v2854_v27, %v2853_v15  ;;  %v8328_v0 = vld [vmem:[#allocation27_spill] sm:$0xff]  ;;  %v2696_v52 = vmul.f32 %v8330_v9, %v7524_v63  ;;  %v7575_v46 = vld [vmem:[%s8164_s2 + $0x18] sm:$0xff]  ;;  %v5875_v22 = vmov 13   ;;  %v8332_v40 = vld [vmem:[#allocation26_spill] sm:$0xff] }
 0x4e5   :  { %v2695_v13 = vmul.f32 %v8329_v14, %v8328_v0  ;;  %v2699_v43 = vpack.c.bf16 %v2694_v8, %v2693_v21  ;;  %v2855_v57 = vmul.f32 %v8331_v53, %v7408_v47  ;;  %v7545_v47 = vld [vmem:[%s8164_s2] sm:$0xff]  ;;  %v5876_v35 = vmov 14   ;;  %v5723_v32 = vld [vmem:[#allocation4 + $0x1c8] sm:$0xff]   ;;  %v5724_v58 = vld [vmem:[#allocation4 + $0x1d0] sm:$0xff]  }
 0x4e6   :  { %v5877_v19 = vmov 16   ;;  %v5878_v10 = vmov 15   ;;  %v5725_v26 = vld [vmem:[#allocation4 + $0x1d8] sm:$0xff]  }
 0x4e7   :  { %2386 = vrot.lane.b32.xlu0 %v2377_v50, %s5851_s25  ;;  %5225 = vmatpush3.bf16.msra.mxu0 %v5721_v20  ;;  %v2700_v54 = vpack.c.bf16 %v2696_v52, %v2695_v13  ;;  %v2860_v59 = vpack.c.bf16 %v2856_v61, %v2855_v57  ;;  %v7560_v50 = vld [vmem:[%s8164_s2 + $0x28] sm:$0xff]  ;;  %v2888_v23 = vld [vmem:[#allocation2 + $0x51] sm:$0xff] }
 0x4e8   :  { %2865 = vrot.lane.b32.xlu1 %v2857_v2, %s5851_s25  ;;  %v2925_v2 = vpop.permute.xlu1 %2924 }
 0x4eb   :  { %2388 = vrot.lane.b32.xlu0 %v2378_v29, %s5851_s25 }
 0x4ec   :  { %2705 = vrot.lane.b32.xlu1 %v2697_v33, %s5851_s25 }
 0x4ef   :  { %2867 = vrot.lane.b32.xlu0 %v2858_v7, %s5851_s25  ;;  %v2940_v7 = vmul.f32 %v8332_v40, %v8323_v62  ;;  %v5732_v40 = vld [vmem:[#allocation4 + $0x1e8] sm:$0xff]  }
 0x4f0   :  { %2551 = vrot.lane.b32.xlu1 %v2540_v39, %s5851_s25 }
 0x4f3   :  { %2707 = vrot.lane.b32.xlu0 %v2698_v1, %s5851_s25 }
 0x4f4   :  { %2390 = vrot.lane.b32.xlu1 %v2379_v18, %s5851_s25  ;;  %v2942_v18 = vmul.f32 %v2925_v2, %v8328_v0 }
 0x4f7   :  { %2934 = vperm.xlu0 %5622, %v7513_v51  }
 0x4f8   :  { %2929 = vperm.xlu1 %5624, %v7518_v31  }
 0x4fb   :  { %2709 = vrot.lane.b32.xlu0 %v2699_v43, %s5851_s25 }
 0x4fc   :  { %2869 = vrot.lane.b32.xlu1 %v2859_v45, %s5851_s25  ;;  %5630 = vset.pattern.permute.xlu0 %v5872_v4 }
 0x4fd   :  { %5625 = vset.pattern.permute.xlu1 %v5871_v49 }
 0x4ff   :  { %2711 = vrot.lane.b32.xlu0 %v2700_v54, %s5851_s25 }
 0x500   :  { %2871 = vrot.lane.b32.xlu1 %v2860_v59, %s5851_s25 }
 0x503   :  { %3576 = vperm.xlu0 %5630, %v7448_v44  }
 0x504   :  { %3630 = vperm.xlu1 %5625, %v7545_v47  }
 0x507   :  { %3591 = vperm.xlu0 %5630, %v7560_v50  }
 0x508   :  { %5626 = vset.pattern.permute.xlu1 %v5872_v4 }
 0x509   :  { %3566 = vperm.xlu1 %5626, %v7545_v47  }
 0x50b   :  { %5636 = vset.pattern.permute.xlu0 %v5871_v49 }
 0x50c   :  { %3635 = vperm.xlu0 %5636, %v7554_v48  }
 0x50d   :  { %3571 = vperm.xlu1 %5626, %v7554_v48  }
 0x510   :  { %3650 = vperm.xlu0 %5636, %v7461_v16  }
 0x511   :  { %5627 = vset.pattern.permute.xlu1 %v5873_v5 }
 0x512   :  { %3763 = vperm.xlu1 %5627, %v7554_v48  }
 0x514   :  { %3665 = vperm.xlu0 %5636, %v7513_v51  }
 0x516   :  { %5628 = vset.pattern.permute.xlu1 %v5874_v6 }
 0x517   :  { %3694 = vperm.xlu1 %5628, %v7545_v47  }
 0x518   :  { %5640 = vset.pattern.permute.xlu0 %v5873_v5 }
 0x519   :  { %3758 = vperm.xlu0 %5640, %v7545_v47  }
 0x51b   :  { %5629 = vset.pattern.permute.xlu1 %v5871_v49 }
 0x51c   :  { %3640 = vperm.xlu1 %5629, %v7448_v44  }
 0x51d   :  { %3773 = vperm.xlu0 %5640, %v7575_v46  }
 0x520   :  { %3645 = vperm.xlu1 %5629, %v7575_v46  }
 0x521   :  { %3788 = vperm.xlu0 %5640, %v7518_v31  }
 0x524   :  { %5631 = vset.pattern.permute.xlu1 %v5872_v4 }
 0x525   :  { %3581 = vperm.xlu1 %5631, %v7575_v46   ;;  %5642 = vset.pattern.permute.xlu0 %v5874_v6 }
 0x526   :  { %3699 = vperm.xlu0 %5642, %v7554_v48  }
 0x529   :  { %5632 = vset.pattern.permute.xlu1 %v5873_v5 }
 0x52a   :  { %3768 = vperm.xlu1 %5632, %v7448_v44   ;;  %3714 = vperm.xlu0 %5642, %v7461_v16  }
 0x52e   :  { %5633 = vset.pattern.permute.xlu1 %v5874_v6  ;;  %3729 = vperm.xlu0 %5642, %v7513_v51  }
 0x52f   :  { %3704 = vperm.xlu1 %5633, %v7448_v44  }
 0x532   :  { %5646 = vset.pattern.permute.xlu0 %v5875_v22 }
 0x533   :  { %3709 = vperm.xlu1 %5633, %v7575_v46   ;;  %3822 = vperm.xlu0 %5646, %v7545_v47  }
 0x537   :  { %5634 = vset.pattern.permute.xlu1 %v5871_v49  ;;  %3837 = vperm.xlu0 %5646, %v7575_v46  }
 0x538   :  { %3655 = vperm.xlu1 %5634, %v7560_v50  }
 0x53b   :  { %5652 = vset.pattern.permute.xlu0 %v5876_v35 }
 0x53c   :  { %5635 = vset.pattern.permute.xlu1 %v5872_v4  ;;  %3896 = vperm.xlu0 %5652, %v7448_v44  }
 0x53d   :  { %3586 = vperm.xlu1 %5635, %v7461_v16  }
 0x540   :  { %3911 = vperm.xlu0 %5652, %v7560_v50  }
 0x541   :  { %5637 = vset.pattern.permute.xlu1 %v5873_v5 }
 0x542   :  { %3778 = vperm.xlu1 %5637, %v7461_v16  }
 0x544   :  { %5656 = vset.pattern.permute.xlu0 %v5877_v19 }
 0x545   :  { %4019 = vperm.xlu0 %5656, %v7554_v48  }
 0x546   :  { %3783 = vperm.xlu1 %5637, %v7560_v50  }
 0x549   :  { %4034 = vperm.xlu0 %5656, %v7461_v16  }
 0x54a   :  { %5638 = vset.pattern.permute.xlu1 %v5874_v6 }
 0x54b   :  { %3719 = vperm.xlu1 %5638, %v7560_v50  }
 0x54d   :  { %v2546_v20 = vpop.permute.xlu0 %2545  ;;  %5658 = vset.pattern.permute.xlu0 %v5878_v10 }
 0x54e   :  { %v2385_v29 = vpop.permute.xlu1 %2384  ;;  %2557 = vst.msk [vmem:[#allocation3 + $0x8] sm:$0xff] %vm2396_vm0, %v2546_v20  ;;  %3960 = vperm.xlu0 %5658, %v7448_v44  }
 0x54f   :  { %2397 = vst.msk [vmem:[#allocation3] sm:$0xff] %vm2396_vm0, %v2385_v29  ;;  %5639 = vset.pattern.permute.xlu1 %v5871_v49 }
 0x550   :  { %3660 = vperm.xlu1 %5639, %v7518_v31  }
 0x552   :  { %v2548_v11 = vpop.permute.xlu1 %2547  ;;  %3975 = vperm.xlu0 %5658, %v7560_v50  }
 0x553   :  { %2558 = vst.msk [vmem:[#allocation3 + $0x48] sm:$0xff] %vm2396_vm0, %v2548_v11 }
 0x554   :  { %5641 = vset.pattern.permute.xlu1 %v5872_v4  ;;  %v3029_v4 = vld [vmem:[#allocation3 + $0x20] sm:$0xff] }
 0x555   :  { %3596 = vperm.xlu1 %5641, %v7518_v31   ;;  %v3026_v24 = vld [vmem:[#allocation3 + $0x8] sm:$0xff] }
 0x556   :  { %v2550_v17 = vpop.permute.xlu1 %2549  ;;  %v3025_v33 = vld [vmem:[#allocation3] sm:$0xff]  ;;  %3305 = vmatprep.mubr.bf16.mxu1 %v3026_v24  ;;  %5662 = vset.pattern.permute.xlu0 %v5875_v22 }
 0x557   :  { %2559 = vst.msk [vmem:[#allocation3 + $0x88] sm:$0xff] %vm2396_vm0, %v2550_v17  ;;  %3306 = vmatmul.mubr.bf16.vlgmr.msra.gmra.mrb[16].mxu1 %v3025_v33  ;;  %3852 = vperm.xlu0 %5662, %v7518_v31  }
 0x558   :  { %5454 = vmatpush3.bf16.msra.mxu1 %v7491_v12 }
 0x559   :  { %3601 = vperm.xlu1 %5641, %v7513_v51   ;;  %5455 = vmatprep.subr.bf16.mxu1 %v5723_v32 }
 0x55a   :  { %v2866_v37 = vpop.permute.xlu1 %2865  ;;  %v3031_v41 = vld [vmem:[#allocation3 + $0x48] sm:$0xff] }
 0x55b   :  { %2877 = vst.msk [vmem:[#allocation3 + $0x18] sm:$0xff] %vm2396_vm0, %v2866_v37  ;;  %3313 = vmatprep.mubr.bf16.mxu1 %v3031_v41  ;;  %5665 = vset.pattern.permute.xlu0 %v5877_v19  ;;  %v5727_v37 = vld [vmem:[#allocation4 + $0x2a0] sm:$0xff]  }
 0x55c   :  { %5456 = vmatpush3.bf16.msra.mxu1 %v5723_v32  ;;  %4049 = vperm.xlu0 %5665, %v7513_v51   ;;  %v5728_v41 = vld [vmem:[#allocation4 + $0x1e0] sm:$0xff]  }
 0x55d   :  { %5643 = vset.pattern.permute.xlu1 %v5873_v5  ;;  %5457 = vmatprep.subr.bf16.mxu1 %v5724_v58 }
 0x55e   :  { %v2706_v56 = vpop.permute.xlu1 %2705  ;;  %3793 = vperm.xlu1 %5643, %v7513_v51   ;;  %v2910_v12 = vpop.permute.xlu0 %2909  ;;  %v3036_v21 = vld [vmem:[#allocation3 + $0x88] sm:$0xff] }
 0x55f   :  { %2717 = vst.msk [vmem:[#allocation3 + $0x10] sm:$0xff] %vm2396_vm0, %v2706_v56  ;;  %v2939_v39 = vmul.f32 %v2910_v12, %v8319_v38  ;;  %v5731_v12 = vld [vmem:[#allocation4 + $0x2a8] sm:$0xff]  }
 0x560   :  { %5458 = vmatpush3.bf16.msra.mxu1 %v5724_v58  ;;  %v5729_v58 = vld [vmem:[#allocation4 + $0x260] sm:$0xff]  }
 0x561   :  { %v2946_v30 = vpack.c.bf16 %v2940_v7, %v2939_v39  ;;  %5459 = vmatprep.subr.bf16.mxu1 %v5725_v26  ;;  %v5733_v7 = vld [vmem:[#allocation4 + $0x268] sm:$0xff]  }
 0x562   :  { %v2552_v55 = vpop.permute.xlu1 %2551  ;;  %v3028_v60 = vld [vmem:[#allocation3 + $0x18] sm:$0xff]  ;;  %5644 = vset.pattern.permute.xlu1 %v5874_v6  ;;  %v2920_v34 = vpop.permute.xlu0 %2919 }
 0x563   :  { %2560 = vst.msk [vmem:[#allocation3 + $0xc8] sm:$0xff] %vm2396_vm0, %v2552_v55  ;;  %3370 = vmatprep.mubr.bf16.mxu0 %v3028_v60  ;;  %3724 = vperm.xlu1 %5644, %v7518_v31   ;;  %v2941_v38 = vmul.f32 %v2920_v34, %v8325_v25  ;;  %v5734_v60 = vld [vmem:[#allocation4 + $0x230] sm:$0xff]  }
 0x564   :  { %2950 = vst.msk [vmem:[#allocation3 + $0x60] sm:$0xff] %vm2127_vm15, %v2946_v30  ;;  %5460 = vmatpush3.bf16.msra.mxu1 %v5725_v26  ;;  %v5730_v26 = vld [vmem:[#allocation4 + $0x228] sm:$0xff]   ;;  %v5735_v34 = vld [vmem:[#allocation4 + $0x2b0] sm:$0xff]  }
 0x565   :  { %v2947_v1 = vpack.c.bf16 %v2942_v18, %v2941_v38  ;;  %5298 = vmatprep.subr.bf16.mxu1 %v5727_v37  ;;  %v5755_v37 = vld [vmem:[#allocation4 + $0x2d8] sm:$0xff]  }
 0x566   :  { %v2391_v3 = vpop.permute.xlu1 %2390  ;;  %v3027_v15 = vld [vmem:[#allocation3 + $0x10] sm:$0xff]  ;;  %v2387_v28 = vpop.permute.xlu0 %2386 }
 0x567   :  { %2400 = vst.msk [vmem:[#allocation3 + $0xc0] sm:$0xff] %vm2396_vm0, %v2391_v3  ;;  %3371 = vmatmul.mubr.bf16.vlgmr.msra.gmra.mrb[16].mxu0 %v3027_v15  ;;  %5645 = vset.pattern.permute.xlu1 %v5876_v35  ;;  %2398 = vst.msk [vmem:[#allocation3 + $0x40] sm:$0xff] %vm2396_vm0, %v2387_v28  ;;  %v5737_v3 = vld [vmem:[#allocation4 + $0x270] sm:$0xff]  }
 0x568   :  { %2951 = vst.msk [vmem:[#allocation3 + $0xa0] sm:$0xff] %vm2127_vm15, %v2947_v1  ;;  %3886 = vperm.xlu1 %5645, %v7545_v47   ;;  %v5736_v1 = vld [vmem:[#allocation4 + $0x1f0] sm:$0xff]  }
 0x56a   :  { %v2389_v27 = vpop.permute.xlu0 %2388  ;;  %v3041_v13 = vld [vmem:[#allocation3 + $0xc8] sm:$0xff] }
 0x56b   :  { %2399 = vst.msk [vmem:[#allocation3 + $0x80] sm:$0xff] %vm2396_vm0, %v2389_v27  ;;  %v3034_v5 = vld [vmem:[#allocation3 + $0x60] sm:$0xff] }
 0x56c   :  { %3891 = vperm.xlu1 %5645, %v7554_v48  }
 0x56e   :  { %v2868_v62 = vpop.permute.xlu0 %2867  ;;  %v3030_v42 = vld [vmem:[#allocation3 + $0x40] sm:$0xff] }
 0x56f   :  { %2878 = vst.msk [vmem:[#allocation3 + $0x58] sm:$0xff] %vm2396_vm0, %v2868_v62  ;;  %3314 = vmatmul.mubr.bf16.gmra.mrb[20].mxu1 %v3030_v42  ;;  %v3040_v49 = vld [vmem:[#allocation3 + $0xc0] sm:$0xff]  ;;  %v5738_v62 = vld [vmem:[#allocation4 + $0x238] sm:$0xff]  }
 0x570   :  { %5647 = vset.pattern.permute.xlu1 %v5875_v22  ;;  %3321 = vmatprep.mubr.bf16.mxu1 %v3036_v21  ;;  %v5739_v42 = vld [vmem:[#allocation4 + $0x2b8] sm:$0xff]  }
 0x571   :  { %3827 = vperm.xlu1 %5647, %v7554_v48   ;;  %v5740_v21 = vld [vmem:[#allocation4 + $0x1f8] sm:$0xff]  }
 0x572   :  { %v2708_v25 = vpop.permute.xlu0 %2707  ;;  %v3035_v61 = vld [vmem:[#allocation3 + $0x80] sm:$0xff] }
 0x573   :  { %2718 = vst.msk [vmem:[#allocation3 + $0x50] sm:$0xff] %vm2396_vm0, %v2708_v25  ;;  %v5741_v25 = vld [vmem:[#allocation4 + $0x278] sm:$0xff]  }
 0x575   :  { %5648 = vset.pattern.permute.xlu1 %v5877_v19 }
 0x576   :  { %4014 = vperm.xlu1 %5648, %v7545_v47   ;;  %v2935_v8 = vpop.permute.xlu0 %2934  ;;  %v3033_v45 = vld [vmem:[#allocation3 + $0x58] sm:$0xff] }
 0x577   :  { %v2930_v36 = vpop.permute.xlu1 %2929  ;;  %v2944_v0 = vmul.f32 %v2935_v8, %v2888_v23  ;;  %3322 = vmatmul.mubr.bf16.gmra.mrb[24].mxu1 %v3035_v61  ;;  %3378 = vmatprep.mubr.bf16.mxu0 %v3033_v45  ;;  %v5742_v23 = vld [vmem:[#allocation4 + $0x240] sm:$0xff]  }
 0x578   :  { %v2943_v14 = vmul.f32 %v2930_v36, %v7524_v63  ;;  %3329 = vmatprep.mubr.bf16.mxu1 %v3041_v13  ;;  %v5743_v8 = vld [vmem:[#allocation4 + $0x2c0] sm:$0xff]   ;;  %v5747_v13 = vld [vmem:[#allocation4 + $0x2c8] sm:$0xff]  }
 0x579   :  { %v5744_v61 = vld [vmem:[#allocation4 + $0x200] sm:$0xff]  }
 0x57a   :  { %v2948_v43 = vpack.c.bf16 %v2944_v0, %v2943_v14  ;;  %5649 = vset.pattern.permute.xlu1 %v5878_v10  ;;  %v2710_v9 = vpop.permute.xlu0 %2709  ;;  %v3032_v53 = vld [vmem:[#allocation3 + $0x50] sm:$0xff]  ;;  %v5745_v45 = vld [vmem:[#allocation4 + $0x280] sm:$0xff]   ;;  %v5746_v14 = vld [vmem:[#allocation4 + $0x248] sm:$0xff]  }
 0x57b   :  { %v2870_v52 = vpop.permute.xlu1 %2869  ;;  %3950 = vperm.xlu1 %5649, %v7545_v47   ;;  %2719 = vst.msk [vmem:[#allocation3 + $0x90] sm:$0xff] %vm2396_vm0, %v2710_v9  ;;  %3379 = vmatmul.mubr.bf16.gmra.mrb[20].mxu0 %v3032_v53  ;;  %v5748_v9 = vld [vmem:[#allocation4 + $0x208] sm:$0xff]  }
 0x57c   :  { %2952 = vst.msk [vmem:[#allocation3 + $0xe0] sm:$0xff] %vm2127_vm15, %v2948_v43 }
 0x57d   :  { %2879 = vst.msk [vmem:[#allocation3 + $0x98] sm:$0xff] %vm2396_vm0, %v2870_v52  ;;  %v5749_v52 = vld [vmem:[#allocation4 + $0x288] sm:$0xff]  }
 0x57e   :  { %v2712_v63 = vpop.permute.xlu0 %2711 }
 0x57f   :  { %v2872_v57 = vpop.permute.xlu1 %2871  ;;  %3955 = vperm.xlu1 %5649, %v7554_v48   ;;  %2720 = vst.msk [vmem:[#allocation3 + $0xd0] sm:$0xff] %vm2396_vm0, %v2712_v63  ;;  %3330 = vmatmul.mubr.bf16.gmra.mrb[28].mxu1 %v3040_v49  ;;  %v3039_v48 = vld [vmem:[#allocation3 + $0xa0] sm:$0xff] }
 0x580   :  { %2880 = vst.msk [vmem:[#allocation3 + $0xd8] sm:$0xff] %vm2396_vm0, %v2872_v57  ;;  %5461 = vmatprep.mubr.msk.bf16.mxu1 %vm2127_vm15, %v3029_v4 }
 0x582   :  { %v3037_v59 = vld [vmem:[#allocation3 + $0x90] sm:$0xff] }
 0x583   :  { %5650 = vset.pattern.permute.xlu1 %v5876_v35  ;;  %v3044_v2 = vld [vmem:[#allocation3 + $0xe0] sm:$0xff] }
 0x584   :  { %v3038_v54 = vld [vmem:[#allocation3 + $0x98] sm:$0xff]  ;;  %3901 = vperm.xlu1 %5650, %v7575_v46  }
 0x585   :  { %3386 = vmatprep.mubr.bf16.mxu0 %v3038_v54 }
 0x586   :  { %3387 = vmatmul.mubr.bf16.gmra.mrb[24].mxu0 %v3037_v59  ;;  %v3042_v6 = vld [vmem:[#allocation3 + $0xd0] sm:$0xff] }
 0x587   :  { %v3043_v47 = vld [vmem:[#allocation3 + $0xd8] sm:$0xff]  ;;  %5462 = vmatmul.mubr.msk.bf16.vlgmr.msra.gmra.mrb[32].mxu1 %vm2127_vm15, %v3034_v5  ;;  %v5750_v59 = vld [vmem:[#allocation4 + $0x250] sm:$0xff]  }
 0x588   :  { %3394 = vmatprep.mubr.bf16.mxu0 %v3043_v47  ;;  %5465 = vmatprep.mubr.msk.bf16.mxu1 %vm2127_vm15, %v3039_v48  ;;  %v5751_v47 = vld [vmem:[#allocation4 + $0x2d0] sm:$0xff]  }
 0x589   :  { %5651 = vset.pattern.permute.xlu1 %v5875_v22  ;;  %5299 = vmatpush3.bf16.msra.mxu1 %v5729_v58  ;;  %v5752_v5 = vld [vmem:[#allocation4 + $0x210] sm:$0xff]   ;;  %v5756_v58 = vld [vmem:[#allocation4 + $0x218] sm:$0xff]  }
 0x58a   :  { %3832 = vperm.xlu1 %5651, %v7448_v44   ;;  %5300 = vmatprep.subr.bf16.mxu1 %v5731_v12  ;;  %v5753_v48 = vld [vmem:[#allocation4 + $0x290] sm:$0xff]  }
 0x58d   :  { %5301 = vmatpush3.bf16.msra.mxu1 %v5733_v7 }
 0x58e   :  { %3395 = vmatmul.mubr.bf16.gmra.mrb[28].mxu0 %v3042_v6  ;;  %5653 = vset.pattern.permute.xlu1 %v5877_v19 }
 0x58f   :  { %4024 = vperm.xlu1 %5653, %v7448_v44   ;;  %5466 = vmatmul.mubr.msk.bf16.gmra.mrb[36].mxu1 %vm2127_vm15, %v3044_v2  ;;  %v7693_v44 = vpop.permute.xlu1 %3630 }
 0x590   :  { %5302 = vmatprep.subr.bf16.mxu1 %v5735_v34  ;;  %v5758_v34 = vld [vmem:[#allocation4 + $0x320] sm:$0xff]  }
 0x591   :  { %5303 = vmatpush3.bf16.msra.mxu1 %v5737_v3 }
 0x592   :  { %5304 = vmatprep.subr.bf16.mxu1 %v5739_v42 }
 0x593   :  { %4029 = vperm.xlu1 %5653, %v7575_v46  }
 0x595   :  { %5305 = vmatpush3.bf16.msra.mxu1 %v5741_v25 }
 0x596   :  { %5306 = vmatprep.subr.bf16.mxu1 %v5743_v8 }
 0x597   :  { %5654 = vset.pattern.permute.xlu1 %v5878_v10 }
 0x598   :  { %3965 = vperm.xlu1 %5654, %v7575_v46  }
 0x599   :  { %5307 = vmatpush3.bf16.msra.mxu1 %v5745_v45 }
 0x59a   :  { %5308 = vmatprep.subr.bf16.mxu1 %v5747_v13 }
 0x59c   :  { %5655 = vset.pattern.permute.xlu1 %v5876_v35 }
 0x59d   :  { %3906 = vperm.xlu1 %5655, %v7461_v16   ;;  %5309 = vmatpush3.bf16.msra.mxu1 %v5749_v52 }
 0x59e   :  { %5310 = vmatprep.subr.bf16.mxu1 %v5751_v47 }
 0x5a1   :  { %5657 = vset.pattern.permute.xlu1 %v5875_v22  ;;  %5311 = vmatpush3.bf16.msra.mxu1 %v5753_v48 }
 0x5a2   :  { %3842 = vperm.xlu1 %5657, %v7461_v16   ;;  %5312 = vmatprep.subr.bf16.mxu1 %v5755_v37 }
 0x5a6   :  { %3847 = vperm.xlu1 %5657, %v7560_v50  }
 0x5aa   :  { %5659 = vset.pattern.permute.xlu1 %v5877_v19 }
 0x5ab   :  { %4039 = vperm.xlu1 %5659, %v7560_v50  }
 0x5af   :  { %5660 = vset.pattern.permute.xlu1 %v5878_v10 }
 0x5b0   :  { %3970 = vperm.xlu1 %5660, %v7461_v16   ;;  %v7697_v16 = vpop.permute.xlu1 %3566 }
 0x5b1   :  { %8333 = vst [vmem:[#allocation32_spill] sm:$0xff] %v7697_v16 }
 0x5b4   :  { %5661 = vset.pattern.permute.xlu1 %v5876_v35  ;;  %v7700_v50 = vpop.permute.xlu1 %3571 }
 0x5b5   :  { %3916 = vperm.xlu1 %5661, %v7518_v31   ;;  %8334 = vst [vmem:[#allocation34_spill] sm:$0xff] %v7700_v50 }
 0x5b8   :  { %v7702_v46 = vpop.permute.xlu1 %3763 }
 0x5b9   :  { %3921 = vperm.xlu1 %5661, %v7513_v51  }
 0x5bd   :  { %5663 = vset.pattern.permute.xlu1 %v5875_v22  ;;  %v7704_v22 = vpop.permute.xlu1 %3694 }
 0x5be   :  { %3857 = vperm.xlu1 %5663, %v7513_v51  }
 0x5c1   :  { %v7706_v35 = vpop.permute.xlu1 %3640 }
 0x5c2   :  { %5664 = vset.pattern.permute.xlu1 %v5877_v19  ;;  %8335 = vst [vmem:[#allocation42_spill] sm:$0xff] %v7706_v35 }
 0x5c3   :  { %4044 = vperm.xlu1 %5664, %v7518_v31  }
 0x5c5   :  { %v7708_v20 = vpop.permute.xlu1 %3645 }
 0x5c6   :  { %8336 = vst [vmem:[#allocation33_spill] sm:$0xff] %v7708_v20  ;;  %v5046_v20 = vld [vmem:[%s8165_s3 + $0x5] ss:$0 sm:$0xff] }
 0x5c7   :  { %5666 = vset.pattern.permute.xlu1 %v5878_v10  ;;  %v5726_v10 = vld [vmem:[#allocation4 + $0x220] sm:$0xff]  }
 0x5c8   :  { %3980 = vperm.xlu1 %5666, %v7518_v31   ;;  %5258 = vmatprep.subr.bf16.mxu0 %v5726_v10  ;;  %v5754_v10 = vld [vmem:[#allocation4 + $0x258] sm:$0xff]  }
 0x5c9   :  { %v7710_v29 = vpop.permute.xlu1 %3581  ;;  %5259 = vmatpush3.bf16.msra.mxu0 %v5728_v41 }
 0x5ca   :  { %8337 = vst [vmem:[#allocation39_spill] sm:$0xff] %v7710_v29  ;;  %5260 = vmatprep.subr.bf16.mxu0 %v5730_v26  ;;  %v5757_v26 = vld [vmem:[#allocation4 + $0x298] sm:$0xff]  }
 0x5cb   :  { %5313 = vmatpush3.bf16.msra.mxu1 %v5757_v26 }
 0x5cc   :  { %3985 = vperm.xlu1 %5666, %v7513_v51  }
 0x5cd   :  { %v7712_v19 = vpop.permute.xlu1 %3768  ;;  %5261 = vmatpush3.bf16.msra.mxu0 %v5732_v40 }
 0x5ce   :  { %5262 = vmatprep.subr.bf16.mxu0 %v5734_v60  ;;  %v7744_v60 = vpop.permute.xlu0 %3576 }
 0x5cf   :  { %8345 = vst [vmem:[#allocation43_spill] sm:$0xff] %v7744_v60 }
 0x5d1   :  { %v7714_v11 = vpop.permute.xlu1 %3704  ;;  %5263 = vmatpush3.bf16.msra.mxu0 %v5736_v1 }
 0x5d2   :  { %8338 = vst [vmem:[#allocation36_spill] sm:$0xff] %v7714_v11  ;;  %5264 = vmatprep.subr.bf16.mxu0 %v5738_v62  ;;  %v7748_v62 = vpop.permute.xlu0 %3591 }
 0x5d5   :  { %v7716_v31 = vpop.permute.xlu1 %3709  ;;  %5265 = vmatpush3.bf16.msra.mxu0 %v5740_v21 }
 0x5d6   :  { %8339 = vst [vmem:[#allocation38_spill] sm:$0xff] %v7716_v31  ;;  %5266 = vmatprep.subr.bf16.mxu0 %v5742_v23 }
 0x5d9   :  { %v7718_v17 = vpop.permute.xlu1 %3655  ;;  %5267 = vmatpush3.bf16.msra.mxu0 %v5744_v61 }
 0x5da   :  { %5268 = vmatprep.subr.bf16.mxu0 %v5746_v14 }
 0x5dd   :  { %v7720_v51 = vpop.permute.xlu1 %3586  ;;  %5269 = vmatpush3.bf16.msra.mxu0 %v5748_v9  ;;  %v7752_v9 = vpop.permute.xlu0 %3635 }
 0x5de   :  { %8340 = vst [vmem:[#allocation11_spill] sm:$0xff] %v7720_v51  ;;  %5270 = vmatprep.subr.bf16.mxu0 %v5750_v59 }
 0x5e1   :  { %v7722_v24 = vpop.permute.xlu1 %3778  ;;  %5271 = vmatpush3.bf16.msra.mxu0 %v5752_v5 }
 0x5e2   :  { %8341 = vst [vmem:[#allocation10_spill] sm:$0xff] %v7722_v24  ;;  %5272 = vmatprep.subr.bf16.mxu0 %v5754_v10  ;;  %v7756_v10 = vpop.permute.xlu0 %3650 }
 0x5e5   :  { %v7724_v33 = vpop.permute.xlu1 %3783  ;;  %5273 = vmatpush3.bf16.msra.mxu0 %v5756_v58 }
 0x5e6   :  { %5338 = vmatprep.subr.bf16.mxu0 %v5758_v34 }
 0x5e9   :  { %v7726_v32 = vpop.permute.xlu1 %3719 }
 0x5ed   :  { %v7728_v56 = vpop.permute.xlu1 %3660 }
 0x5f1   :  { %v7730_v39 = vpop.permute.xlu1 %3596 }
 0x5f2   :  { %8342 = vst [vmem:[#allocation30_spill] sm:$0xff] %v7730_v39 }
 0x5f5   :  { %v7732_v27 = vpop.permute.xlu1 %3601 }
 0x5f6   :  { %8343 = vst [vmem:[#allocation28_spill] sm:$0xff] %v7732_v27 }
 0x5f9   :  { %v7734_v36 = vpop.permute.xlu1 %3793 }
 0x5fd   :  { %v7736_v57 = vpop.permute.xlu1 %3724 }
 0x601   :  { %v7742_v2 = vpop.permute.xlu1 %3886 }
 0x602   :  { %8344 = vst [vmem:[#allocation24_spill] sm:$0xff] %v7742_v2 }
 0x62a   :  { %v5186_v30 = vpop.f32.mrb[16].mxu1 }
 0x62b   :  { %v5187_v55 = vpop.f32.mrb[17].mxu1 }
 0x62c   :  { %v5188_v18 = vadd.f32 %v5187_v55, %v5186_v30  ;;  %v5189_v38 = vpop.f32.mrb[18].mxu1 }
 0x62d   :  { %v5190_v15 = vpop.f32.mrb[19].mxu1 }
 0x62e   :  { %v5191_v28 = vadd.f32 %v5190_v15, %v5189_v38  ;;  %v7746_v38 = vpop.permute.xlu1 %3891 }
 0x62f   :  { %8346 = vst [vmem:[#allocation37_spill] sm:$0xff] %v7746_v38 }
 0x632   :  { %v7750_v21 = vpop.permute.xlu1 %3827 }
 0x63a   :  { %v5226_v0 = vpop.f32.mrb[16].mxu0 }
 0x63b   :  { %v5227_v43 = vpop.f32.mrb[17].mxu0 }
 0x63c   :  { %v5228_v53 = vadd.f32 %v5227_v43, %v5226_v0  ;;  %v5229_v63 = vpop.f32.mrb[18].mxu0 }
 0x63d   :  { %v5230_v49 = vpop.f32.mrb[19].mxu0 }
 0x63e   :  { %v5231_v4 = vadd.f32 %v5230_v49, %v5229_v63  ;;  %v7738_v54 = vadd.f32 %v5228_v53, %v5188_v18  ;;  %v5759_v18 = vld [vmem:[#allocation4 + $0x3a0] sm:$0xff]   ;;  %v7754_v53 = vpop.permute.xlu1 %4014 }
 0x63f   :  { %5378 = vmatprep.subr.bf16.mxu1 %v5759_v18 }
 0x640   :  { %v7740_v6 = vadd.f32 %v5231_v4, %v5191_v28 }
 0x642   :  { %v5192_v41 = vpop.f32.mrb[20].mxu1  ;;  %v7758_v58 = vpop.permute.xlu1 %3950 }
 0x643   :  { %v5193_v12 = vpop.f32.mrb[21].mxu1 }
 0x644   :  { %v5194_v40 = vadd.f32 %v5193_v12, %v5192_v41  ;;  %v5195_v7 = vpop.f32.mrb[22].mxu1 }
 0x645   :  { %v5196_v30 = vpop.f32.mrb[23].mxu1 }
 0x646   :  { %v5197_v55 = vadd.f32 %v5196_v30, %v5195_v7 }
 0x64a   :  { %v5198_v1 = vpop.f32.mrb[24].mxu1 }
 0x64b   :  { %v5199_v3 = vpop.f32.mrb[25].mxu1 }
 0x64c   :  { %v5200_v15 = vadd.f32 %v5199_v3, %v5198_v1  ;;  %v5201_v28 = vpop.f32.mrb[26].mxu1 }
 0x64d   :  { %v5202_v42 = vpop.f32.mrb[27].mxu1 }
 0x64e   :  { %v5203_v25 = vadd.f32 %v5202_v42, %v5201_v28  ;;  %v5232_v23 = vpop.f32.mrb[20].mxu0 }
 0x64f   :  { %v5233_v8 = vpop.f32.mrb[21].mxu0 }
 0x650   :  { %v5234_v61 = vadd.f32 %v5233_v8, %v5232_v23  ;;  %v5235_v45 = vpop.f32.mrb[22].mxu0  ;;  %v7762_v23 = vpop.permute.xlu0 %3665 }
 0x651   :  { %v5236_v0 = vpop.f32.mrb[23].mxu0 }
 0x652   :  { %v5237_v14 = vadd.f32 %v5236_v0, %v5235_v45  ;;  %v5204_v13 = vpop.f32.mrb[28].mxu1  ;;  %v3381_v43 = vadd.f32 %v5234_v61, %v5194_v40  ;;  %v7764_v61 = vpop.permute.xlu1 %3955 }
 0x653   :  { %v5205_v52 = vpop.f32.mrb[29].mxu1 }
 0x654   :  { %v5206_v63 = vadd.f32 %v5205_v52, %v5204_v13  ;;  %v5207_v49 = vpop.f32.mrb[30].mxu1  ;;  %v3384_v4 = vadd.f32 %v5237_v14, %v5197_v55 }
 0x655   :  { %v5208_v59 = vpop.f32.mrb[31].mxu1 }
 0x656   :  { %v5209_v47 = vadd.f32 %v5208_v59, %v5207_v49 }
 0x659   :  { %v5238_v5 = vpop.f32.mrb[24].mxu0 }
 0x65a   :  { %v5239_v48 = vpop.f32.mrb[25].mxu0  ;;  %v5463_v12 = vpop.f32.mrb[32].mxu1 }
 0x65b   :  { %v5240_v37 = vadd.f32 %v5239_v48, %v5238_v5  ;;  %v5241_v41 = vpop.f32.mrb[26].mxu0  ;;  %v3446_v7 = vadd.f32 %v5463_v12, %v3381_v43  ;;  %v3437_v30 = vpop.f32.mrb[33].mxu1 }
 0x65c   :  { %v5242_v26 = vpop.f32.mrb[27].mxu0  ;;  %v3438_v18 = vadd.f32 %v3437_v30, %v7738_v54  ;;  %v5464_v1 = vpop.f32.mrb[34].mxu1 }
 0x65d   :  { %v5243_v40 = vadd.f32 %v5242_v26, %v5241_v41  ;;  %v3389_v34 = vadd.f32 %v5240_v37, %v5200_v15  ;;  %v3449_v55 = vadd.f32 %v5464_v1, %v3384_v4  ;;  %v3440_v3 = vpop.f32.mrb[35].mxu1  ;;  %v7766_v48 = vpop.permute.xlu0 %3758 }
 0x65e   :  { %v3441_v42 = vadd.f32 %v3440_v3, %v7740_v6  ;;  %v7768_v26 = vpop.permute.xlu1 %3901 }
 0x65f   :  { %v3392_v28 = vadd.f32 %v5243_v40, %v5203_v25 }
 0x660   :  { %v3468_v45 = vadd.f32 %v3441_v42, %v3438_v18 }
 0x661   :  { %v5244_v8 = vpop.f32.mrb[28].mxu0 }
 0x662   :  { %v5245_v0 = vpop.f32.mrb[29].mxu0  ;;  %v3469_v43 = vadd.f32 %v3468_v45, %v3446_v7  ;;  %v5467_v15 = vpop.f32.mrb[36].mxu1 }
 0x663   :  { %v5246_v14 = vadd.f32 %v5245_v0, %v5244_v8  ;;  %v5247_v13 = vpop.f32.mrb[30].mxu0  ;;  %v3453_v59 = vpop.f32.mrb[37].mxu1 }
 0x664   :  { %v5248_v52 = vpop.f32.mrb[31].mxu0  ;;  %v3454_v4 = vadd.f32 %v3453_v59, %v3389_v34  ;;  %v3470_v5 = vadd.f32 %v3469_v43, %v3449_v55  ;;  %v5468_v25 = vpop.f32.mrb[38].mxu1 }
 0x665   :  { %v5249_v49 = vadd.f32 %v5248_v52, %v5247_v13  ;;  %v3397_v54 = vadd.f32 %v5246_v14, %v5206_v63  ;;  %v3456_v41 = vpop.f32.mrb[39].mxu1  ;;  %v7770_v8 = vpop.permute.xlu0 %3773 }
 0x666   :  { %v3471_v12 = vadd.f32 %v3470_v5, %v3454_v4  ;;  %v3457_v40 = vadd.f32 %v3456_v41, %v3392_v28  ;;  %v7772_v45 = vpop.permute.xlu1 %3832 }
 0x667   :  { %v3462_v6 = vadd.f32 %v5467_v15, %v3397_v54  ;;  %v3400_v37 = vadd.f32 %v5249_v49, %v5209_v47 }
 0x668   :  { %v3472_v1 = vadd.f32 %v3471_v12, %v3457_v40 }
 0x669   :  { %v3465_v30 = vadd.f32 %v5468_v25, %v3400_v37  ;;  %v7774_v14 = vpop.permute.xlu0 %3788 }
 0x66a   :  { %v3473_v3 = vadd.f32 %v3472_v1, %v3462_v6  ;;  %v7776_v13 = vpop.permute.xlu1 %4024 }
 0x66c   :  { %v3474_v63 = vadd.f32 %v3473_v3, %v3465_v30 }
 0x66d   :  { %v7778_v15 = vpop.permute.xlu0 %3699 }
 0x66e   :  { %v3475_v34 = vrot.slane %v3474_v63, 4  ;;  %v7780_v28 = vpop.permute.xlu1 %4029 }
 0x670   :  { %v3476_v0 = vadd.f32 %v3475_v34, %v3474_v63 }
 0x671   :  { %v7782_v63 = vpop.permute.xlu0 %3714 }
 0x672   :  { %v3477_v47 = vrot.slane %v3476_v0, 2  ;;  %v7784_v34 = vpop.permute.xlu1 %3965 }
 0x674   :  { %v3478_v43 = vadd.f32 %v3477_v47, %v3476_v0 }
 0x676   :  { %v3479_v52 = vrot.slane %v3478_v43, 1 }
 0x678   :  { %v3480_v49 = vadd.f32 %v3479_v52, %v3478_v43  ;;  %v7786_v43 = vpop.permute.xlu0 %3729 }
 0x67a   :  { %v3481_v54 = vmul.f32 0.015625, %v3480_v49 }
 0x67c   :  { %v3482_v59 = vsub.f32 %v3438_v18, %v3481_v54  ;;  %v3483_v5 = vsub.f32 %v3441_v42, %v3481_v54  ;;  %v3484_v25 = vsub.f32 %v3446_v7, %v3481_v54  ;;  %v3485_v37 = vsub.f32 %v3449_v55, %v3481_v54  ;;  %v7788_v18 = vpop.permute.xlu1 %3906 }
 0x67d   :  { %v3486_v41 = vsub.f32 %v3454_v4, %v3481_v54  ;;  %v3487_v12 = vsub.f32 %v3457_v40, %v3481_v54  ;;  %v3488_v1 = vsub.f32 %v3462_v6, %v3481_v54  ;;  %v3489_v3 = vsub.f32 %v3465_v30, %v3481_v54  ;;  %v7790_v30 = vpop.permute.xlu0 %3822 }
 0x67e   :  { %v3490_v0 = vmul.f32 %v3482_v59, %v3482_v59  ;;  %v3491_v47 = vmul.f32 %v3483_v5, %v3483_v5  ;;  %v3492_v38 = vmul.f32 %v3484_v25, %v3484_v25  ;;  %v3493_v27 = vmul.f32 %v3485_v37, %v3485_v37 }
 0x67f   :  { %v3494_v7 = vmul.f32 %v3486_v41, %v3486_v41  ;;  %v3495_v42 = vmul.f32 %v3487_v12, %v3487_v12  ;;  %v3496_v6 = vmul.f32 %v3488_v1, %v3488_v1  ;;  %v3497_v49 = vmul.f32 %v3489_v3, %v3489_v3 }
 0x680   :  { %v3498_v2 = vadd.f32 %v3491_v47, %v3490_v0  ;;  %v7792_v52 = vpop.permute.xlu1 %3842 }
 0x681   :  { %v7794_v47 = vpop.permute.xlu0 %3837 }
 0x682   :  { %v3499_v39 = vadd.f32 %v3498_v2, %v3492_v38 }
 0x684   :  { %v3500_v55 = vadd.f32 %v3499_v39, %v3493_v27  ;;  %v7796_v2 = vpop.permute.xlu1 %3847 }
 0x685   :  { %v7798_v39 = vpop.permute.xlu0 %3896 }
 0x686   :  { %v3501_v4 = vadd.f32 %v3500_v55, %v3494_v7 }
 0x688   :  { %v3502_v40 = vadd.f32 %v3501_v4, %v3495_v42  ;;  %v7800_v27 = vpop.permute.xlu1 %4039 }
 0x689   :  { %v7802_v4 = vpop.permute.xlu0 %3911 }
 0x68a   :  { %v3503_v54 = vadd.f32 %v3502_v40, %v3496_v6  ;;  %8347 = vst [vmem:[#allocation21_spill] sm:$0xff] %v7802_v4 }
 0x68c   :  { %v3504_v51 = vadd.f32 %v3503_v54, %v3497_v49  ;;  %v7804_v11 = vpop.permute.xlu1 %3970 }
 0x68d   :  { %8348 = vst [vmem:[#allocation35_spill] sm:$0xff] %v7804_v11  ;;  %v7806_v40 = vpop.permute.xlu0 %4019 }
 0x68e   :  { %v3505_v0 = vrot.slane %v3504_v51, 4  ;;  %8349 = vst [vmem:[#allocation13_spill] sm:$0xff] %v7806_v40 }
 0x690   :  { %v3506_v38 = vadd.f32 %v3505_v0, %v3504_v51  ;;  %v7808_v49 = vpop.permute.xlu1 %3916 }
 0x691   :  { %8350 = vst [vmem:[#allocation40_spill] sm:$0xff] %v7808_v49  ;;  %v7810_v51 = vpop.permute.xlu0 %4034 }
 0x692   :  { %v3507_v24 = vrot.slane %v3506_v38, 2  ;;  %8351 = vst [vmem:[#allocation12_spill] sm:$0xff] %v7810_v51 }
 0x694   :  { %v3508_v31 = vadd.f32 %v3507_v24, %v3506_v38  ;;  %v7812_v24 = vpop.permute.xlu1 %3921 }
 0x695   :  { %8352 = vst [vmem:[#allocation44_spill] sm:$0xff] %v7812_v24 }
 0x696   :  { %v3509_v7 = vrot.slane %v3508_v31, 1 }
 0x698   :  { %v3510_v55 = vadd.f32 %v3509_v7, %v3508_v31  ;;  %v5045_v31 = vld [vmem:[%s8165_s3 + $0x4] ss:$0 sm:$0xff] }
 0x69a   :  { %v3511_v42 = vmul.f32 0.015625, %v3510_v55 }
 0x69c   :  { %v3512_v6 = vadd.f32 1e-05, %v3511_v42 }
 0x69e   :  { %5794 = vrsqrt.f32 %v3512_v6 }
 0x6a8   :  { %v5795_v54 = vpop.eup %5794 }
 0x6a9   :  { %v3514_v0 = vmul.f32 %v5795_v54, %v3482_v59  ;;  %v3515_v38 = vmul.f32 %v5795_v54, %v3483_v5  ;;  %v3516_v7 = vmul.f32 %v5795_v54, %v3484_v25  ;;  %v3517_v55 = vmul.f32 %v5795_v54, %v3485_v37 }
 0x6aa   :  { %v3518_v29 = vmul.f32 %v5795_v54, %v3486_v41  ;;  %v3519_v42 = vmul.f32 %v5795_v54, %v3487_v12  ;;  %v3520_v6 = vmul.f32 %v5795_v54, %v3488_v1  ;;  %v3521_v60 = vmul.f32 %v5795_v54, %v3489_v3  ;;  %v7820_v41 = vpop.permute.xlu0 %3960  ;;  %v7822_v12 = vpop.permute.xlu1 %3857 }
 0x6ab   :  { %v3528_v35 = vmul.f32 %v5045_v31, %v3514_v0  ;;  %v3529_v50 = vmul.f32 %v5045_v31, %v3515_v38  ;;  %v3530_v16 = vmul.f32 %v5045_v31, %v3516_v7  ;;  %v3531_v24 = vmul.f32 %v5045_v31, %v3517_v55 }
 0x6ac   :  { %v3532_v51 = vmul.f32 %v5045_v31, %v3518_v29  ;;  %v3533_v49 = vmul.f32 %v5045_v31, %v3519_v42  ;;  %v3534_v40 = vmul.f32 %v5045_v31, %v3520_v6  ;;  %v3535_v11 = vmul.f32 %v5045_v31, %v3521_v60 }
 0x6ad   :  { %v3540_v59 = vadd.f32 %v5046_v20, %v3528_v35  ;;  %v3541_v5 = vadd.f32 %v5046_v20, %v3529_v50  ;;  %v3542_v25 = vadd.f32 %v5046_v20, %v3530_v16  ;;  %v3543_v37 = vadd.f32 %v5046_v20, %v3531_v24 }
 0x6ae   :  { %v3544_v1 = vadd.f32 %v5046_v20, %v3532_v51  ;;  %v3545_v3 = vadd.f32 %v5046_v20, %v3533_v49  ;;  %v3546_v54 = vadd.f32 %v5046_v20, %v3534_v40  ;;  %v3547_v4 = vadd.f32 %v5046_v20, %v3535_v11  ;;  %v7872_v31 = vpop.permute.xlu0 %3975 }
 0x6af   :  { %v7824_v0 = vmax.f32 %v3540_v59, 0.0  ;;  %v7826_v38 = vmax.f32 %v3541_v5, 0.0  ;;  %v7828_v29 = vmax.f32 %v3542_v25, 0.0  ;;  %v7830_v7 = vmax.f32 %v3543_v37, 0.0 }
 0x6b0   :  { %v7832_v35 = vmax.f32 %v3544_v1, 0.0  ;;  %v7834_v16 = vmax.f32 %v3545_v3, 0.0  ;;  %v7836_v50 = vmax.f32 %v3546_v54, 0.0  ;;  %v7838_v60 = vmax.f32 %v3547_v4, 0.0  ;;  %v5761_v54 = vld [vmem:[#allocation4 + $0x360] sm:$0xff]  }
 0x6b1   :  { %v3668_v40 = vmul.f32 %v7693_v44, %v7824_v0  ;;  %v3669_v20 = vmul.f32 %v7752_v9, %v7826_v38  ;;  %v7846_v11 = vmul.f32 %v7754_v53, %v7824_v0  ;;  %v7850_v49 = vmul.f32 %v7758_v58, %v7824_v0 }
 0x6b2   :  { %v7854_v51 = vmul.f32 %v7748_v62, %v7834_v16  ;;  %v7858_v4 = vmul.f32 %v7724_v33, %v7834_v16  ;;  %v3672_v44 = vmul.f32 %v7756_v10, %v7832_v35  ;;  %v3673_v9 = vmul.f32 %v7718_v17, %v7834_v16  ;;  %v7874_v33 = vpop.permute.xlu1 %4044  ;;  %v3853_v1 = vpop.permute.xlu0 %3852 }
 0x6b3   :  { %v3676_v53 = vpack.c.bf16 %v3669_v20, %v3668_v40  ;;  %v3674_v24 = vmul.f32 %v7728_v56, %v7836_v50  ;;  %v3675_v58 = vmul.f32 %v7762_v23, %v7838_v60  ;;  %v7870_v62 = vmul.f32 %v7764_v61, %v7826_v38  ;;  %v5763_v40 = vld [vmem:[#allocation4 + $0x3a8] sm:$0xff]  }
 0x6b4   :  { %v7876_v55 = vpack.c.bf16 %v3673_v9, %v3672_v44  ;;  %v3796_v17 = vmul.f32 %v7766_v48, %v7824_v0  ;;  %v3797_v10 = vmul.f32 %v7702_v46, %v7826_v38  ;;  %v7884_v56 = vmul.f32 %v7768_v26, %v7830_v7 }
 0x6b5   :  { %3680 = vst [vmem:[#allocation3 + $0x8] sm:$0xff] %v3676_v53  ;;  %v7886_v23 = vpack.c.bf16 %v3675_v58, %v3674_v24  ;;  %v3798_v42 = vmul.f32 %v7712_v19, %v7828_v29  ;;  %v3799_v6 = vmul.f32 %v7770_v8, %v7830_v7  ;;  %4644 = vmatprep.mubr.bf16.mxu0 %v3676_v53 }
 0x6b6   :  { %3682 = vst [vmem:[#allocation3 + $0x88] sm:$0xff] %v7876_v55  ;;  %v3804_v46 = vpack.c.bf16 %v3797_v10, %v3796_v17  ;;  %v3862_v48 = vmul.f32 %v7772_v45, %v7828_v29  ;;  %v3802_v26 = vmul.f32 %v7774_v14, %v7836_v50  ;;  %v3803_v59 = vmul.f32 %v7734_v36, %v7838_v60  ;;  %v3981_v3 = vpop.permute.xlu1 %3980 }
 0x6b7   :  { %3683 = vst [vmem:[#allocation3 + $0xc8] sm:$0xff] %v7886_v23  ;;  %v3805_v5 = vpack.c.bf16 %v3799_v6, %v3798_v42  ;;  %v7904_v19 = vmul.f32 %v7776_v13, %v7828_v29  ;;  %v3732_v8 = vmul.f32 %v7704_v22, %v7824_v0  ;;  %v3733_v25 = vmul.f32 %v7778_v15, %v7826_v38 }
 0x6b8   :  { %3808 = vst [vmem:[#allocation3 + $0x18] sm:$0xff] %v3804_v46  ;;  %v7910_v45 = vpack.c.bf16 %v3803_v59, %v3802_v26  ;;  %v7914_v14 = vmul.f32 %v7780_v28, %v7830_v7  ;;  %v3736_v36 = vmul.f32 %v7782_v63, %v7832_v35  ;;  %v3737_v13 = vmul.f32 %v7726_v32, %v7834_v16  ;;  %v5767_v26 = vld [vmem:[#allocation4 + $0x3b0] sm:$0xff]   ;;  %v5773_v32 = vld [vmem:[#allocation4 + $0x378] sm:$0xff]  }
 0x6b9   :  { %4709 = vmatprep.mubr.bf16.mxu1 %v3804_v46  ;;  %3809 = vst [vmem:[#allocation3 + $0x58] sm:$0xff] %v3805_v5  ;;  %v3740_v37 = vpack.c.bf16 %v3733_v25, %v3732_v8  ;;  %v7922_v22 = vmul.f32 %v7784_v34, %v7830_v7  ;;  %v3738_v15 = vmul.f32 %v7736_v57, %v7836_v50  ;;  %v8356_v46 = vld [vmem:[#allocation40_spill] sm:$0xff] }
 0x6ba   :  { %v3739_v28 = vmul.f32 %v7786_v43, %v7838_v60  ;;  %3811 = vst [vmem:[#allocation3 + $0xd8] sm:$0xff] %v7910_v45  ;;  %v7931_v63 = vpack.c.bf16 %v3737_v13, %v3736_v36  ;;  %v7935_v34 = vmul.f32 %v7788_v18, %v7832_v35  ;;  %v3860_v57 = vmul.f32 %v7790_v30, %v7824_v0  ;;  %v8358_v25 = vld [vmem:[#allocation44_spill] sm:$0xff] }
 0x6bb   :  { %3744 = vst [vmem:[#allocation3 + $0x10] sm:$0xff] %v3740_v37  ;;  %v3861_v20 = vmul.f32 %v7750_v21, %v7826_v38  ;;  %v3864_v44 = vmul.f32 %v7792_v52, %v7832_v35  ;;  %v3863_v9 = vmul.f32 %v7794_v47, %v7830_v7  ;;  %4710 = vmatmul.mubr.bf16.vlgmr.msra.gmra.mrb[40].mxu1 %v3740_v37  ;;  %v8353_v21 = vld [vmem:[#allocation21_spill] sm:$0xff]  ;;  %v4050_v37 = vpop.permute.xlu0 %4049 }
 0x6bc   :  { %v7939_v43 = vpack.c.bf16 %v3739_v28, %v3738_v15  ;;  %3746 = vst [vmem:[#allocation3 + $0x90] sm:$0xff] %v7931_v63  ;;  %v3865_v18 = vmul.f32 %v7796_v2, %v7834_v16  ;;  %v7952_v30 = vmul.f32 %v7798_v39, %v7828_v29  ;;  %v7956_v53 = vmul.f32 %v7800_v27, %v7834_v16  ;;  %v8354_v2 = vld [vmem:[#allocation35_spill] sm:$0xff]  ;;  %v8355_v39 = vld [vmem:[#allocation13_spill] sm:$0xff]  ;;  %v3986_v15 = vpop.permute.xlu1 %3985 }
 0x6bd   :  { %v7960_v52 = vmul.f32 %v8353_v21, %v7834_v16  ;;  %4717 = vmatprep.mubr.bf16.mxu1 %v3805_v5  ;;  %v7963_v47 = vpack.c.bf16 %v3861_v20, %v3860_v57  ;;  %v7965_v24 = vpack.c.bf16 %v3863_v9, %v3862_v48  ;;  %v7969_v58 = vmul.f32 %v8354_v2, %v7832_v35  ;;  %v5765_v27 = vld [vmem:[#allocation4 + $0x368] sm:$0xff]   ;;  %v8357_v5 = vld [vmem:[#allocation12_spill] sm:$0xff] }
 0x6be   :  { %3747 = vst [vmem:[#allocation3 + $0xd0] sm:$0xff] %v7939_v43  ;;  %v7973_v17 = vmul.f32 %v8355_v39, %v7826_v38  ;;  %5379 = vmatpush3.bf16.msra.mxu1 %v5761_v54  ;;  %v7975_v10 = vpack.c.bf16 %v3865_v18, %v3864_v44  ;;  %v7983_v48 = vmul.f32 %v8356_v46, %v7836_v50  ;;  %v5771_v18 = vld [vmem:[#allocation4 + $0x3b8] sm:$0xff]  }
 0x6bf   :  { %5380 = vmatprep.subr.bf16.mxu1 %v5763_v40  ;;  %3872 = vst [vmem:[#allocation3 + $0x20] sm:$0xff] %v7963_v47  ;;  %3873 = vst [vmem:[#allocation3 + $0x60] sm:$0xff] %v7965_v24  ;;  %v7991_v8 = vmul.f32 %v8357_v5, %v7832_v35  ;;  %v7995_v36 = vmul.f32 %v8358_v25, %v7838_v60  ;;  %v7999_v13 = vmul.f32 %v7820_v41, %v7828_v29  ;;  %v8359_v21 = vld [vmem:[#allocation32_spill] sm:$0xff]  ;;  %v8362_v5 = vld [vmem:[#allocation33_spill] sm:$0xff] }
 0x6c0   :  { %v4060_v59 = vpack.c.bf16 %v7973_v17, %v7846_v11  ;;  %3874 = vst [vmem:[#allocation3 + $0xa0] sm:$0xff] %v7975_v10  ;;  %v3867_v28 = vmul.f32 %v7822_v12, %v7838_v60  ;;  %v8006_v54 = vmul.f32 %v7872_v31, %v7834_v16  ;;  %v8010_v57 = vmul.f32 %v7874_v33, %v7836_v50  ;;  %v5769_v16 = vld [vmem:[#allocation4 + $0x370] sm:$0xff]   ;;  %v5762_v31 = vld [vmem:[#allocation4 + $0x328] sm:$0xff]   ;;  %v8087_v11 = vld [vmem:[#allocation2] sm:$0xff] }
 0x6c1   :  { %v3866_v40 = vmul.f32 %v3853_v1, %v7836_v50  ;;  %v8020_v12 = vmul.f32 %v3981_v3, %v7836_v50  ;;  %v8027_v1 = vmul.f32 %v4050_v37, %v7838_v60  ;;  %v8030_v9 = vmul.f32 %v3986_v15, %v7838_v60  ;;  %v8360_v3 = vld [vmem:[#allocation34_spill] sm:$0xff] }
 0x6c2   :  { %5381 = vmatpush3.bf16.msra.mxu1 %v5765_v27  ;;  %v3604_v2 = vmul.f32 %v8359_v21, %v7824_v0  ;;  %v3605_v39 = vmul.f32 %v8360_v3, %v7826_v38  ;;  %v8361_v27 = vld [vmem:[#allocation42_spill] sm:$0xff]  ;;  %v3671_v25 = vmul.f32 %v8362_v5, %v7830_v7  ;;  %v8364_v21 = vld [vmem:[#allocation39_spill] sm:$0xff]  ;;  %v8365_v5 = vld [vmem:[#allocation36_spill] sm:$0xff]  ;;  %v8375_v17 = vpack.c.bf16 %v7884_v56, %v7952_v30 }
 0x6c3   :  { %v8024_v33 = vpack.c.bf16 %v3867_v28, %v3866_v40  ;;  %5382 = vmatprep.subr.bf16.mxu1 %v5767_v26  ;;  %v3670_v46 = vmul.f32 %v8361_v27, %v7828_v29  ;;  %v5760_v15 = vld [vmem:[#allocation4 + $0x2e0] sm:$0xff]   ;;  %v8363_v28 = vld [vmem:[#allocation43_spill] sm:$0xff]  ;;  %v3607_v3 = vmul.f32 %v8364_v21, %v7830_v7  ;;  %v3734_v6 = vmul.f32 %v8365_v5, %v7828_v29  ;;  %v5788_v5 = vld [vmem:[#allocation4 + $0x318] sm:$0xff]  }
 0x6c4   :  { %v3606_v40 = vmul.f32 %v8363_v28, %v7828_v29  ;;  %v3612_v20 = vpack.c.bf16 %v3605_v39, %v3604_v2  ;;  %v8366_v41 = vld [vmem:[#allocation38_spill] sm:$0xff]  ;;  %v8368_v28 = vld [vmem:[#allocation11_spill] sm:$0xff]  ;;  %v8380_v56 = vpack.c.bf16 %v8027_v1, %v8010_v57 }
 0x6c5   :  { %3875 = vst [vmem:[#allocation3 + $0xe0] sm:$0xff] %v8024_v33  ;;  %v3677_v27 = vpack.c.bf16 %v3671_v25, %v3670_v46  ;;  %v3735_v44 = vmul.f32 %v8366_v41, %v7830_v7  ;;  %v8367_v26 = vld [vmem:[#allocation10_spill] sm:$0xff]  ;;  %v3608_v61 = vmul.f32 %v8368_v28, %v7832_v35  ;;  %v8370_v7 = vld [vmem:[#allocation28_spill] sm:$0xff] }
 0x6c6   :  { %5383 = vmatpush3.bf16.msra.mxu1 %v5769_v16  ;;  %v3613_v37 = vpack.c.bf16 %v3607_v3, %v3606_v40  ;;  %v3800_v42 = vmul.f32 %v8367_v26, %v7832_v35  ;;  %v8369_v2 = vld [vmem:[#allocation30_spill] sm:$0xff]  ;;  %3616 = vst [vmem:[#allocation3] sm:$0xff] %v3612_v20  ;;  %4645 = vmatmul.mubr.bf16.vlgmr.msra.gmra.mrb[32].mxu0 %v3612_v20  ;;  %v8371_v16 = vld [vmem:[#allocation24_spill] sm:$0xff] }
 0x6c7   :  { %5384 = vmatprep.subr.bf16.mxu1 %v5771_v18  ;;  %v3610_v39 = vmul.f32 %v8369_v2, %v7836_v50  ;;  %3681 = vst [vmem:[#allocation3 + $0x48] sm:$0xff] %v3677_v27  ;;  %v3741_v29 = vpack.c.bf16 %v3735_v44, %v3734_v6  ;;  %v5775_v46 = vld [vmem:[#allocation4 + $0x3c0] sm:$0xff]   ;;  %v3611_v41 = vmul.f32 %v8370_v7, %v7838_v60  ;;  %v5764_v35 = vld [vmem:[#allocation4 + $0x2e8] sm:$0xff]   ;;  %v5766_v60 = vld [vmem:[#allocation4 + $0x330] sm:$0xff]  }
 0x6c8   :  { %v8063_v25 = vmul.f32 %v8371_v16, %v7824_v0  ;;  %v8372_v18 = vld [vmem:[#allocation37_spill] sm:$0xff]  ;;  %4652 = vmatprep.mubr.bf16.mxu0 %v3677_v27  ;;  %5339 = vmatpush3.bf16.msra.mxu0 %v5760_v15  ;;  %3617 = vst [vmem:[#allocation3 + $0x40] sm:$0xff] %v3613_v37  ;;  %v3806_v50 = vpack.c.bf16 %v7858_v4, %v3800_v42  ;;  %v5779_v44 = vld [vmem:[#allocation4 + $0x3c8] sm:$0xff]   ;;  %v5768_v4 = vld [vmem:[#allocation4 + $0x2f0] sm:$0xff]  }
 0x6c9   :  { %v8067_v26 = vmul.f32 %v8372_v18, %v7826_v38  ;;  %v3614_v6 = vpack.c.bf16 %v7854_v51, %v3608_v61  ;;  %5340 = vmatprep.subr.bf16.mxu0 %v5762_v31  ;;  %3745 = vst [vmem:[#allocation3 + $0x50] sm:$0xff] %v3741_v29  ;;  %4718 = vmatmul.mubr.bf16.gmra.mrb[44].mxu1 %v3741_v29  ;;  %v5777_v38 = vld [vmem:[#allocation4 + $0x380] sm:$0xff]   ;;  %v5770_v51 = vld [vmem:[#allocation4 + $0x338] sm:$0xff]   ;;  %v5781_v61 = vld [vmem:[#allocation4 + $0x388] sm:$0xff]  }
 0x6ca   :  { %v3615_v20 = vpack.c.bf16 %v3611_v41, %v3610_v39  ;;  %3810 = vst [vmem:[#allocation3 + $0x98] sm:$0xff] %v3806_v50  ;;  %4725 = vmatprep.mubr.bf16.mxu1 %v3806_v50  ;;  %5385 = vmatpush3.bf16.msra.mxu1 %v5773_v32  ;;  %v5783_v42 = vld [vmem:[#allocation4 + $0x3d0] sm:$0xff]   ;;  %v5772_v31 = vld [vmem:[#allocation4 + $0x2f8] sm:$0xff]   ;;  %v5774_v32 = vld [vmem:[#allocation4 + $0x340] sm:$0xff]  }
 0x6cb   :  { %v3932_v0 = vpack.c.bf16 %v8067_v26, %v8063_v25  ;;  %3618 = vst [vmem:[#allocation3 + $0x80] sm:$0xff] %v3614_v6  ;;  %5386 = vmatprep.subr.bf16.mxu1 %v5775_v46  ;;  %v5785_v15 = vld [vmem:[#allocation4 + $0x390] sm:$0xff]   ;;  %v5787_v40 = vld [vmem:[#allocation4 + $0x3d8] sm:$0xff]   ;;  %v5776_v21 = vld [vmem:[#allocation4 + $0x300] sm:$0xff]  }
 0x6cc   :  { %3619 = vst [vmem:[#allocation3 + $0xc0] sm:$0xff] %v3615_v20  ;;  %5341 = vmatpush3.bf16.msra.mxu0 %v5764_v35  ;;  %v5789_v3 = vld [vmem:[#allocation4 + $0x398] sm:$0xff]  }
 0x6cd   :  { %5342 = vmatprep.subr.bf16.mxu0 %v5766_v60  ;;  %v5786_v27 = vld [vmem:[#allocation4 + $0x358] sm:$0xff]  }
 0x6ce   :  { %5387 = vmatpush3.bf16.msra.mxu1 %v5777_v38  ;;  %4653 = vmatmul.mubr.bf16.gmra.mrb[36].mxu0 %v3613_v37  ;;  %v5778_v37 = vld [vmem:[#allocation4 + $0x348] sm:$0xff]  }
 0x6cf   :  { %5388 = vmatprep.subr.bf16.mxu1 %v5779_v44  ;;  %4660 = vmatprep.mubr.bf16.mxu0 %v7876_v55  ;;  %v5780_v55 = vld [vmem:[#allocation4 + $0x308] sm:$0xff]  }
 0x6d0   :  { %5343 = vmatpush3.bf16.msra.mxu0 %v5768_v4 }
 0x6d1   :  { %5344 = vmatprep.subr.bf16.mxu0 %v5770_v51  ;;  %4726 = vmatmul.mubr.bf16.gmra.mrb[48].mxu1 %v7931_v63  ;;  %v5784_v63 = vld [vmem:[#allocation4 + $0x310] sm:$0xff]  }
 0x6d2   :  { %4733 = vmatprep.mubr.bf16.mxu1 %v7910_v45  ;;  %5389 = vmatpush3.bf16.msra.mxu1 %v5781_v61  ;;  %v5782_v45 = vld [vmem:[#allocation4 + $0x350] sm:$0xff]  }
 0x6d3   :  { %5390 = vmatprep.subr.bf16.mxu1 %v5783_v42 }
 0x6d4   :  { %5345 = vmatpush3.bf16.msra.mxu0 %v5772_v31 }
 0x6d5   :  { %5346 = vmatprep.subr.bf16.mxu0 %v5774_v32 }
 0x6d6   :  { %5391 = vmatpush3.bf16.msra.mxu1 %v5785_v15  ;;  %4661 = vmatmul.mubr.bf16.gmra.mrb[40].mxu0 %v3614_v6 }
 0x6d7   :  { %5392 = vmatprep.subr.bf16.mxu1 %v5787_v40  ;;  %4668 = vmatprep.mubr.bf16.mxu0 %v7886_v23  ;;  %v8373_v23 = vpack.c.bf16 %v7870_v62, %v7850_v49  ;;  %v8377_v49 = vpack.c.bf16 %v7956_v53, %v7991_v8  ;;  %v8378_v62 = vpack.c.bf16 %v7960_v52, %v7935_v34 }
 0x6d8   :  { %5347 = vmatpush3.bf16.msra.mxu0 %v5776_v21 }
 0x6d9   :  { %5348 = vmatprep.subr.bf16.mxu0 %v5778_v37  ;;  %4734 = vmatmul.mubr.bf16.gmra.mrb[52].mxu1 %v7939_v43  ;;  %v8374_v43 = vpack.c.bf16 %v7914_v14, %v7904_v19  ;;  %v8379_v19 = vpack.c.bf16 %v8006_v54, %v7969_v58  ;;  %v8381_v14 = vpack.c.bf16 %v7995_v36, %v7983_v48 }
 0x6da   :  { %4839 = vmatprep.mubr.bf16.mxu1 %v4060_v59  ;;  %5393 = vmatpush3.bf16.msra.mxu1 %v5789_v3  ;;  %v8376_v59 = vpack.c.bf16 %v7922_v22, %v7999_v13  ;;  %v8382_v22 = vpack.c.bf16 %v8030_v9, %v8020_v12 }
 0x6dc   :  { %5349 = vmatpush3.bf16.msra.mxu0 %v5780_v55 }
 0x6dd   :  { %5350 = vmatprep.subr.bf16.mxu0 %v5782_v45 }
 0x6de   :  { %4669 = vmatmul.mubr.bf16.gmra.mrb[44].mxu0 %v3615_v20 }
 0x6df   :  { %4774 = vmatprep.mubr.bf16.mxu0 %v3932_v0 }
 0x6e0   :  { %5351 = vmatpush3.bf16.msra.mxu0 %v5784_v63 }
 0x6e1   :  { %5352 = vmatprep.subr.bf16.mxu0 %v5786_v27  ;;  %4840 = vmatmul.mubr.bf16.vlgmr.msra.gmra.mrb[56].mxu1 %v8373_v23 }
 0x6e2   :  { %4847 = vmatprep.mubr.bf16.mxu1 %v8374_v43 }
 0x6e4   :  { %5353 = vmatpush3.bf16.msra.mxu0 %v5788_v5 }
 0x6e5   :  { %5469 = vmatprep.subr.bf16.mxu0 %v8087_v11 }
 0x6e7   :  { %4775 = vmatmul.mubr.bf16.vlgmr.msra.gmra.mrb[48].mxu0 %v7963_v47 }
 0x6e8   :  { %4782 = vmatprep.mubr.bf16.mxu0 %v8375_v17 }
 0x6e9   :  { %4848 = vmatmul.mubr.bf16.gmra.mrb[60].mxu1 %v8376_v59 }
 0x6ea   :  { %4855 = vmatprep.mubr.bf16.mxu1 %v8377_v49 }
 0x6ef   :  { %4783 = vmatmul.mubr.bf16.gmra.mrb[52].mxu0 %v7965_v24 }
 0x6f0   :  { %4790 = vmatprep.mubr.bf16.mxu0 %v8378_v62 }
 0x6f1   :  { %4856 = vmatmul.mubr.bf16.gmra.mrb[64].mxu1 %v8379_v19 }
 0x6f2   :  { %4863 = vmatprep.mubr.bf16.mxu1 %v8380_v56 }
 0x6f7   :  { %4791 = vmatmul.mubr.bf16.gmra.mrb[56].mxu0 %v7975_v10 }
 0x6f8   :  { %4798 = vmatprep.mubr.bf16.mxu0 %v8381_v14 }
 0x6f9   :  { %4864 = vmatmul.mubr.bf16.gmra.mrb[68].mxu1 %v8382_v22 }
 0x6ff   :  { %4799 = vmatmul.mubr.bf16.gmra.mrb[60].mxu0 %v8024_v33 }
 0x700   :  { %5477 = vmatprep.mubr.msk.bf16.mxu0 %vm5879_vm1, %v8087_v11 }
 0x78e   :  { %v5314_v34 = vpop.f32.mrb[40].mxu1 }
 0x78f   :  { %v5315_v30 = vpop.f32.mrb[41].mxu1 }
 0x790   :  { %v5316_v53 = vadd.f32 %v5315_v30, %v5314_v34  ;;  %v5317_v52 = vpop.f32.mrb[42].mxu1 }
 0x791   :  { %v5318_v47 = vpop.f32.mrb[43].mxu1 }
 0x792   :  { %v5319_v24 = vadd.f32 %v5318_v47, %v5317_v52 }
 0x799   :  { %v5274_v58 = vpop.f32.mrb[32].mxu0 }
 0x79a   :  { %v5275_v10 = vpop.f32.mrb[33].mxu0 }
 0x79b   :  { %v5276_v8 = vadd.f32 %v5275_v10, %v5274_v58  ;;  %v5277_v48 = vpop.f32.mrb[34].mxu0 }
 0x79c   :  { %v5320_v36 = vpop.f32.mrb[44].mxu1  ;;  %v5278_v13 = vpop.f32.mrb[35].mxu0 }
 0x79d   :  { %v5321_v54 = vpop.f32.mrb[45].mxu1  ;;  %v4712_v57 = vadd.f32 %v5316_v53, %v5276_v8  ;;  %v5279_v12 = vadd.f32 %v5278_v13, %v5277_v48 }
 0x79e   :  { %v5322_v1 = vadd.f32 %v5321_v54, %v5320_v36  ;;  %v5323_v33 = vpop.f32.mrb[46].mxu1 }
 0x79f   :  { %v5324_v9 = vpop.f32.mrb[47].mxu1  ;;  %v4715_v28 = vadd.f32 %v5319_v24, %v5279_v12 }
 0x7a0   :  { %v5325_v2 = vadd.f32 %v5324_v9, %v5323_v33 }
 0x7a1   :  { %v5280_v39 = vpop.f32.mrb[36].mxu0 }
 0x7a2   :  { %v5281_v29 = vpop.f32.mrb[37].mxu0 }
 0x7a3   :  { %v5282_v46 = vadd.f32 %v5281_v29, %v5280_v39  ;;  %v5283_v7 = vpop.f32.mrb[38].mxu0 }
 0x7a4   :  { %v5326_v41 = vpop.f32.mrb[48].mxu1  ;;  %v5284_v16 = vpop.f32.mrb[39].mxu0 }
 0x7a5   :  { %v5327_v25 = vpop.f32.mrb[49].mxu1  ;;  %v4720_v18 = vadd.f32 %v5322_v1, %v5282_v46  ;;  %v5285_v26 = vadd.f32 %v5284_v16, %v5283_v7 }
 0x7a6   :  { %v5328_v35 = vadd.f32 %v5327_v25, %v5326_v41  ;;  %v5329_v50 = vpop.f32.mrb[50].mxu1 }
 0x7a7   :  { %v5330_v6 = vpop.f32.mrb[51].mxu1  ;;  %v4723_v60 = vadd.f32 %v5325_v2, %v5285_v26 }
 0x7a8   :  { %v5331_v20 = vadd.f32 %v5330_v6, %v5329_v50 }
 0x7a9   :  { %v5286_v0 = vpop.f32.mrb[40].mxu0 }
 0x7aa   :  { %v5287_v38 = vpop.f32.mrb[41].mxu0 }
 0x7ab   :  { %v5288_v44 = vadd.f32 %v5287_v38, %v5286_v0  ;;  %v5289_v4 = vpop.f32.mrb[42].mxu0 }
 0x7ac   :  { %v5332_v51 = vpop.f32.mrb[52].mxu1  ;;  %v5290_v61 = vpop.f32.mrb[43].mxu0 }
 0x7ad   :  { %v5333_v42 = vpop.f32.mrb[53].mxu1  ;;  %v8119_v31 = vadd.f32 %v5328_v35, %v5288_v44  ;;  %v5291_v32 = vadd.f32 %v5290_v61, %v5289_v4 }
 0x7ae   :  { %v5334_v15 = vadd.f32 %v5333_v42, %v5332_v51  ;;  %v5335_v40 = vpop.f32.mrb[54].mxu1 }
 0x7af   :  { %v5336_v21 = vpop.f32.mrb[55].mxu1  ;;  %v8121_v37 = vadd.f32 %v5331_v20, %v5291_v32 }
 0x7b0   :  { %v5337_v3 = vadd.f32 %v5336_v21, %v5335_v40 }
 0x7b1   :  { %v5292_v55 = vpop.f32.mrb[44].mxu0 }
 0x7b2   :  { %v5293_v45 = vpop.f32.mrb[45].mxu0 }
 0x7b3   :  { %v5294_v63 = vadd.f32 %v5293_v45, %v5292_v55  ;;  %v5295_v27 = vpop.f32.mrb[46].mxu0 }
 0x7b4   :  { %v5394_v5 = vpop.f32.mrb[56].mxu1  ;;  %v5296_v23 = vpop.f32.mrb[47].mxu0 }
 0x7b5   :  { %v5395_v43 = vpop.f32.mrb[57].mxu1  ;;  %v8123_v17 = vadd.f32 %v5334_v15, %v5294_v63  ;;  %v5297_v59 = vadd.f32 %v5296_v23, %v5295_v27 }
 0x7b6   :  { %v5396_v49 = vadd.f32 %v5395_v43, %v5394_v5  ;;  %v5397_v62 = vpop.f32.mrb[58].mxu1 }
 0x7b7   :  { %v5398_v19 = vpop.f32.mrb[59].mxu1  ;;  %v8125_v56 = vadd.f32 %v5337_v3, %v5297_v59 }
 0x7b8   :  { %v5399_v14 = vadd.f32 %v5398_v19, %v5397_v62 }
 0x7ba   :  { %v5354_v22 = vpop.f32.mrb[48].mxu0 }
 0x7bb   :  { %v5355_v34 = vpop.f32.mrb[49].mxu0 }
 0x7bc   :  { %v5356_v30 = vadd.f32 %v5355_v34, %v5354_v22  ;;  %v5357_v53 = vpop.f32.mrb[50].mxu0  ;;  %v5400_v52 = vpop.f32.mrb[60].mxu1 }
 0x7bd   :  { %v5358_v47 = vpop.f32.mrb[51].mxu0  ;;  %v5401_v24 = vpop.f32.mrb[61].mxu1 }
 0x7be   :  { %v4777_v58 = vadd.f32 %v5356_v30, %v4712_v57  ;;  %v5359_v10 = vadd.f32 %v5358_v47, %v5357_v53  ;;  %v5402_v8 = vadd.f32 %v5401_v24, %v5400_v52  ;;  %v5403_v48 = vpop.f32.mrb[62].mxu1 }
 0x7bf   :  { %v5404_v36 = vpop.f32.mrb[63].mxu1 }
 0x7c0   :  { %v4842_v13 = vadd.f32 %v5396_v49, %v4777_v58  ;;  %v4780_v54 = vadd.f32 %v5359_v10, %v4715_v28  ;;  %v5405_v12 = vadd.f32 %v5404_v36, %v5403_v48 }
 0x7c2   :  { %v4845_v1 = vadd.f32 %v5399_v14, %v4780_v54  ;;  %v5360_v33 = vpop.f32.mrb[52].mxu0 }
 0x7c3   :  { %v5361_v9 = vpop.f32.mrb[53].mxu0 }
 0x7c4   :  { %v4874_v2 = vpack.c.bf16 %v4845_v1, %v4842_v13  ;;  %v5362_v39 = vadd.f32 %v5361_v9, %v5360_v33  ;;  %v5363_v29 = vpop.f32.mrb[54].mxu0  ;;  %v5406_v46 = vpop.f32.mrb[64].mxu1  ;;  %v5113_v33 = vld [vmem:[%s8165_s3 + $0x7] ss:$0 sm:$0xff] }
 0x7c5   :  { %v5364_v7 = vpop.f32.mrb[55].mxu0  ;;  %v5407_v41 = vpop.f32.mrb[65].mxu1 }
 0x7c6   :  { %v4785_v16 = vadd.f32 %v5362_v39, %v4720_v18  ;;  %v5365_v25 = vadd.f32 %v5364_v7, %v5363_v29  ;;  %5470 = vmatpush3.bf16.msra.mxu0 %v4874_v2  ;;  %v5408_v57 = vadd.f32 %v5407_v41, %v5406_v46  ;;  %v5409_v26 = vpop.f32.mrb[66].mxu1  ;;  %v5114_v2 = vld [vmem:[%s8165_s3 + $0x8] ss:$0 sm:$0xff] }
 0x7c7   :  { %v5410_v35 = vpop.f32.mrb[67].mxu1  ;;  %5471 = vmatprep.subr.bf16.mxu0 %v8087_v11 }
 0x7c8   :  { %v4850_v50 = vadd.f32 %v5402_v8, %v4785_v16  ;;  %v4788_v28 = vadd.f32 %v5365_v25, %v4723_v60  ;;  %v5411_v6 = vadd.f32 %v5410_v35, %v5409_v26 }
 0x7ca   :  { %v4853_v20 = vadd.f32 %v5405_v12, %v4788_v28  ;;  %v5366_v0 = vpop.f32.mrb[56].mxu0 }
 0x7cb   :  { %v5367_v38 = vpop.f32.mrb[57].mxu0 }
 0x7cc   :  { %v4875_v44 = vpack.c.bf16 %v4853_v20, %v4850_v50  ;;  %v5368_v4 = vadd.f32 %v5367_v38, %v5366_v0  ;;  %v5369_v51 = vpop.f32.mrb[58].mxu0  ;;  %v5412_v61 = vpop.f32.mrb[68].mxu1 }
 0x7cd   :  { %v5370_v42 = vpop.f32.mrb[59].mxu0  ;;  %v5413_v32 = vpop.f32.mrb[69].mxu1 }
 0x7ce   :  { %v4793_v18 = vadd.f32 %v5368_v4, %v8119_v31  ;;  %v5371_v15 = vadd.f32 %v5370_v42, %v5369_v51  ;;  %5472 = vmatpush3.bf16.msra.mxu0 %v4875_v44  ;;  %v5414_v40 = vadd.f32 %v5413_v32, %v5412_v61  ;;  %v5415_v21 = vpop.f32.mrb[70].mxu1 }
 0x7cf   :  { %v5416_v3 = vpop.f32.mrb[71].mxu1  ;;  %5473 = vmatprep.subr.bf16.mxu0 %v8087_v11 }
 0x7d0   :  { %v4858_v60 = vadd.f32 %v5408_v57, %v4793_v18  ;;  %v4796_v55 = vadd.f32 %v5371_v15, %v8121_v37  ;;  %v5417_v45 = vadd.f32 %v5416_v3, %v5415_v21  ;;  %v4872_v37 = vld [vmem:[%s8165_s3 + $0x10] sm:$0x3] }
 0x7d1   :  { %v4873_v30 = vpack.c.bf16 %v4872_v37, %v4872_v37 }
 0x7d2   :  { %v4861_v63 = vadd.f32 %v5411_v6, %v4796_v55  ;;  %v5372_v27 = vpop.f32.mrb[60].mxu0 }
 0x7d3   :  { %v5373_v5 = vpop.f32.mrb[61].mxu0 }
 0x7d4   :  { %v4876_v23 = vpack.c.bf16 %v4861_v63, %v4858_v60  ;;  %v5374_v43 = vadd.f32 %v5373_v5, %v5372_v27  ;;  %v5375_v59 = vpop.f32.mrb[62].mxu0 }
 0x7d5   :  { %v5376_v49 = vpop.f32.mrb[63].mxu0 }
 0x7d6   :  { %v4801_v31 = vadd.f32 %v5374_v43, %v8123_v17  ;;  %v5377_v62 = vadd.f32 %v5376_v49, %v5375_v59  ;;  %5474 = vmatpush3.bf16.msra.mxu0 %v4876_v23  ;;  %v5111_v17 = vld [vmem:[%s8165_s3 + $0x6] ss:$0 sm:$0xff] }
 0x7d7   :  { %5475 = vmatprep.subr.bf16.mxu0 %v8087_v11 }
 0x7d8   :  { %v4866_v19 = vadd.f32 %v5414_v40, %v4801_v31  ;;  %v4804_v14 = vadd.f32 %v5377_v62, %v8125_v56 }
 0x7da   :  { %v4869_v22 = vadd.f32 %v5417_v45, %v4804_v14 }
 0x7dc   :  { %v4877_v34 = vpack.c.bf16 %v4869_v22, %v4866_v19 }
 0x7de   :  { %5476 = vmatpush3.bf16.msra.mxu0 %v4877_v34 }
 0x7e1   :  { %5478 = vmatmul.mubr.msk.bf16.vlgmr.msra.gmra.mrb[64].mxu0 %vm2127_vm15, %v4873_v30 }
 0x8b4   :  { %v4920_v53 = vpop.f32.mrb[64].mxu0 }
 0x8b5   :  { %v4921_v11 = vadd.f32 %v5111_v17, %v4920_v53  ;;  %v5479_v52 = vpop.f32.mrb[65].mxu0 }
 0x8b6   :  { %v4923_v47 = vpop.f32.mrb[66].mxu0 }
 0x8b7   :  { %v4927_v56 = vsel %vm4926_vm2, %v4921_v11, 0.0  ;;  %v5480_v24 = vpop.f32.mrb[67].mxu0 }
 0x8b8   :  { %4928 = vadd.xlane.f32.xlu0 %v4927_v56 }
 0x945   :  { %v4929_v58 = vpop.xlane.xlu0 %4928 }
 0x946   :  { %v4931_v10 = vmul.f32 0.03125, %v4929_v58 }
 0x948   :  { %v4932_v8 = vsub.f32 %v4921_v11, %v4931_v10 }
 0x94a   :  { %v4933_v48 = vmul.f32 %v4932_v8, %v4932_v8 }
 0x94c   :  { %v4934_v36 = vsel %vm4926_vm2, %v4933_v48, 0.0 }
 0x94d   :  { %4935 = vadd.xlane.f32.xlu1 %v4934_v36 }
 0x9da   :  { %v4936_v13 = vpop.xlane.xlu1 %4935 }
 0x9db   :  { %v4937_v54 = vmul.f32 0.03125, %v4936_v13 }
 0x9dd   :  { %v4938_v12 = vadd.f32 1e-05, %v4937_v54 }
 0x9df   :  { %5796 = vrsqrt.f32 %v4938_v12 }
 0x9e9   :  { %v5797_v1 = vpop.eup %5796 }
 0x9ea   :  { %v4940_v9 = vmul.f32 %v5797_v1, %v4932_v8 }
 0x9ec   :  { %v4946_v39 = vmul.f32 %v5113_v33, %v4940_v9 }
 0x9ee   :  { %v4952_v29 = vadd.f32 %v5114_v2, %v4946_v39 }
 0x9f0   :  { %v4953_v46 = vmax.f32 %v4952_v29, 0.0 }
 0x9f2   :  { %4954 = vst.msk [vmem:[#allocation7] sm:$0x3] %vm4926_vm2, %v4953_v46 }
 0x9f3   :  { %5835 = shalt.err (!%p5832_p12)
}
 0x9f4   :  { %s5836_s6 = scalar_lea.hbm %s8166_s4, 32 }
 0x9f5   :  { %p5837_p13 = scmp.ne.s32.totalorder %s8166_s4, %s5836_s6  ;;  %p5840_p0 = scmp.lt.u32.totalorder %s5836_s6, %s8166_s4 }
 0x9f7   :  { %p5842_p1 = pnand %p5840_p0, %p5837_p13 }
 0x9f9   :  { %5845 = shalt.err (!%p5842_p1)
}
 0x9fa   :  { %4964 = dma.vmem_to_hbm [thread:$0]  %s4962_s1, 32, %s8166_s4, [#allocation6]  }
 0x9fb   :  { %5848 = dma.done.wait [#allocation6], 32  }
 0x9fc   :  { %5849 = vsyncadd [#allocation6], 4294967264 }
 0x9fd   :  { %4968 = vsyncpa [#allocation5], 1 }
 0x9fe   :  { %4969 = vsyncpa [#allocation6], 1 }

</bundles_post_ra>
